<compile_context>
chip_gen: v7x
topology: tpu7x:2x2x1
jax: 0.10.0
libtpu: 0.0.40
codegen_flags: <defaults>
</compile_context>

<pallas_src>
import jax
import jax.numpy as jnp
import numpy as np
from jax import lax
from jax.experimental import pallas as pl
from jax.experimental.pallas import tpu as pltpu


def _sigmoid(x):
    # Exact f32 sigmoid (matches the reference at 1e-4).  For a small extra
    # win: pl.reciprocal(1.0 + jnp.exp(-x), approx=True) + looser tolerance.
    return 1.0 / (1.0 + jnp.exp(-x))


# --------------------------------- kernel ----------------------------------- #

def lenet_kernel(img_ref, w1b_ref, b1l_ref, w2b_ref, b2l_ref, v1_ref,
                 b1f_ref, w2f_ref, b2f_ref, w3f_ref, b3f_ref, out_ref):
    """One batch tile (TB images) of the whole LeNet forward.

    img_ref : (1, 28*TB, 28) raw images, rows ordered (i, b) -- i outer, b inner.
    w1b_ref : (2, 5, 28, 72) conv1 width-banded weights [col-parity, kh];
                             output lanes = c*12 + j2 (pooled column j2).
    b1l_ref : (1, 72)        conv1 bias broadcast over lanes (c*12 + j2).
    w2b_ref : (2, 5, 72, 64) conv2 width-banded weights [col-parity, kh];
                             output lanes = co*4 + j4 (pooled column j4).
    b2l_ref : (1, 64)        conv2 bias broadcast over lanes (co*4 + j4).
    v1_ref  : (4, 64, 128)   fc1 weight split per pooled row i4 (K-stacked).
    b1f/w2f/b2f/w3f/b3f :    fc biases / weights zero-padded to 128 lanes.
    out_ref : (TB, 128)      lane-dense logits; real outputs are lanes 0..9.
    """
    tb = out_ref.shape[0]
    img = img_ref[0]                                     # (28*TB, 28), rows (i, b)

    def conv_banded(x, w_ref, n_out_rows):
        # For each output-column parity p and kernel row kh: one banded GEMM
        # over the width, then a sublane-aligned row-shifted accumulation over
        # kh.  max over p folds the column half of the 2x2 pool (no lane ops).
        acc = [None, None]
        for p in range(2):
            for kh in range(5):
                m = jnp.dot(x, w_ref[p, kh], preferred_element_type=jnp.float32)
                s = m[kh * tb:(kh + n_out_rows) * tb]    # rows (oi, b), shifted by kh
                acc[p] = s if acc[p] is None else acc[p] + s
        return jnp.maximum(acc[0], acc[1])

    # ---- conv1 (5x5, cin=1) + 2x2 max-pool --------------------------------
    y1 = conv_banded(img, w1b_ref, 24)                   # (24*TB, 72)
    y1 = y1.reshape(12, 2, tb, 72)
    y1 = jnp.maximum(y1[:, 0], y1[:, 1])                 # row half of pool -> (12, TB, 72)
    a1 = _sigmoid(y1 + b1l_ref[...])                     # pool-before-bias+sigmoid (monotone)
    a1 = a1.reshape(12 * tb, 72)                         # rows (i2, b)

    # ---- conv2 (5x5, cin=6) + 2x2 max-pool --------------------------------
    y2 = conv_banded(a1, w2b_ref, 8)                     # (8*TB, 64)
    y2 = y2.reshape(4, 2, tb, 64)
    y2 = jnp.maximum(y2[:, 0], y2[:, 1])                 # (4, TB, 64) rows i4, lanes co*4+j4
    a2 = _sigmoid(y2 + b2l_ref[...])

    # ---- fc1 as a K-stacked sum over the 4 pooled rows (no flatten/transpose)
    h = jnp.dot(a2[0], v1_ref[0], preferred_element_type=jnp.float32)
    for i4 in range(1, 4):
        h = h + jnp.dot(a2[i4], v1_ref[i4], preferred_element_type=jnp.float32)
    h = _sigmoid(h + b1f_ref[...])

    # ---- fc2, fc3 (128-lane padded GEMMs) ----------------------------------
    h = _sigmoid(jnp.dot(h, w2f_ref[...], preferred_element_type=jnp.float32)
                 + b2f_ref[...])
    out_ref[...] = _sigmoid(jnp.dot(h, w3f_ref[...],
                                    preferred_element_type=jnp.float32)
                            + b3f_ref[...])


# ------------------------------ parameter prep ------------------------------ #

def _prep_params(p):
    """Build banded conv weights / padded fc weights (jit-traceable)."""
    f32 = jnp.float32

    # conv1 -> width-banded weights, one (28, 72) matrix per (col parity pj,
    # kernel row kh); W1b[pj,kh][j, c*12+j2] = w1[c,kh, j - (2*j2+pj)].
    w1 = p["conv1_w"].astype(f32).reshape(6, 5, 5)               # (c, kh, kw)
    lane = np.arange(72)
    c1, j2 = lane // 12, lane % 12
    pj = np.arange(2).reshape(2, 1, 1)
    jj = np.arange(28).reshape(1, 28, 1)
    kw = jj - ((2 * j2).reshape(1, 1, 72) + pj)                  # (2, 28, 72)
    valid = (kw >= 0) & (kw < 5)
    kwc = np.clip(kw, 0, 4)
    cb = np.broadcast_to(c1.reshape(1, 1, 72), kw.shape)
    w1b = jnp.where(jnp.asarray(valid)[None],
                    w1.transpose(1, 0, 2)[:, cb, kwc],           # (5, 2, 28, 72)
                    0.0).transpose(1, 0, 2, 3)                   # (2, 5, 28, 72)

    # conv2 -> width-banded weights over the pooled conv1 width (K = 6*12).
    # W2b[pj3,kh][c*12+j2, co*4+j4] = w2[co,c,kh, j2 - (2*j4+pj3)].
    w2 = p["conv2_w"].astype(f32)                                # (co, c, kh, kw)
    kk = np.arange(72)
    c2, j2k = kk // 12, kk % 12
    ll = np.arange(64)
    co, j4 = ll // 4, ll % 4
    pj3 = np.arange(2).reshape(2, 1, 1)
    kw2 = j2k.reshape(1, 72, 1) - ((2 * j4).reshape(1, 1, 64) + pj3)   # (2,72,64)
    valid2 = (kw2 >= 0) & (kw2 < 5)
    kw2c = np.clip(kw2, 0, 4)
    cob = np.broadcast_to(co.reshape(1, 1, 64), kw2.shape)
    c2b = np.broadcast_to(c2.reshape(1, 72, 1), kw2.shape)
    w2b = jnp.where(jnp.asarray(valid2)[None],
                    w2.transpose(2, 0, 1, 3)[:, cob, c2b, kw2c],  # (5, 2, 72, 64)
                    0.0).transpose(1, 0, 2, 3)                    # (2, 5, 72, 64)

    # Per-channel biases broadcast to the kernel's lane layouts.
    b1l = jnp.repeat(p["conv1_b"].astype(f32), 12).reshape(1, 72)
    b2l = jnp.repeat(p["conv2_b"].astype(f32), 4).reshape(1, 64)

    # fc1 regrouped per pooled row i4 so the kernel K-stacks over i4;
    # torch flatten order of (co, i4, j4) is f = co*16 + i4*4 + j4.
    i4 = np.arange(4).reshape(4, 1)
    m = np.arange(64).reshape(1, 64)
    f_idx = (m // 4) * 16 + i4 * 4 + (m % 4)                      # (4, 64)
    v1 = jnp.pad(p["fc1_w"].astype(f32).T[f_idx], ((0, 0), (0, 0), (0, 8)))  # (4,64,128)
    b1f = jnp.pad(p["fc1_b"].astype(f32), (0, 8)).reshape(1, 128)
    w2f = jnp.pad(p["fc2_w"].astype(f32).T, ((0, 8), (0, 44)))    # (128, 128)
    b2f = jnp.pad(p["fc2_b"].astype(f32), (0, 44)).reshape(1, 128)
    w3f = jnp.pad(p["fc3_w"].astype(f32).T, ((0, 44), (0, 118)))  # (128, 128)
    b3f = jnp.pad(p["fc3_b"].astype(f32), (0, 118)).reshape(1, 128)
    return w1b, b1l, w2b, b2l, v1, b1f, w2f, b2f, w3f, b3f


# ------------------------------ wrapper (glue) ------------------------------ #

def lenet_forward(x, p, *, tb=8):
    """LeNet forward: x (B, 1, 28, 28) -> (B, 10).  tb = batch tile (mult of 8).

    tb can be raised (e.g. 16/32) for larger batches; VMEM per tile is only a
    few hundred KB, well within v5e/v6e/v7x scoped limits.
    """
    assert tb % 8 == 0, "batch tile must be a multiple of 8 (sublane tile)"
    b = x.shape[0]
    nb = pl.cdiv(b, tb)
    bp = nb * tb

    # Raw image is the only per-batch HBM read; rows per tile ordered (i, b)
    # so in-kernel kh row shifts are contiguous, sublane-aligned slices.
    img = x.astype(jnp.float32).reshape(b, 28, 28)
    if bp != b:
        img = jnp.pad(img, ((0, bp - b), (0, 0), (0, 0)))
    img = img.reshape(nb, tb, 28, 28).transpose(0, 2, 1, 3).reshape(nb, 28 * tb, 28)

    args = _prep_params(p)

    # Advisory cost estimate for the XLA scheduler (per-call totals).
    flops = 2 * bp * (10 * 28 * 28 * 72 + 10 * 12 * 72 * 64
                      + 4 * 64 * 128 + 2 * 128 * 128)
    transcendentals = bp * (12 * 72 + 4 * 64 + 3 * 128)
    bytes_accessed = 4 * (bp * (28 * 28 + 128)
                          + sum(int(np.prod(a.shape)) for a in args))

    grid_spec = pltpu.PrefetchScalarGridSpec(
        num_scalar_prefetch=0,
        grid=(nb,),
        in_specs=[
            pl.BlockSpec((1, 28 * tb, 28), lambda t: (t, 0, 0)),     # image tile
            pl.BlockSpec((2, 5, 28, 72), lambda t: (0, 0, 0, 0)),    # conv1 banded
            pl.BlockSpec((1, 72), lambda t: (0, 0)),
            pl.BlockSpec((2, 5, 72, 64), lambda t: (0, 0, 0, 0)),    # conv2 banded
            pl.BlockSpec((1, 64), lambda t: (0, 0)),
            pl.BlockSpec((4, 64, 128), lambda t: (0, 0, 0)),         # fc1 (K-stacked)
            pl.BlockSpec((1, 128), lambda t: (0, 0)),
            pl.BlockSpec((128, 128), lambda t: (0, 0)),
            pl.BlockSpec((1, 128), lambda t: (0, 0)),
            pl.BlockSpec((128, 128), lambda t: (0, 0)),
            pl.BlockSpec((1, 128), lambda t: (0, 0)),
        ],
        out_specs=pl.BlockSpec((tb, 128), lambda t: (t, 0)),
    )

    out = pl.pallas_call(
        lenet_kernel,
        out_shape=jax.ShapeDtypeStruct((bp, 128), jnp.float32),
        grid_spec=grid_spec,
        compiler_params=pltpu.CompilerParams(
            dimension_semantics=("parallel",),
            vmem_limit_bytes=32 * 1024 * 1024,
        ),
        cost_estimate=pl.CostEstimate(flops=flops,
                                      transcendentals=transcendentals,
                                      bytes_accessed=bytes_accessed),
    )(img, *args)
    return out[:b, :10]


# -------------------------- params & pure-JAX reference --------------------- #

def init_params(key):
    ks = jax.random.split(key, 10)

    def u(k, shape, fan_in):
        bound = 1.0 / np.sqrt(fan_in)
        return jax.random.uniform(k, shape, jnp.float32, -bound, bound)

    return {
        "conv1_w": u(ks[0], (6, 1, 5, 5), 1 * 25),
        "conv1_b": u(ks[1], (6,), 1 * 25),
        "conv2_w": u(ks[2], (16, 6, 5, 5), 6 * 25),
        "conv2_b": u(ks[3], (16,), 6 * 25),
        "fc1_w": u(ks[4], (120, 256), 256),
        "fc1_b": u(ks[5], (120,), 256),
        "fc2_w": u(ks[6], (84, 120), 120),
        "fc2_b": u(ks[7], (84,), 120),
        "fc3_w": u(ks[8], (10, 84), 84),
        "fc3_b": u(ks[9], (10,), 84),
    }


def ref_forward(x, p):
    def conv(xx, w, b):
        y = lax.conv_general_dilated(xx, w, (1, 1), "VALID",
                                     dimension_numbers=("NCHW", "OIHW", "NCHW"))
        return y + b[None, :, None, None]

    def pool(xx):
        return lax.reduce_window(xx, -jnp.inf, lax.max,
                                 (1, 1, 2, 2), (1, 1, 2, 2), "VALID")

    h = pool(_sigmoid(conv(x, p["conv1_w"], p["conv1_b"])))
    h = pool(_sigmoid(conv(h, p["conv2_w"], p["conv2_b"])))
    h = h.reshape(x.shape[0], -1)
    h = _sigmoid(h @ p["fc1_w"].T + p["fc1_b"])
    h = _sigmoid(h @ p["fc2_w"].T + p["fc2_b"])
    return _sigmoid(h @ p["fc3_w"].T + p["fc3_b"])


if __name__ == "__main__":
    key = jax.random.PRNGKey(0)
    k_x, k_p = jax.random.split(key)
    # LeNet's FC expects 16*4*4 features => input must be 28x28, 1 channel.
    x = jax.random.normal(k_x, (2, 1, 28, 28), jnp.float32)
    params = init_params(k_p)

    out = jax.block_until_ready(jax.jit(lenet_forward)(x, params))
    ref = jax.block_until_ready(jax.jit(ref_forward)(x, params))

    assert out.shape == (2, 10) and out.dtype == jnp.float32
    np.testing.assert_allclose(np.asarray(out), np.asarray(ref),
                               rtol=1e-4, atol=1e-4)
    print("KERNEL_OK")
</pallas_src>

<mosaic_0001>
module attributes {stable_mosaic.version = 11 : i64} {
  func.func @lenet_kernel(%arg0: i32, %arg1: memref<1x224x28xf32, #tpu.memory_space<vmem>>, %arg2: memref<2x5x28x72xf32, #tpu.memory_space<vmem>>, %arg3: memref<1x72xf32, #tpu.memory_space<vmem>>, %arg4: memref<2x5x72x64xf32, #tpu.memory_space<vmem>>, %arg5: memref<1x64xf32, #tpu.memory_space<vmem>>, %arg6: memref<4x64x128xf32, #tpu.memory_space<vmem>>, %arg7: memref<1x128xf32, #tpu.memory_space<vmem>>, %arg8: memref<128x128xf32, #tpu.memory_space<vmem>>, %arg9: memref<1x128xf32, #tpu.memory_space<vmem>>, %arg10: memref<128x128xf32, #tpu.memory_space<vmem>>, %arg11: memref<1x128xf32, #tpu.memory_space<vmem>>, %arg12: memref<8x128xf32, #tpu.memory_space<vmem>>) attributes {dimension_semantics = [#tpu.dimension_semantics<parallel>], iteration_bounds = array<i64: 1>, scalar_prefetch = 0 : i64, scratch_operands = 0 : i64, tpu.core_type = #tpu.core_type<tc>, window_params = [{transform_indices = @transform_0, window_bounds = array<i64: 1, 224, 28>}, {pipeline_mode = #tpu.pipeline_mode<synchronous>, transform_indices = @transform_1, window_bounds = array<i64: 2, 5, 28, 72>}, {pipeline_mode = #tpu.pipeline_mode<synchronous>, transform_indices = @transform_2, window_bounds = array<i64: 1, 72>}, {pipeline_mode = #tpu.pipeline_mode<synchronous>, transform_indices = @transform_3, window_bounds = array<i64: 2, 5, 72, 64>}, {pipeline_mode = #tpu.pipeline_mode<synchronous>, transform_indices = @transform_4, window_bounds = array<i64: 1, 64>}, {pipeline_mode = #tpu.pipeline_mode<synchronous>, transform_indices = @transform_5, window_bounds = array<i64: 4, 64, 128>}, {pipeline_mode = #tpu.pipeline_mode<synchronous>, transform_indices = @transform_6, window_bounds = array<i64: 1, 128>}, {pipeline_mode = #tpu.pipeline_mode<synchronous>, transform_indices = @transform_7, window_bounds = array<i64: 128, 128>}, {pipeline_mode = #tpu.pipeline_mode<synchronous>, transform_indices = @transform_8, window_bounds = array<i64: 1, 128>}, {pipeline_mode = #tpu.pipeline_mode<synchronous>, transform_indices = @transform_9, window_bounds = array<i64: 128, 128>}, {pipeline_mode = #tpu.pipeline_mode<synchronous>, transform_indices = @transform_10, window_bounds = array<i64: 1, 128>}, {transform_indices = @transform_11, window_bounds = array<i64: 8, 128>}]} {
    %c0 = arith.constant 0 : index
    %c0_0 = arith.constant 0 : index
    %c0_1 = arith.constant 0 : index
    %0 = vector.load %arg1[%c0, %c0_0, %c0_1] : memref<1x224x28xf32, #tpu.memory_space<vmem>>, vector<1x224x28xf32>
    %1 = vector.shape_cast %0 : vector<1x224x28xf32> to vector<224x28xf32>
    %c0_2 = arith.constant 0 : index
    %c0_3 = arith.constant 0 : index
    %c0_4 = arith.constant 0 : index
    %c0_5 = arith.constant 0 : index
    %2 = vector.load %arg2[%c0_2, %c0_3, %c0_4, %c0_5] : memref<2x5x28x72xf32, #tpu.memory_space<vmem>>, vector<1x1x28x72xf32>
    %3 = vector.shape_cast %2 : vector<1x1x28x72xf32> to vector<28x72xf32>
    %cst = arith.constant dense<0.000000e+00> : vector<224x72xf32>
    %4 = tpu.matmul %1, %3, %cst {dimension_numbers = #tpu.dot_dimension_numbers<[1], [0], [0], [1], [0, 0, 1, 1], [], []>} : vector<224x28xf32>, vector<28x72xf32>, vector<224x72xf32> -> vector<224x72xf32>
    %5 = vector.extract_strided_slice %4 {offsets = [0, 0], sizes = [192, 72], strides = [1, 1]} : vector<224x72xf32> to vector<192x72xf32>
    %c0_6 = arith.constant 0 : index
    %c1 = arith.constant 1 : index
    %c0_7 = arith.constant 0 : index
    %c0_8 = arith.constant 0 : index
    %6 = vector.load %arg2[%c0_6, %c1, %c0_7, %c0_8] : memref<2x5x28x72xf32, #tpu.memory_space<vmem>>, vector<1x1x28x72xf32>
    %7 = vector.shape_cast %6 : vector<1x1x28x72xf32> to vector<28x72xf32>
    %cst_9 = arith.constant dense<0.000000e+00> : vector<224x72xf32>
    %8 = tpu.matmul %1, %7, %cst_9 {dimension_numbers = #tpu.dot_dimension_numbers<[1], [0], [0], [1], [0, 0, 1, 1], [], []>} : vector<224x28xf32>, vector<28x72xf32>, vector<224x72xf32> -> vector<224x72xf32>
    %9 = vector.extract_strided_slice %8 {offsets = [8, 0], sizes = [192, 72], strides = [1, 1]} : vector<224x72xf32> to vector<192x72xf32>
    %10 = arith.addf %5, %9 : vector<192x72xf32>
    %c0_10 = arith.constant 0 : index
    %c2 = arith.constant 2 : index
    %c0_11 = arith.constant 0 : index
    %c0_12 = arith.constant 0 : index
    %11 = vector.load %arg2[%c0_10, %c2, %c0_11, %c0_12] : memref<2x5x28x72xf32, #tpu.memory_space<vmem>>, vector<1x1x28x72xf32>
    %12 = vector.shape_cast %11 : vector<1x1x28x72xf32> to vector<28x72xf32>
    %cst_13 = arith.constant dense<0.000000e+00> : vector<224x72xf32>
    %13 = tpu.matmul %1, %12, %cst_13 {dimension_numbers = #tpu.dot_dimension_numbers<[1], [0], [0], [1], [0, 0, 1, 1], [], []>} : vector<224x28xf32>, vector<28x72xf32>, vector<224x72xf32> -> vector<224x72xf32>
    %14 = vector.extract_strided_slice %13 {offsets = [16, 0], sizes = [192, 72], strides = [1, 1]} : vector<224x72xf32> to vector<192x72xf32>
    %15 = arith.addf %10, %14 : vector<192x72xf32>
    %c0_14 = arith.constant 0 : index
    %c3 = arith.constant 3 : index
    %c0_15 = arith.constant 0 : index
    %c0_16 = arith.constant 0 : index
    %16 = vector.load %arg2[%c0_14, %c3, %c0_15, %c0_16] : memref<2x5x28x72xf32, #tpu.memory_space<vmem>>, vector<1x1x28x72xf32>
    %17 = vector.shape_cast %16 : vector<1x1x28x72xf32> to vector<28x72xf32>
    %cst_17 = arith.constant dense<0.000000e+00> : vector<224x72xf32>
    %18 = tpu.matmul %1, %17, %cst_17 {dimension_numbers = #tpu.dot_dimension_numbers<[1], [0], [0], [1], [0, 0, 1, 1], [], []>} : vector<224x28xf32>, vector<28x72xf32>, vector<224x72xf32> -> vector<224x72xf32>
    %19 = vector.extract_strided_slice %18 {offsets = [24, 0], sizes = [192, 72], strides = [1, 1]} : vector<224x72xf32> to vector<192x72xf32>
    %20 = arith.addf %15, %19 : vector<192x72xf32>
    %c0_18 = arith.constant 0 : index
    %c4 = arith.constant 4 : index
    %c0_19 = arith.constant 0 : index
    %c0_20 = arith.constant 0 : index
    %21 = vector.load %arg2[%c0_18, %c4, %c0_19, %c0_20] : memref<2x5x28x72xf32, #tpu.memory_space<vmem>>, vector<1x1x28x72xf32>
    %22 = vector.shape_cast %21 : vector<1x1x28x72xf32> to vector<28x72xf32>
    %cst_21 = arith.constant dense<0.000000e+00> : vector<224x72xf32>
    %23 = tpu.matmul %1, %22, %cst_21 {dimension_numbers = #tpu.dot_dimension_numbers<[1], [0], [0], [1], [0, 0, 1, 1], [], []>} : vector<224x28xf32>, vector<28x72xf32>, vector<224x72xf32> -> vector<224x72xf32>
    %24 = vector.extract_strided_slice %23 {offsets = [32, 0], sizes = [192, 72], strides = [1, 1]} : vector<224x72xf32> to vector<192x72xf32>
    %25 = arith.addf %20, %24 : vector<192x72xf32>
    %c1_22 = arith.constant 1 : index
    %c0_23 = arith.constant 0 : index
    %c0_24 = arith.constant 0 : index
    %c0_25 = arith.constant 0 : index
    %26 = vector.load %arg2[%c1_22, %c0_23, %c0_24, %c0_25] : memref<2x5x28x72xf32, #tpu.memory_space<vmem>>, vector<1x1x28x72xf32>
    %27 = vector.shape_cast %26 : vector<1x1x28x72xf32> to vector<28x72xf32>
    %cst_26 = arith.constant dense<0.000000e+00> : vector<224x72xf32>
    %28 = tpu.matmul %1, %27, %cst_26 {dimension_numbers = #tpu.dot_dimension_numbers<[1], [0], [0], [1], [0, 0, 1, 1], [], []>} : vector<224x28xf32>, vector<28x72xf32>, vector<224x72xf32> -> vector<224x72xf32>
    %29 = vector.extract_strided_slice %28 {offsets = [0, 0], sizes = [192, 72], strides = [1, 1]} : vector<224x72xf32> to vector<192x72xf32>
    %c1_27 = arith.constant 1 : index
    %c1_28 = arith.constant 1 : index
    %c0_29 = arith.constant 0 : index
    %c0_30 = arith.constant 0 : index
    %30 = vector.load %arg2[%c1_27, %c1_28, %c0_29, %c0_30] : memref<2x5x28x72xf32, #tpu.memory_space<vmem>>, vector<1x1x28x72xf32>
    %31 = vector.shape_cast %30 : vector<1x1x28x72xf32> to vector<28x72xf32>
    %cst_31 = arith.constant dense<0.000000e+00> : vector<224x72xf32>
    %32 = tpu.matmul %1, %31, %cst_31 {dimension_numbers = #tpu.dot_dimension_numbers<[1], [0], [0], [1], [0, 0, 1, 1], [], []>} : vector<224x28xf32>, vector<28x72xf32>, vector<224x72xf32> -> vector<224x72xf32>
    %33 = vector.extract_strided_slice %32 {offsets = [8, 0], sizes = [192, 72], strides = [1, 1]} : vector<224x72xf32> to vector<192x72xf32>
    %34 = arith.addf %29, %33 : vector<192x72xf32>
    %c1_32 = arith.constant 1 : index
    %c2_33 = arith.constant 2 : index
    %c0_34 = arith.constant 0 : index
    %c0_35 = arith.constant 0 : index
    %35 = vector.load %arg2[%c1_32, %c2_33, %c0_34, %c0_35] : memref<2x5x28x72xf32, #tpu.memory_space<vmem>>, vector<1x1x28x72xf32>
    %36 = vector.shape_cast %35 : vector<1x1x28x72xf32> to vector<28x72xf32>
    %cst_36 = arith.constant dense<0.000000e+00> : vector<224x72xf32>
    %37 = tpu.matmul %1, %36, %cst_36 {dimension_numbers = #tpu.dot_dimension_numbers<[1], [0], [0], [1], [0, 0, 1, 1], [], []>} : vector<224x28xf32>, vector<28x72xf32>, vector<224x72xf32> -> vector<224x72xf32>
    %38 = vector.extract_strided_slice %37 {offsets = [16, 0], sizes = [192, 72], strides = [1, 1]} : vector<224x72xf32> to vector<192x72xf32>
    %39 = arith.addf %34, %38 : vector<192x72xf32>
    %c1_37 = arith.constant 1 : index
    %c3_38 = arith.constant 3 : index
    %c0_39 = arith.constant 0 : index
    %c0_40 = arith.constant 0 : index
    %40 = vector.load %arg2[%c1_37, %c3_38, %c0_39, %c0_40] : memref<2x5x28x72xf32, #tpu.memory_space<vmem>>, vector<1x1x28x72xf32>
    %41 = vector.shape_cast %40 : vector<1x1x28x72xf32> to vector<28x72xf32>
    %cst_41 = arith.constant dense<0.000000e+00> : vector<224x72xf32>
    %42 = tpu.matmul %1, %41, %cst_41 {dimension_numbers = #tpu.dot_dimension_numbers<[1], [0], [0], [1], [0, 0, 1, 1], [], []>} : vector<224x28xf32>, vector<28x72xf32>, vector<224x72xf32> -> vector<224x72xf32>
    %43 = vector.extract_strided_slice %42 {offsets = [24, 0], sizes = [192, 72], strides = [1, 1]} : vector<224x72xf32> to vector<192x72xf32>
    %44 = arith.addf %39, %43 : vector<192x72xf32>
    %c1_42 = arith.constant 1 : index
    %c4_43 = arith.constant 4 : index
    %c0_44 = arith.constant 0 : index
    %c0_45 = arith.constant 0 : index
    %45 = vector.load %arg2[%c1_42, %c4_43, %c0_44, %c0_45] : memref<2x5x28x72xf32, #tpu.memory_space<vmem>>, vector<1x1x28x72xf32>
    %46 = vector.shape_cast %45 : vector<1x1x28x72xf32> to vector<28x72xf32>
    %cst_46 = arith.constant dense<0.000000e+00> : vector<224x72xf32>
    %47 = tpu.matmul %1, %46, %cst_46 {dimension_numbers = #tpu.dot_dimension_numbers<[1], [0], [0], [1], [0, 0, 1, 1], [], []>} : vector<224x28xf32>, vector<28x72xf32>, vector<224x72xf32> -> vector<224x72xf32>
    %48 = vector.extract_strided_slice %47 {offsets = [32, 0], sizes = [192, 72], strides = [1, 1]} : vector<224x72xf32> to vector<192x72xf32>
    %49 = arith.addf %44, %48 : vector<192x72xf32>
    %50 = arith.maximumf %25, %49 : vector<192x72xf32>
    %51 = vector.shape_cast %50 : vector<192x72xf32> to vector<12x2x8x72xf32>
    %52 = vector.extract_strided_slice %51 {offsets = [0, 0, 0, 0], sizes = [12, 1, 8, 72], strides = [1, 1, 1, 1]} : vector<12x2x8x72xf32> to vector<12x1x8x72xf32>
    %53 = vector.shape_cast %52 : vector<12x1x8x72xf32> to vector<12x8x72xf32>
    %54 = vector.extract_strided_slice %51 {offsets = [0, 1, 0, 0], sizes = [12, 1, 8, 72], strides = [1, 1, 1, 1]} : vector<12x2x8x72xf32> to vector<12x1x8x72xf32>
    %55 = vector.shape_cast %54 : vector<12x1x8x72xf32> to vector<12x8x72xf32>
    %56 = arith.maximumf %53, %55 : vector<12x8x72xf32>
    %c0_47 = arith.constant 0 : index
    %c0_48 = arith.constant 0 : index
    %57 = vector.load %arg3[%c0_47, %c0_48] : memref<1x72xf32, #tpu.memory_space<vmem>>, vector<1x72xf32>
    %58 = vector.shape_cast %57 : vector<1x72xf32> to vector<1x1x72xf32>
    %59 = vector.broadcast %58 : vector<1x1x72xf32> to vector<12x8x72xf32>
    %60 = arith.addf %56, %59 : vector<12x8x72xf32>
    %cst_49 = arith.constant 0.000000e+00 : f32
    %61 = vector.broadcast %cst_49 : f32 to vector<12x8x72xf32>
    %62 = arith.subf %61, %60 : vector<12x8x72xf32>
    %63 = math.exp %62 : vector<12x8x72xf32>
    %cst_50 = arith.constant 1.000000e+00 : f32
    %64 = vector.broadcast %cst_50 : f32 to vector<12x8x72xf32>
    %65 = arith.addf %64, %63 : vector<12x8x72xf32>
    %cst_51 = arith.constant 1.000000e+00 : f32
    %66 = vector.broadcast %cst_51 : f32 to vector<12x8x72xf32>
    %67 = arith.divf %66, %65 : vector<12x8x72xf32>
    %68 = vector.shape_cast %67 : vector<12x8x72xf32> to vector<96x72xf32>
    %c0_52 = arith.constant 0 : index
    %c0_53 = arith.constant 0 : index
    %c0_54 = arith.constant 0 : index
    %c0_55 = arith.constant 0 : index
    %69 = vector.load %arg4[%c0_52, %c0_53, %c0_54, %c0_55] : memref<2x5x72x64xf32, #tpu.memory_space<vmem>>, vector<1x1x72x64xf32>
    %70 = vector.shape_cast %69 : vector<1x1x72x64xf32> to vector<72x64xf32>
    %cst_56 = arith.constant dense<0.000000e+00> : vector<96x64xf32>
    %71 = tpu.matmul %68, %70, %cst_56 {dimension_numbers = #tpu.dot_dimension_numbers<[1], [0], [0], [1], [0, 0, 1, 1], [], []>} : vector<96x72xf32>, vector<72x64xf32>, vector<96x64xf32> -> vector<96x64xf32>
    %72 = vector.extract_strided_slice %71 {offsets = [0, 0], sizes = [64, 64], strides = [1, 1]} : vector<96x64xf32> to vector<64x64xf32>
    %c0_57 = arith.constant 0 : index
    %c1_58 = arith.constant 1 : index
    %c0_59 = arith.constant 0 : index
    %c0_60 = arith.constant 0 : index
    %73 = vector.load %arg4[%c0_57, %c1_58, %c0_59, %c0_60] : memref<2x5x72x64xf32, #tpu.memory_space<vmem>>, vector<1x1x72x64xf32>
    %74 = vector.shape_cast %73 : vector<1x1x72x64xf32> to vector<72x64xf32>
    %cst_61 = arith.constant dense<0.000000e+00> : vector<96x64xf32>
    %75 = tpu.matmul %68, %74, %cst_61 {dimension_numbers = #tpu.dot_dimension_numbers<[1], [0], [0], [1], [0, 0, 1, 1], [], []>} : vector<96x72xf32>, vector<72x64xf32>, vector<96x64xf32> -> vector<96x64xf32>
    %76 = vector.extract_strided_slice %75 {offsets = [8, 0], sizes = [64, 64], strides = [1, 1]} : vector<96x64xf32> to vector<64x64xf32>
    %77 = arith.addf %72, %76 : vector<64x64xf32>
    %c0_62 = arith.constant 0 : index
    %c2_63 = arith.constant 2 : index
    %c0_64 = arith.constant 0 : index
    %c0_65 = arith.constant 0 : index
    %78 = vector.load %arg4[%c0_62, %c2_63, %c0_64, %c0_65] : memref<2x5x72x64xf32, #tpu.memory_space<vmem>>, vector<1x1x72x64xf32>
    %79 = vector.shape_cast %78 : vector<1x1x72x64xf32> to vector<72x64xf32>
    %cst_66 = arith.constant dense<0.000000e+00> : vector<96x64xf32>
    %80 = tpu.matmul %68, %79, %cst_66 {dimension_numbers = #tpu.dot_dimension_numbers<[1], [0], [0], [1], [0, 0, 1, 1], [], []>} : vector<96x72xf32>, vector<72x64xf32>, vector<96x64xf32> -> vector<96x64xf32>
    %81 = vector.extract_strided_slice %80 {offsets = [16, 0], sizes = [64, 64], strides = [1, 1]} : vector<96x64xf32> to vector<64x64xf32>
    %82 = arith.addf %77, %81 : vector<64x64xf32>
    %c0_67 = arith.constant 0 : index
    %c3_68 = arith.constant 3 : index
    %c0_69 = arith.constant 0 : index
    %c0_70 = arith.constant 0 : index
    %83 = vector.load %arg4[%c0_67, %c3_68, %c0_69, %c0_70] : memref<2x5x72x64xf32, #tpu.memory_space<vmem>>, vector<1x1x72x64xf32>
    %84 = vector.shape_cast %83 : vector<1x1x72x64xf32> to vector<72x64xf32>
    %cst_71 = arith.constant dense<0.000000e+00> : vector<96x64xf32>
    %85 = tpu.matmul %68, %84, %cst_71 {dimension_numbers = #tpu.dot_dimension_numbers<[1], [0], [0], [1], [0, 0, 1, 1], [], []>} : vector<96x72xf32>, vector<72x64xf32>, vector<96x64xf32> -> vector<96x64xf32>
    %86 = vector.extract_strided_slice %85 {offsets = [24, 0], sizes = [64, 64], strides = [1, 1]} : vector<96x64xf32> to vector<64x64xf32>
    %87 = arith.addf %82, %86 : vector<64x64xf32>
    %c0_72 = arith.constant 0 : index
    %c4_73 = arith.constant 4 : index
    %c0_74 = arith.constant 0 : index
    %c0_75 = arith.constant 0 : index
    %88 = vector.load %arg4[%c0_72, %c4_73, %c0_74, %c0_75] : memref<2x5x72x64xf32, #tpu.memory_space<vmem>>, vector<1x1x72x64xf32>
    %89 = vector.shape_cast %88 : vector<1x1x72x64xf32> to vector<72x64xf32>
    %cst_76 = arith.constant dense<0.000000e+00> : vector<96x64xf32>
    %90 = tpu.matmul %68, %89, %cst_76 {dimension_numbers = #tpu.dot_dimension_numbers<[1], [0], [0], [1], [0, 0, 1, 1], [], []>} : vector<96x72xf32>, vector<72x64xf32>, vector<96x64xf32> -> vector<96x64xf32>
    %91 = vector.extract_strided_slice %90 {offsets = [32, 0], sizes = [64, 64], strides = [1, 1]} : vector<96x64xf32> to vector<64x64xf32>
    %92 = arith.addf %87, %91 : vector<64x64xf32>
    %c1_77 = arith.constant 1 : index
    %c0_78 = arith.constant 0 : index
    %c0_79 = arith.constant 0 : index
    %c0_80 = arith.constant 0 : index
    %93 = vector.load %arg4[%c1_77, %c0_78, %c0_79, %c0_80] : memref<2x5x72x64xf32, #tpu.memory_space<vmem>>, vector<1x1x72x64xf32>
    %94 = vector.shape_cast %93 : vector<1x1x72x64xf32> to vector<72x64xf32>
    %cst_81 = arith.constant dense<0.000000e+00> : vector<96x64xf32>
    %95 = tpu.matmul %68, %94, %cst_81 {dimension_numbers = #tpu.dot_dimension_numbers<[1], [0], [0], [1], [0, 0, 1, 1], [], []>} : vector<96x72xf32>, vector<72x64xf32>, vector<96x64xf32> -> vector<96x64xf32>
    %96 = vector.extract_strided_slice %95 {offsets = [0, 0], sizes = [64, 64], strides = [1, 1]} : vector<96x64xf32> to vector<64x64xf32>
    %c1_82 = arith.constant 1 : index
    %c1_83 = arith.constant 1 : index
    %c0_84 = arith.constant 0 : index
    %c0_85 = arith.constant 0 : index
    %97 = vector.load %arg4[%c1_82, %c1_83, %c0_84, %c0_85] : memref<2x5x72x64xf32, #tpu.memory_space<vmem>>, vector<1x1x72x64xf32>
    %98 = vector.shape_cast %97 : vector<1x1x72x64xf32> to vector<72x64xf32>
    %cst_86 = arith.constant dense<0.000000e+00> : vector<96x64xf32>
    %99 = tpu.matmul %68, %98, %cst_86 {dimension_numbers = #tpu.dot_dimension_numbers<[1], [0], [0], [1], [0, 0, 1, 1], [], []>} : vector<96x72xf32>, vector<72x64xf32>, vector<96x64xf32> -> vector<96x64xf32>
    %100 = vector.extract_strided_slice %99 {offsets = [8, 0], sizes = [64, 64], strides = [1, 1]} : vector<96x64xf32> to vector<64x64xf32>
    %101 = arith.addf %96, %100 : vector<64x64xf32>
    %c1_87 = arith.constant 1 : index
    %c2_88 = arith.constant 2 : index
    %c0_89 = arith.constant 0 : index
    %c0_90 = arith.constant 0 : index
    %102 = vector.load %arg4[%c1_87, %c2_88, %c0_89, %c0_90] : memref<2x5x72x64xf32, #tpu.memory_space<vmem>>, vector<1x1x72x64xf32>
    %103 = vector.shape_cast %102 : vector<1x1x72x64xf32> to vector<72x64xf32>
    %cst_91 = arith.constant dense<0.000000e+00> : vector<96x64xf32>
    %104 = tpu.matmul %68, %103, %cst_91 {dimension_numbers = #tpu.dot_dimension_numbers<[1], [0], [0], [1], [0, 0, 1, 1], [], []>} : vector<96x72xf32>, vector<72x64xf32>, vector<96x64xf32> -> vector<96x64xf32>
    %105 = vector.extract_strided_slice %104 {offsets = [16, 0], sizes = [64, 64], strides = [1, 1]} : vector<96x64xf32> to vector<64x64xf32>
    %106 = arith.addf %101, %105 : vector<64x64xf32>
    %c1_92 = arith.constant 1 : index
    %c3_93 = arith.constant 3 : index
    %c0_94 = arith.constant 0 : index
    %c0_95 = arith.constant 0 : index
    %107 = vector.load %arg4[%c1_92, %c3_93, %c0_94, %c0_95] : memref<2x5x72x64xf32, #tpu.memory_space<vmem>>, vector<1x1x72x64xf32>
    %108 = vector.shape_cast %107 : vector<1x1x72x64xf32> to vector<72x64xf32>
    %cst_96 = arith.constant dense<0.000000e+00> : vector<96x64xf32>
    %109 = tpu.matmul %68, %108, %cst_96 {dimension_numbers = #tpu.dot_dimension_numbers<[1], [0], [0], [1], [0, 0, 1, 1], [], []>} : vector<96x72xf32>, vector<72x64xf32>, vector<96x64xf32> -> vector<96x64xf32>
    %110 = vector.extract_strided_slice %109 {offsets = [24, 0], sizes = [64, 64], strides = [1, 1]} : vector<96x64xf32> to vector<64x64xf32>
    %111 = arith.addf %106, %110 : vector<64x64xf32>
    %c1_97 = arith.constant 1 : index
    %c4_98 = arith.constant 4 : index
    %c0_99 = arith.constant 0 : index
    %c0_100 = arith.constant 0 : index
    %112 = vector.load %arg4[%c1_97, %c4_98, %c0_99, %c0_100] : memref<2x5x72x64xf32, #tpu.memory_space<vmem>>, vector<1x1x72x64xf32>
    %113 = vector.shape_cast %112 : vector<1x1x72x64xf32> to vector<72x64xf32>
    %cst_101 = arith.constant dense<0.000000e+00> : vector<96x64xf32>
    %114 = tpu.matmul %68, %113, %cst_101 {dimension_numbers = #tpu.dot_dimension_numbers<[1], [0], [0], [1], [0, 0, 1, 1], [], []>} : vector<96x72xf32>, vector<72x64xf32>, vector<96x64xf32> -> vector<96x64xf32>
    %115 = vector.extract_strided_slice %114 {offsets = [32, 0], sizes = [64, 64], strides = [1, 1]} : vector<96x64xf32> to vector<64x64xf32>
    %116 = arith.addf %111, %115 : vector<64x64xf32>
    %117 = arith.maximumf %92, %116 : vector<64x64xf32>
    %118 = vector.shape_cast %117 : vector<64x64xf32> to vector<4x2x8x64xf32>
    %119 = vector.extract_strided_slice %118 {offsets = [0, 0, 0, 0], sizes = [4, 1, 8, 64], strides = [1, 1, 1, 1]} : vector<4x2x8x64xf32> to vector<4x1x8x64xf32>
    %120 = vector.shape_cast %119 : vector<4x1x8x64xf32> to vector<4x8x64xf32>
    %121 = vector.extract_strided_slice %118 {offsets = [0, 1, 0, 0], sizes = [4, 1, 8, 64], strides = [1, 1, 1, 1]} : vector<4x2x8x64xf32> to vector<4x1x8x64xf32>
    %122 = vector.shape_cast %121 : vector<4x1x8x64xf32> to vector<4x8x64xf32>
    %123 = arith.maximumf %120, %122 : vector<4x8x64xf32>
    %c0_102 = arith.constant 0 : index
    %c0_103 = arith.constant 0 : index
    %124 = vector.load %arg5[%c0_102, %c0_103] : memref<1x64xf32, #tpu.memory_space<vmem>>, vector<1x64xf32>
    %125 = vector.shape_cast %124 : vector<1x64xf32> to vector<1x1x64xf32>
    %126 = vector.broadcast %125 : vector<1x1x64xf32> to vector<4x8x64xf32>
    %127 = arith.addf %123, %126 : vector<4x8x64xf32>
    %cst_104 = arith.constant 0.000000e+00 : f32
    %128 = vector.broadcast %cst_104 : f32 to vector<4x8x64xf32>
    %129 = arith.subf %128, %127 : vector<4x8x64xf32>
    %130 = math.exp %129 : vector<4x8x64xf32>
    %cst_105 = arith.constant 1.000000e+00 : f32
    %131 = vector.broadcast %cst_105 : f32 to vector<4x8x64xf32>
    %132 = arith.addf %131, %130 : vector<4x8x64xf32>
    %cst_106 = arith.constant 1.000000e+00 : f32
    %133 = vector.broadcast %cst_106 : f32 to vector<4x8x64xf32>
    %134 = arith.divf %133, %132 : vector<4x8x64xf32>
    %135 = vector.extract_strided_slice %134 {offsets = [0, 0, 0], sizes = [1, 8, 64], strides = [1, 1, 1]} : vector<4x8x64xf32> to vector<1x8x64xf32>
    %136 = vector.shape_cast %135 : vector<1x8x64xf32> to vector<8x64xf32>
    %c0_107 = arith.constant 0 : index
    %c0_108 = arith.constant 0 : index
    %c0_109 = arith.constant 0 : index
    %137 = vector.load %arg6[%c0_107, %c0_108, %c0_109] : memref<4x64x128xf32, #tpu.memory_space<vmem>>, vector<1x64x128xf32>
    %138 = vector.shape_cast %137 : vector<1x64x128xf32> to vector<64x128xf32>
    %cst_110 = arith.constant dense<0.000000e+00> : vector<8x128xf32>
    %139 = tpu.matmul %136, %138, %cst_110 {dimension_numbers = #tpu.dot_dimension_numbers<[1], [0], [0], [1], [0, 0, 1, 1], [], []>} : vector<8x64xf32>, vector<64x128xf32>, vector<8x128xf32> -> vector<8x128xf32>
    %140 = vector.extract_strided_slice %134 {offsets = [1, 0, 0], sizes = [1, 8, 64], strides = [1, 1, 1]} : vector<4x8x64xf32> to vector<1x8x64xf32>
    %141 = vector.shape_cast %140 : vector<1x8x64xf32> to vector<8x64xf32>
    %c1_111 = arith.constant 1 : index
    %c0_112 = arith.constant 0 : index
    %c0_113 = arith.constant 0 : index
    %142 = vector.load %arg6[%c1_111, %c0_112, %c0_113] : memref<4x64x128xf32, #tpu.memory_space<vmem>>, vector<1x64x128xf32>
    %143 = vector.shape_cast %142 : vector<1x64x128xf32> to vector<64x128xf32>
    %cst_114 = arith.constant dense<0.000000e+00> : vector<8x128xf32>
    %144 = tpu.matmul %141, %143, %cst_114 {dimension_numbers = #tpu.dot_dimension_numbers<[1], [0], [0], [1], [0, 0, 1, 1], [], []>} : vector<8x64xf32>, vector<64x128xf32>, vector<8x128xf32> -> vector<8x128xf32>
    %145 = arith.addf %139, %144 : vector<8x128xf32>
    %146 = vector.extract_strided_slice %134 {offsets = [2, 0, 0], sizes = [1, 8, 64], strides = [1, 1, 1]} : vector<4x8x64xf32> to vector<1x8x64xf32>
    %147 = vector.shape_cast %146 : vector<1x8x64xf32> to vector<8x64xf32>
    %c2_115 = arith.constant 2 : index
    %c0_116 = arith.constant 0 : index
    %c0_117 = arith.constant 0 : index
    %148 = vector.load %arg6[%c2_115, %c0_116, %c0_117] : memref<4x64x128xf32, #tpu.memory_space<vmem>>, vector<1x64x128xf32>
    %149 = vector.shape_cast %148 : vector<1x64x128xf32> to vector<64x128xf32>
    %cst_118 = arith.constant dense<0.000000e+00> : vector<8x128xf32>
    %150 = tpu.matmul %147, %149, %cst_118 {dimension_numbers = #tpu.dot_dimension_numbers<[1], [0], [0], [1], [0, 0, 1, 1], [], []>} : vector<8x64xf32>, vector<64x128xf32>, vector<8x128xf32> -> vector<8x128xf32>
    %151 = arith.addf %145, %150 : vector<8x128xf32>
    %152 = vector.extract_strided_slice %134 {offsets = [3, 0, 0], sizes = [1, 8, 64], strides = [1, 1, 1]} : vector<4x8x64xf32> to vector<1x8x64xf32>
    %153 = vector.shape_cast %152 : vector<1x8x64xf32> to vector<8x64xf32>
    %c3_119 = arith.constant 3 : index
    %c0_120 = arith.constant 0 : index
    %c0_121 = arith.constant 0 : index
    %154 = vector.load %arg6[%c3_119, %c0_120, %c0_121] : memref<4x64x128xf32, #tpu.memory_space<vmem>>, vector<1x64x128xf32>
    %155 = vector.shape_cast %154 : vector<1x64x128xf32> to vector<64x128xf32>
    %cst_122 = arith.constant dense<0.000000e+00> : vector<8x128xf32>
    %156 = tpu.matmul %153, %155, %cst_122 {dimension_numbers = #tpu.dot_dimension_numbers<[1], [0], [0], [1], [0, 0, 1, 1], [], []>} : vector<8x64xf32>, vector<64x128xf32>, vector<8x128xf32> -> vector<8x128xf32>
    %157 = arith.addf %151, %156 : vector<8x128xf32>
    %c0_123 = arith.constant 0 : index
    %c0_124 = arith.constant 0 : index
    %158 = vector.load %arg7[%c0_123, %c0_124] : memref<1x128xf32, #tpu.memory_space<vmem>>, vector<1x128xf32>
    %159 = vector.broadcast %158 : vector<1x128xf32> to vector<8x128xf32>
    %160 = arith.addf %157, %159 : vector<8x128xf32>
    %cst_125 = arith.constant 0.000000e+00 : f32
    %161 = vector.broadcast %cst_125 : f32 to vector<8x128xf32>
    %162 = arith.subf %161, %160 : vector<8x128xf32>
    %163 = math.exp %162 : vector<8x128xf32>
    %cst_126 = arith.constant 1.000000e+00 : f32
    %164 = vector.broadcast %cst_126 : f32 to vector<8x128xf32>
    %165 = arith.addf %164, %163 : vector<8x128xf32>
    %cst_127 = arith.constant 1.000000e+00 : f32
    %166 = vector.broadcast %cst_127 : f32 to vector<8x128xf32>
    %167 = arith.divf %166, %165 : vector<8x128xf32>
    %c0_128 = arith.constant 0 : index
    %c0_129 = arith.constant 0 : index
    %168 = vector.load %arg8[%c0_128, %c0_129] : memref<128x128xf32, #tpu.memory_space<vmem>>, vector<128x128xf32>
    %cst_130 = arith.constant dense<0.000000e+00> : vector<8x128xf32>
    %169 = tpu.matmul %167, %168, %cst_130 {dimension_numbers = #tpu.dot_dimension_numbers<[1], [0], [0], [1], [0, 0, 1, 1], [], []>} : vector<8x128xf32>, vector<128x128xf32>, vector<8x128xf32> -> vector<8x128xf32>
    %c0_131 = arith.constant 0 : index
    %c0_132 = arith.constant 0 : index
    %170 = vector.load %arg9[%c0_131, %c0_132] : memref<1x128xf32, #tpu.memory_space<vmem>>, vector<1x128xf32>
    %171 = vector.broadcast %170 : vector<1x128xf32> to vector<8x128xf32>
    %172 = arith.addf %169, %171 : vector<8x128xf32>
    %cst_133 = arith.constant 0.000000e+00 : f32
    %173 = vector.broadcast %cst_133 : f32 to vector<8x128xf32>
    %174 = arith.subf %173, %172 : vector<8x128xf32>
    %175 = math.exp %174 : vector<8x128xf32>
    %cst_134 = arith.constant 1.000000e+00 : f32
    %176 = vector.broadcast %cst_134 : f32 to vector<8x128xf32>
    %177 = arith.addf %176, %175 : vector<8x128xf32>
    %cst_135 = arith.constant 1.000000e+00 : f32
    %178 = vector.broadcast %cst_135 : f32 to vector<8x128xf32>
    %179 = arith.divf %178, %177 : vector<8x128xf32>
    %c0_136 = arith.constant 0 : index
    %c0_137 = arith.constant 0 : index
    %180 = vector.load %arg10[%c0_136, %c0_137] : memref<128x128xf32, #tpu.memory_space<vmem>>, vector<128x128xf32>
    %cst_138 = arith.constant dense<0.000000e+00> : vector<8x128xf32>
    %181 = tpu.matmul %179, %180, %cst_138 {dimension_numbers = #tpu.dot_dimension_numbers<[1], [0], [0], [1], [0, 0, 1, 1], [], []>} : vector<8x128xf32>, vector<128x128xf32>, vector<8x128xf32> -> vector<8x128xf32>
    %c0_139 = arith.constant 0 : index
    %c0_140 = arith.constant 0 : index
    %182 = vector.load %arg11[%c0_139, %c0_140] : memref<1x128xf32, #tpu.memory_space<vmem>>, vector<1x128xf32>
    %183 = vector.broadcast %182 : vector<1x128xf32> to vector<8x128xf32>
    %184 = arith.addf %181, %183 : vector<8x128xf32>
    %cst_141 = arith.constant 0.000000e+00 : f32
    %185 = vector.broadcast %cst_141 : f32 to vector<8x128xf32>
    %186 = arith.subf %185, %184 : vector<8x128xf32>
    %187 = math.exp %186 : vector<8x128xf32>
    %cst_142 = arith.constant 1.000000e+00 : f32
    %188 = vector.broadcast %cst_142 : f32 to vector<8x128xf32>
    %189 = arith.addf %188, %187 : vector<8x128xf32>
    %cst_143 = arith.constant 1.000000e+00 : f32
    %190 = vector.broadcast %cst_143 : f32 to vector<8x128xf32>
    %191 = arith.divf %190, %189 : vector<8x128xf32>
    %c0_144 = arith.constant 0 : index
    %c0_145 = arith.constant 0 : index
    %192 = vector.load %arg12[%c0_144, %c0_145] : memref<8x128xf32, #tpu.memory_space<vmem>>, vector<8x128xf32>
    tpu.vector_store %arg12[%c0_144, %c0_145], %191 {strides = array<i32>} : memref<8x128xf32, #tpu.memory_space<vmem>>, vector<8x128xf32>,
    return
  }
  func.func @transform_0(%arg0: i32) -> (i32, i32, i32) {
    %c0_i32 = arith.constant 0 : i32
    %c0_i32_0 = arith.constant 0 : i32
    %c0_i32_1 = arith.constant 0 : i32
    return %arg0, %c0_i32, %c0_i32_0 : i32, i32, i32
  }
  func.func @transform_1(%arg0: i32) -> (i32, i32, i32, i32) {
    %c0_i32 = arith.constant 0 : i32
    %c0_i32_0 = arith.constant 0 : i32
    %c0_i32_1 = arith.constant 0 : i32
    %c0_i32_2 = arith.constant 0 : i32
    %c0_i32_3 = arith.constant 0 : i32
    return %c0_i32, %c0_i32_0, %c0_i32_1, %c0_i32_2 : i32, i32, i32, i32
  }
  func.func @transform_2(%arg0: i32) -> (i32, i32) {
    %c0_i32 = arith.constant 0 : i32
    %c0_i32_0 = arith.constant 0 : i32
    %c0_i32_1 = arith.constant 0 : i32
    return %c0_i32, %c0_i32_0 : i32, i32
  }
  func.func @transform_3(%arg0: i32) -> (i32, i32, i32, i32) {
    %c0_i32 = arith.constant 0 : i32
    %c0_i32_0 = arith.constant 0 : i32
    %c0_i32_1 = arith.constant 0 : i32
    %c0_i32_2 = arith.constant 0 : i32
    %c0_i32_3 = arith.constant 0 : i32
    return %c0_i32, %c0_i32_0, %c0_i32_1, %c0_i32_2 : i32, i32, i32, i32
  }
  func.func @transform_4(%arg0: i32) -> (i32, i32) {
    %c0_i32 = arith.constant 0 : i32
    %c0_i32_0 = arith.constant 0 : i32
    %c0_i32_1 = arith.constant 0 : i32
    return %c0_i32, %c0_i32_0 : i32, i32
  }
  func.func @transform_5(%arg0: i32) -> (i32, i32, i32) {
    %c0_i32 = arith.constant 0 : i32
    %c0_i32_0 = arith.constant 0 : i32
    %c0_i32_1 = arith.constant 0 : i32
    %c0_i32_2 = arith.constant 0 : i32
    return %c0_i32, %c0_i32_0, %c0_i32_1 : i32, i32, i32
  }
  func.func @transform_6(%arg0: i32) -> (i32, i32) {
    %c0_i32 = arith.constant 0 : i32
    %c0_i32_0 = arith.constant 0 : i32
    %c0_i32_1 = arith.constant 0 : i32
    return %c0_i32, %c0_i32_0 : i32, i32
  }
  func.func @transform_7(%arg0: i32) -> (i32, i32) {
    %c0_i32 = arith.constant 0 : i32
    %c0_i32_0 = arith.constant 0 : i32
    %c0_i32_1 = arith.constant 0 : i32
    return %c0_i32, %c0_i32_0 : i32, i32
  }
  func.func @transform_8(%arg0: i32) -> (i32, i32) {
    %c0_i32 = arith.constant 0 : i32
    %c0_i32_0 = arith.constant 0 : i32
    %c0_i32_1 = arith.constant 0 : i32
    return %c0_i32, %c0_i32_0 : i32, i32
  }
  func.func @transform_9(%arg0: i32) -> (i32, i32) {
    %c0_i32 = arith.constant 0 : i32
    %c0_i32_0 = arith.constant 0 : i32
    %c0_i32_1 = arith.constant 0 : i32
    return %c0_i32, %c0_i32_0 : i32, i32
  }
  func.func @transform_10(%arg0: i32) -> (i32, i32) {
    %c0_i32 = arith.constant 0 : i32
    %c0_i32_0 = arith.constant 0 : i32
    %c0_i32_1 = arith.constant 0 : i32
    return %c0_i32, %c0_i32_0 : i32, i32
  }
  func.func @transform_11(%arg0: i32) -> (i32, i32) {
    %c0_i32 = arith.constant 0 : i32
    %c0_i32_0 = arith.constant 0 : i32
    return %arg0, %c0_i32 : i32, i32
  }
}

</mosaic_0001>

<bundles_post_ra>
// kernel: lenet_forward.1
= control target key start
LH: loop header
LB: loop body
LE: loop exit
PB: predicated region body
PF: predicated region fallthrough
CT: control target
= control target key end

     0   :  { %vm155_vm0 = vcmask 1043456   ;;  %vm7166_vm1 = vmmov 1   ;;  %vm70_vm3 = vcmask 228352   ;;  %vm2569_vm4 = vcmask 588800   ;;  %s9341_s1 = inlined_call_operand.vmem [shape: f32[2,5,28,72], index: 1, kind: input, shape index: {}]   ;;  %s9342_s0 = inlined_call_operand.vmem [shape: f32[1,224,28], index: 0, kind: input, shape index: {}]   ;;  %s9343_s3 = inlined_call_operand.vmem [shape: f32[2,5,72,64], index: 3, kind: input, shape index: {}]   ;;  %s9344_s2 = inlined_call_operand.vmem [shape: f32[1,72], index: 2, kind: input, shape index: {}]   ;;  %s9345_s5 = inlined_call_operand.vmem [shape: f32[4,64,128], index: 5, kind: input, shape index: {}]   ;;  %s9346_s4 = inlined_call_operand.vmem [shape: f32[1,64], index: 4, kind: input, shape index: {}]   ;;  %s9347_s7 = inlined_call_operand.vmem [shape: f32[128,128], index: 7, kind: input, shape index: {}]   ;;  %s9348_s6 = inlined_call_operand.vmem [shape: f32[1,128], index: 6, kind: input, shape index: {}]   ;;  %s9349_s9 = inlined_call_operand.vmem [shape: f32[128,128], index: 9, kind: input, shape index: {}]   ;;  %s9350_s8 = inlined_call_operand.vmem [shape: f32[1,128], index: 8, kind: input, shape index: {}]   ;;  %s9351_s10 = inlined_call_operand.vmem [shape: f32[1,128], index: 10, kind: input, shape index: {}]   ;;  %s9352_s11 = inlined_call_operand.vmem [shape: f32[8,128], index: 11, kind: output, shape index: {}]  }
   0x1   :  { %v66_v0 = vld [vmem:[%s9341_s1] sm:$0xff]  ;;  %v67_v1 = vld [vmem:[%s9341_s1 + $0x8] sm:$0xff]  ;;  %v68_v5 = vld [vmem:[%s9341_s1 + $0x10] sm:$0xff]  ;;  %vm7168_vm5 = vmmov 0   ;;  %vm4034_vm6 = vcmask 523264  }
   0x2   :  { %v4593_v2 = vld [vmem:[%s9341_s1 + $0x20] sm:$0xff]  ;;  %v6730_v3 = vpack.c.bf16 %v67_v1, %v66_v0  ;;  %v4594_v4 = vld [vmem:[%s9341_s1 + $0x28] sm:$0xff]  ;;  %v69_v6 = vld [vmem:[%s9341_s1 + $0x18] sm:$0xf] }
   0x3   :  { %v6740_v7 = vpack.c.bf16 %v4594_v4, %v4593_v2  ;;  %v6734_v8 = vpack.c.bf16 %v69_v6, %v68_v5  ;;  %vm7248_vm2 = vmpackc.low %vm155_vm0, %vm7166_vm1  ;;  %v4595_v10 = vld [vmem:[%s9341_s1 + $0x30] sm:$0xff]  ;;  %v4596_v11 = vld [vmem:[%s9341_s1 + $0x38] sm:$0xf] }
   0x4   :  { %6731 = vmatprep.subr.bf16.mxu0 %v6730_v3  ;;  %v6744_v12 = vpack.c.bf16 %v4596_v11, %v4595_v10  ;;  %v7261_v13 = vld [vmem:[%s9342_s0] sm:$0xff]  ;;  %v4627_v15 = vld [vmem:[%s9341_s1 + $0x48] sm:$0xff]  ;;  %v7295_v21 = vld [vmem:[%s9342_s0 + $0x10] sm:$0xff] }
   0x5   :  { %v4626_v14 = vld [vmem:[%s9341_s1 + $0x40] sm:$0xff]  ;;  %6741 = vmatprep.subr.bf16.mxu1 %v6740_v7  ;;  %6733 = vmatpush3.bf16.msra.mxu0 %v6730_v3  ;;  %v4660_v17 = vld [vmem:[%s9341_s1 + $0x68] sm:$0xff]  ;;  %v4628_v22 = vld [vmem:[%s9341_s1 + $0x50] sm:$0xff] }
   0x6   :  { %v4659_v16 = vld [vmem:[%s9341_s1 + $0x60] sm:$0xff]  ;;  %6743 = vmatpush3.bf16.msra.mxu1 %v6740_v7  ;;  %6736 = vmatprep.subr.msk.bf16.mxu0 %vm7248_vm2, %v6734_v8  ;;  %v6750_v18 = vpack.c.bf16 %v4627_v15, %v4626_v14  ;;  %v7288_v20 = vld [vmem:[%s9342_s0 + $0x8] sm:$0xff]  ;;  %v4629_v23 = vld [vmem:[%s9341_s1 + $0x58] sm:$0xf] }
   0x7   :  { %6746 = vmatprep.subr.msk.bf16.mxu1 %vm7248_vm2, %v6744_v12  ;;  %5732 = vmatprep.mubr.msk.f32.mxu0 %vm70_vm3, %v7261_v13  ;;  %v6760_v19 = vpack.c.bf16 %v4660_v17, %v4659_v16  ;;  %v4661_v24 = vld [vmem:[%s9341_s1 + $0x70] sm:$0xff]  ;;  %v4662_v25 = vld [vmem:[%s9341_s1 + $0x78] sm:$0xf]  ;;  %v6754_v26 = vpack.c.bf16 %v4629_v23, %v4628_v22  ;;  %v7325_v29 = vld [vmem:[%s9342_s0 + $0x20] sm:$0xff] }
   0x8   :  { %5782 = vmatprep.mubr.msk.f32.mxu1 %vm70_vm3, %v7261_v13  ;;  %v6764_v27 = vpack.c.bf16 %v4662_v25, %v4661_v24  ;;  %v7316_v28 = vld [vmem:[%s9342_s0 + $0x18] sm:$0xff]  ;;  %v4692_v30 = vld [vmem:[%s9341_s1 + $0x80] sm:$0xff]  ;;  %v4693_v31 = vld [vmem:[%s9341_s1 + $0x88] sm:$0xff] }
   0x9   :  { %6739 = vmatpush3.bf16.msk.msra.mxu0 %vm7248_vm2, %v6734_v8  ;;  %v4725_v32 = vld [vmem:[%s9341_s1 + $0xa0] sm:$0xff]  ;;  %v7349_v33 = vld [vmem:[%s9342_s0 + $0x28] sm:$0xff]  ;;  %v7351_v34 = vpack.c.bf16 %v4693_v31, %v4692_v30  ;;  %v7361_v36 = vld [vmem:[%s9342_s0 + $0x30] sm:$0xff] }
   0xa   :  { %6749 = vmatpush3.bf16.msk.msra.mxu1 %vm7248_vm2, %v6744_v12  ;;  %6751 = vmatprep.subr.bf16.mxu0 %v6750_v18  ;;  %v4726_v35 = vld [vmem:[%s9341_s1 + $0xa8] sm:$0xff]  ;;  %v7380_v38 = vld [vmem:[%s9342_s0 + $0x38] sm:$0xff]  ;;  %v7387_v39 = vld [vmem:[%s9342_s0 + $0x40] sm:$0xff] }
   0xb   :  { %6761 = vmatprep.subr.bf16.mxu1 %v6760_v19  ;;  %v7365_v37 = vpack.c.bf16 %v4726_v35, %v4725_v32  ;;  %v7398_v40 = vld [vmem:[%s9342_s0 + $0x48] sm:$0xff]  ;;  %v7405_v41 = vld [vmem:[%s9342_s0 + $0x50] sm:$0xff]  ;;  %v7416_v42 = vld [vmem:[%s9342_s0 + $0x58] sm:$0xff] }
   0xc   :  { %5733 = vmatmul.mubr.msk.f32.vlgmr.msra.gmra.mrb[0].mxu0 %vm70_vm3, %v7288_v20  ;;  %v7423_v43 = vld [vmem:[%s9342_s0 + $0x60] sm:$0xff]  ;;  %v7434_v44 = vld [vmem:[%s9342_s0 + $0x68] sm:$0xff]  ;;  %v7441_v45 = vld [vmem:[%s9342_s0 + $0x70] sm:$0xff] }
   0xd   :  { %5783 = vmatmul.mubr.msk.f32.vlgmr.msra.gmra.mrb[0].mxu1 %vm70_vm3, %v7288_v20  ;;  %6753 = vmatpush3.bf16.msra.mxu0 %v6750_v18  ;;  %v7452_v46 = vld [vmem:[%s9342_s0 + $0x78] sm:$0xff]  ;;  %v7459_v47 = vld [vmem:[%s9342_s0 + $0x80] sm:$0xff]  ;;  %v7470_v48 = vld [vmem:[%s9342_s0 + $0x88] sm:$0xff] }
   0xe   :  { %5735 = vmatprep.mubr.msk.f32.mxu0 %vm70_vm3, %v7295_v21  ;;  %5785 = vmatprep.mubr.msk.f32.mxu1 %vm70_vm3, %v7295_v21  ;;  %v7477_v49 = vld [vmem:[%s9342_s0 + $0x90] sm:$0xff]  ;;  %v7488_v50 = vld [vmem:[%s9342_s0 + $0x98] sm:$0xff]  ;;  %v7495_v51 = vld [vmem:[%s9342_s0 + $0xa0] sm:$0xff] }
   0xf   :  { %6763 = vmatpush3.bf16.msra.mxu1 %v6760_v19  ;;  %6756 = vmatprep.subr.msk.bf16.mxu0 %vm7248_vm2, %v6754_v26  ;;  %v7506_v52 = vld [vmem:[%s9342_s0 + $0xa8] sm:$0xff]  ;;  %v7513_v53 = vld [vmem:[%s9342_s0 + $0xb0] sm:$0xff]  ;;  %v7524_v54 = vld [vmem:[%s9342_s0 + $0xb8] sm:$0xff] }
  0x10   :  { %5736 = vmatmul.mubr.msk.f32.gmra.mrb[2].mxu0 %vm70_vm3, %v7316_v28  ;;  %6766 = vmatprep.subr.msk.bf16.mxu1 %vm7248_vm2, %v6764_v27  ;;  %v7531_v55 = vld [vmem:[%s9342_s0 + $0xc0] sm:$0xff]  ;;  %v7542_v56 = vld [vmem:[%s9342_s0 + $0xc8] sm:$0xff]  ;;  %v7549_v57 = vld [vmem:[%s9342_s0 + $0xd0] sm:$0xff] }
  0x11   :  { %5786 = vmatmul.mubr.msk.f32.gmra.mrb[2].mxu1 %vm70_vm3, %v7316_v28  ;;  %5738 = vmatprep.mubr.msk.f32.mxu0 %vm70_vm3, %v7325_v29  ;;  %v7560_v58 = vld [vmem:[%s9342_s0 + $0xd8] sm:$0xff]  ;;  %v4694_v59 = vld [vmem:[%s9341_s1 + $0x90] sm:$0xff]  ;;  %v4758_v1 = vld [vmem:[%s9341_s1 + $0xc0] sm:$0xff] }
  0x12   :  { %5788 = vmatprep.mubr.msk.f32.mxu1 %vm70_vm3, %v7325_v29  ;;  %6759 = vmatpush3.bf16.msk.msra.mxu0 %vm7248_vm2, %v6754_v26  ;;  %v4695_v60 = vld [vmem:[%s9341_s1 + $0x98] sm:$0xf]  ;;  %v4727_v61 = vld [vmem:[%s9341_s1 + $0xb0] sm:$0xff]  ;;  %v4759_v2 = vld [vmem:[%s9341_s1 + $0xc8] sm:$0xff] }
  0x13   :  { %6769 = vmatpush3.bf16.msk.msra.mxu1 %vm7248_vm2, %v6764_v27  ;;  %6771 = vmatprep.subr.bf16.mxu0 %v7351_v34  ;;  %v4728_v62 = vld [vmem:[%s9341_s1 + $0xb8] sm:$0xf]  ;;  %v6774_v63 = vpack.c.bf16 %v4695_v60, %v4694_v59  ;;  %v4791_v3 = vld [vmem:[%s9341_s1 + $0xe0] sm:$0xff]  ;;  %v4792_v4 = vld [vmem:[%s9341_s1 + $0xe8] sm:$0xff]  ;;  %v7608_v5 = vpack.c.bf16 %v4759_v2, %v4758_v1 }
  0x14   :  { %5739 = vmatmul.mubr.msk.f32.gmra.mrb[4].mxu0 %vm70_vm3, %v7349_v33  ;;  %6781 = vmatprep.subr.bf16.mxu1 %v7365_v37  ;;  %v6784_v0 = vpack.c.bf16 %v4728_v62, %v4727_v61  ;;  %v7614_v6 = vpack.c.bf16 %v4792_v4, %v4791_v3  ;;  %v4760_v7 = vld [vmem:[%s9341_s1 + $0xd0] sm:$0xff]  ;;  %v4761_v8 = vld [vmem:[%s9341_s1 + $0xd8] sm:$0xf]  ;;  %v4824_v15 = vld [vmem:[%s9341_s1 + $0x100] sm:$0xff] }
  0x15   :  { %5789 = vmatmul.mubr.msk.f32.gmra.mrb[4].mxu1 %vm70_vm3, %v7349_v33  ;;  %5741 = vmatprep.mubr.msk.f32.mxu0 %vm70_vm3, %v7361_v36  ;;  %v4793_v10 = vld [vmem:[%s9341_s1 + $0xf0] sm:$0xff]  ;;  %v4794_v11 = vld [vmem:[%s9341_s1 + $0xf8] sm:$0xf]  ;;  %v6794_v12 = vpack.c.bf16 %v4761_v8, %v4760_v7  ;;  %v4825_v16 = vld [vmem:[%s9341_s1 + $0x108] sm:$0xff] }
  0x16   :  { %5791 = vmatprep.mubr.msk.f32.mxu1 %vm70_vm3, %v7361_v36  ;;  %v6804_v14 = vpack.c.bf16 %v4794_v11, %v4793_v10  ;;  %v4857_v17 = vld [vmem:[%s9341_s1 + $0x120] sm:$0xff]  ;;  %v4858_v18 = vld [vmem:[%s9341_s1 + $0x128] sm:$0xff]  ;;  %v7760_v19 = vpack.c.bf16 %v4825_v16, %v4824_v15  ;;  %v4826_v23 = vld [vmem:[%s9341_s1 + $0x110] sm:$0xff] }
  0x17   :  { %v7766_v22 = vpack.c.bf16 %v4858_v18, %v4857_v17  ;;  %v4827_v24 = vld [vmem:[%s9341_s1 + $0x118] sm:$0xf]  ;;  %v4859_v25 = vld [vmem:[%s9341_s1 + $0x130] sm:$0xff] }
  0x18   :  { %5742 = vmatmul.mubr.msk.f32.gmra.mrb[6].mxu0 %vm70_vm3, %v7380_v38  ;;  %v4860_v26 = vld [vmem:[%s9341_s1 + $0x138] sm:$0xf]  ;;  %v6814_v27 = vpack.c.bf16 %v4827_v24, %v4826_v23 }
  0x19   :  { %5792 = vmatmul.mubr.msk.f32.gmra.mrb[6].mxu1 %vm70_vm3, %v7380_v38  ;;  %5744 = vmatprep.mubr.msk.f32.mxu0 %vm70_vm3, %v7387_v39  ;;  %v6824_v30 = vpack.c.bf16 %v4860_v26, %v4859_v25 }
  0x1a   :  { %5794 = vmatprep.mubr.msk.f32.mxu1 %vm70_vm3, %v7387_v39 }
  0x1c   :  { %5745 = vmatmul.mubr.msk.f32.gmra.mrb[8].mxu0 %vm70_vm3, %v7398_v40 }
  0x1d   :  { %5795 = vmatmul.mubr.msk.f32.gmra.mrb[8].mxu1 %vm70_vm3, %v7398_v40  ;;  %5747 = vmatprep.mubr.msk.f32.mxu0 %vm70_vm3, %v7405_v41 }
  0x1e   :  { %5797 = vmatprep.mubr.msk.f32.mxu1 %vm70_vm3, %v7405_v41 }
  0x20   :  { %5748 = vmatmul.mubr.msk.f32.gmra.mrb[10].mxu0 %vm70_vm3, %v7416_v42 }
  0x21   :  { %5798 = vmatmul.mubr.msk.f32.gmra.mrb[10].mxu1 %vm70_vm3, %v7416_v42  ;;  %5750 = vmatprep.mubr.msk.f32.mxu0 %vm70_vm3, %v7423_v43 }
  0x22   :  { %5800 = vmatprep.mubr.msk.f32.mxu1 %vm70_vm3, %v7423_v43 }
  0x24   :  { %5751 = vmatmul.mubr.msk.f32.gmra.mrb[12].mxu0 %vm70_vm3, %v7434_v44 }
  0x25   :  { %5801 = vmatmul.mubr.msk.f32.gmra.mrb[12].mxu1 %vm70_vm3, %v7434_v44  ;;  %5753 = vmatprep.mubr.msk.f32.mxu0 %vm70_vm3, %v7441_v45 }
  0x26   :  { %5803 = vmatprep.mubr.msk.f32.mxu1 %vm70_vm3, %v7441_v45 }
  0x28   :  { %5754 = vmatmul.mubr.msk.f32.gmra.mrb[14].mxu0 %vm70_vm3, %v7452_v46 }
  0x29   :  { %5804 = vmatmul.mubr.msk.f32.gmra.mrb[14].mxu1 %vm70_vm3, %v7452_v46  ;;  %5756 = vmatprep.mubr.msk.f32.mxu0 %vm70_vm3, %v7459_v47 }
  0x2a   :  { %5806 = vmatprep.mubr.msk.f32.mxu1 %vm70_vm3, %v7459_v47 }
  0x2c   :  { %5757 = vmatmul.mubr.msk.f32.gmra.mrb[16].mxu0 %vm70_vm3, %v7470_v48 }
  0x2d   :  { %5807 = vmatmul.mubr.msk.f32.gmra.mrb[16].mxu1 %vm70_vm3, %v7470_v48  ;;  %5759 = vmatprep.mubr.msk.f32.mxu0 %vm70_vm3, %v7477_v49 }
  0x2e   :  { %5809 = vmatprep.mubr.msk.f32.mxu1 %vm70_vm3, %v7477_v49 }
  0x30   :  { %5760 = vmatmul.mubr.msk.f32.gmra.mrb[18].mxu0 %vm70_vm3, %v7488_v50 }
  0x31   :  { %5810 = vmatmul.mubr.msk.f32.gmra.mrb[18].mxu1 %vm70_vm3, %v7488_v50  ;;  %5762 = vmatprep.mubr.msk.f32.mxu0 %vm70_vm3, %v7495_v51 }
  0x32   :  { %5812 = vmatprep.mubr.msk.f32.mxu1 %vm70_vm3, %v7495_v51 }
  0x34   :  { %5763 = vmatmul.mubr.msk.f32.gmra.mrb[20].mxu0 %vm70_vm3, %v7506_v52 }
  0x35   :  { %5813 = vmatmul.mubr.msk.f32.gmra.mrb[20].mxu1 %vm70_vm3, %v7506_v52  ;;  %5765 = vmatprep.mubr.msk.f32.mxu0 %vm70_vm3, %v7513_v53 }
  0x36   :  { %5815 = vmatprep.mubr.msk.f32.mxu1 %vm70_vm3, %v7513_v53 }
  0x38   :  { %5766 = vmatmul.mubr.msk.f32.gmra.mrb[22].mxu0 %vm70_vm3, %v7524_v54 }
  0x39   :  { %5816 = vmatmul.mubr.msk.f32.gmra.mrb[22].mxu1 %vm70_vm3, %v7524_v54  ;;  %5768 = vmatprep.mubr.msk.f32.mxu0 %vm70_vm3, %v7531_v55 }
  0x3a   :  { %5818 = vmatprep.mubr.msk.f32.mxu1 %vm70_vm3, %v7531_v55 }
  0x3c   :  { %5769 = vmatmul.mubr.msk.f32.gmra.mrb[24].mxu0 %vm70_vm3, %v7542_v56 }
  0x3d   :  { %5819 = vmatmul.mubr.msk.f32.gmra.mrb[24].mxu1 %vm70_vm3, %v7542_v56  ;;  %5771 = vmatprep.mubr.msk.f32.mxu0 %vm70_vm3, %v7549_v57 }
  0x3e   :  { %5821 = vmatprep.mubr.msk.f32.mxu1 %vm70_vm3, %v7549_v57 }
  0x40   :  { %5772 = vmatmul.mubr.msk.f32.gmra.mrb[26].mxu0 %vm70_vm3, %v7560_v58 }
  0x41   :  { %5822 = vmatmul.mubr.msk.f32.gmra.mrb[26].mxu1 %vm70_vm3, %v7560_v58  ;;  %5832 = vmatprep.mubr.msk.f32.mxu0 %vm70_vm3, %v7261_v13 }
  0x42   :  { %5882 = vmatprep.mubr.msk.f32.mxu1 %vm70_vm3, %v7261_v13 }
  0x44   :  { %5833 = vmatmul.mubr.msk.f32.vlgmr.msra.gmra.mrb[28].mxu0 %vm70_vm3, %v7288_v20 }
  0x45   :  { %5883 = vmatmul.mubr.msk.f32.vlgmr.msra.gmra.mrb[28].mxu1 %vm70_vm3, %v7288_v20  ;;  %6773 = vmatpush3.bf16.msra.mxu0 %v7351_v34 }
  0x46   :  { %5835 = vmatprep.mubr.msk.f32.mxu0 %vm70_vm3, %v7295_v21  ;;  %5885 = vmatprep.mubr.msk.f32.mxu1 %vm70_vm3, %v7295_v21 }
  0x47   :  { %6783 = vmatpush3.bf16.msra.mxu1 %v7365_v37  ;;  %6776 = vmatprep.subr.msk.bf16.mxu0 %vm7248_vm2, %v6774_v63 }
  0x48   :  { %5836 = vmatmul.mubr.msk.f32.gmra.mrb[30].mxu0 %vm70_vm3, %v7316_v28  ;;  %6786 = vmatprep.subr.msk.bf16.mxu1 %vm7248_vm2, %v6784_v0 }
  0x49   :  { %5886 = vmatmul.mubr.msk.f32.gmra.mrb[30].mxu1 %vm70_vm3, %v7316_v28  ;;  %5838 = vmatprep.mubr.msk.f32.mxu0 %vm70_vm3, %v7325_v29 }
  0x4a   :  { %5888 = vmatprep.mubr.msk.f32.mxu1 %vm70_vm3, %v7325_v29  ;;  %6779 = vmatpush3.bf16.msk.msra.mxu0 %vm7248_vm2, %v6774_v63 }
  0x4b   :  { %6789 = vmatpush3.bf16.msk.msra.mxu1 %vm7248_vm2, %v6784_v0  ;;  %6791 = vmatprep.subr.bf16.mxu0 %v7608_v5 }
  0x4c   :  { %5839 = vmatmul.mubr.msk.f32.gmra.mrb[32].mxu0 %vm70_vm3, %v7349_v33  ;;  %6801 = vmatprep.subr.bf16.mxu1 %v7614_v6 }
  0x4d   :  { %5889 = vmatmul.mubr.msk.f32.gmra.mrb[32].mxu1 %vm70_vm3, %v7349_v33  ;;  %5841 = vmatprep.mubr.msk.f32.mxu0 %vm70_vm3, %v7361_v36 }
  0x4e   :  { %5891 = vmatprep.mubr.msk.f32.mxu1 %vm70_vm3, %v7361_v36 }
  0x50   :  { %5842 = vmatmul.mubr.msk.f32.gmra.mrb[34].mxu0 %vm70_vm3, %v7380_v38 }
  0x51   :  { %5892 = vmatmul.mubr.msk.f32.gmra.mrb[34].mxu1 %vm70_vm3, %v7380_v38  ;;  %5844 = vmatprep.mubr.msk.f32.mxu0 %vm70_vm3, %v7387_v39 }
  0x52   :  { %5894 = vmatprep.mubr.msk.f32.mxu1 %vm70_vm3, %v7387_v39 }
  0x54   :  { %5845 = vmatmul.mubr.msk.f32.gmra.mrb[36].mxu0 %vm70_vm3, %v7398_v40 }
  0x55   :  { %5895 = vmatmul.mubr.msk.f32.gmra.mrb[36].mxu1 %vm70_vm3, %v7398_v40  ;;  %5847 = vmatprep.mubr.msk.f32.mxu0 %vm70_vm3, %v7405_v41 }
  0x56   :  { %5897 = vmatprep.mubr.msk.f32.mxu1 %vm70_vm3, %v7405_v41 }
  0x58   :  { %5848 = vmatmul.mubr.msk.f32.gmra.mrb[38].mxu0 %vm70_vm3, %v7416_v42 }
  0x59   :  { %5898 = vmatmul.mubr.msk.f32.gmra.mrb[38].mxu1 %vm70_vm3, %v7416_v42  ;;  %5850 = vmatprep.mubr.msk.f32.mxu0 %vm70_vm3, %v7423_v43 }
  0x5a   :  { %5900 = vmatprep.mubr.msk.f32.mxu1 %vm70_vm3, %v7423_v43 }
  0x5c   :  { %5851 = vmatmul.mubr.msk.f32.gmra.mrb[40].mxu0 %vm70_vm3, %v7434_v44 }
  0x5d   :  { %5901 = vmatmul.mubr.msk.f32.gmra.mrb[40].mxu1 %vm70_vm3, %v7434_v44  ;;  %5853 = vmatprep.mubr.msk.f32.mxu0 %vm70_vm3, %v7441_v45 }
  0x5e   :  { %5903 = vmatprep.mubr.msk.f32.mxu1 %vm70_vm3, %v7441_v45 }
  0x60   :  { %5854 = vmatmul.mubr.msk.f32.gmra.mrb[42].mxu0 %vm70_vm3, %v7452_v46 }
  0x61   :  { %5904 = vmatmul.mubr.msk.f32.gmra.mrb[42].mxu1 %vm70_vm3, %v7452_v46  ;;  %5856 = vmatprep.mubr.msk.f32.mxu0 %vm70_vm3, %v7459_v47 }
  0x62   :  { %5906 = vmatprep.mubr.msk.f32.mxu1 %vm70_vm3, %v7459_v47 }
  0x64   :  { %5857 = vmatmul.mubr.msk.f32.gmra.mrb[44].mxu0 %vm70_vm3, %v7470_v48 }
  0x65   :  { %5907 = vmatmul.mubr.msk.f32.gmra.mrb[44].mxu1 %vm70_vm3, %v7470_v48  ;;  %5859 = vmatprep.mubr.msk.f32.mxu0 %vm70_vm3, %v7477_v49 }
  0x66   :  { %5909 = vmatprep.mubr.msk.f32.mxu1 %vm70_vm3, %v7477_v49 }
  0x68   :  { %5860 = vmatmul.mubr.msk.f32.gmra.mrb[46].mxu0 %vm70_vm3, %v7488_v50 }
  0x69   :  { %5910 = vmatmul.mubr.msk.f32.gmra.mrb[46].mxu1 %vm70_vm3, %v7488_v50  ;;  %5862 = vmatprep.mubr.msk.f32.mxu0 %vm70_vm3, %v7495_v51 }
  0x6a   :  { %5912 = vmatprep.mubr.msk.f32.mxu1 %vm70_vm3, %v7495_v51 }
  0x6c   :  { %5863 = vmatmul.mubr.msk.f32.gmra.mrb[48].mxu0 %vm70_vm3, %v7506_v52 }
  0x6d   :  { %5913 = vmatmul.mubr.msk.f32.gmra.mrb[48].mxu1 %vm70_vm3, %v7506_v52  ;;  %5865 = vmatprep.mubr.msk.f32.mxu0 %vm70_vm3, %v7513_v53 }
  0x6e   :  { %5915 = vmatprep.mubr.msk.f32.mxu1 %vm70_vm3, %v7513_v53 }
  0x70   :  { %5866 = vmatmul.mubr.msk.f32.gmra.mrb[50].mxu0 %vm70_vm3, %v7524_v54 }
  0x71   :  { %5916 = vmatmul.mubr.msk.f32.gmra.mrb[50].mxu1 %vm70_vm3, %v7524_v54  ;;  %5868 = vmatprep.mubr.msk.f32.mxu0 %vm70_vm3, %v7531_v55 }
  0x72   :  { %5918 = vmatprep.mubr.msk.f32.mxu1 %vm70_vm3, %v7531_v55 }
  0x74   :  { %5869 = vmatmul.mubr.msk.f32.gmra.mrb[52].mxu0 %vm70_vm3, %v7542_v56 }
  0x75   :  { %5919 = vmatmul.mubr.msk.f32.gmra.mrb[52].mxu1 %vm70_vm3, %v7542_v56  ;;  %5871 = vmatprep.mubr.msk.f32.mxu0 %vm70_vm3, %v7549_v57 }
  0x76   :  { %5921 = vmatprep.mubr.msk.f32.mxu1 %vm70_vm3, %v7549_v57 }
  0x78   :  { %5872 = vmatmul.mubr.msk.f32.gmra.mrb[54].mxu0 %vm70_vm3, %v7560_v58 }
  0x79   :  { %5922 = vmatmul.mubr.msk.f32.gmra.mrb[54].mxu1 %vm70_vm3, %v7560_v58  ;;  %5932 = vmatprep.mubr.msk.f32.mxu0 %vm70_vm3, %v7261_v13 }
  0x7a   :  { %5982 = vmatprep.mubr.msk.f32.mxu1 %vm70_vm3, %v7261_v13 }
  0x7c   :  { %5933 = vmatmul.mubr.msk.f32.vlgmr.msra.gmra.mrb[56].mxu0 %vm70_vm3, %v7288_v20 }
  0x7d   :  { %5983 = vmatmul.mubr.msk.f32.vlgmr.msra.gmra.mrb[56].mxu1 %vm70_vm3, %v7288_v20  ;;  %6793 = vmatpush3.bf16.msra.mxu0 %v7608_v5 }
  0x7e   :  { %5935 = vmatprep.mubr.msk.f32.mxu0 %vm70_vm3, %v7295_v21  ;;  %5985 = vmatprep.mubr.msk.f32.mxu1 %vm70_vm3, %v7295_v21 }
  0x7f   :  { %6803 = vmatpush3.bf16.msra.mxu1 %v7614_v6  ;;  %6796 = vmatprep.subr.msk.bf16.mxu0 %vm7248_vm2, %v6794_v12 }
  0x80   :  { %5936 = vmatmul.mubr.msk.f32.gmra.mrb[58].mxu0 %vm70_vm3, %v7316_v28  ;;  %6806 = vmatprep.subr.msk.bf16.mxu1 %vm7248_vm2, %v6804_v14 }
  0x81   :  { %5986 = vmatmul.mubr.msk.f32.gmra.mrb[58].mxu1 %vm70_vm3, %v7316_v28  ;;  %5938 = vmatprep.mubr.msk.f32.mxu0 %vm70_vm3, %v7325_v29 }
  0x82   :  { %5988 = vmatprep.mubr.msk.f32.mxu1 %vm70_vm3, %v7325_v29  ;;  %6799 = vmatpush3.bf16.msk.msra.mxu0 %vm7248_vm2, %v6794_v12 }
  0x83   :  { %6809 = vmatpush3.bf16.msk.msra.mxu1 %vm7248_vm2, %v6804_v14  ;;  %6811 = vmatprep.subr.bf16.mxu0 %v7760_v19 }
  0x84   :  { %5939 = vmatmul.mubr.msk.f32.gmra.mrb[60].mxu0 %vm70_vm3, %v7349_v33  ;;  %6821 = vmatprep.subr.bf16.mxu1 %v7766_v22 }
  0x85   :  { %5989 = vmatmul.mubr.msk.f32.gmra.mrb[60].mxu1 %vm70_vm3, %v7349_v33  ;;  %5941 = vmatprep.mubr.msk.f32.mxu0 %vm70_vm3, %v7361_v36 }
  0x86   :  { %5991 = vmatprep.mubr.msk.f32.mxu1 %vm70_vm3, %v7361_v36 }
  0x88   :  { %5942 = vmatmul.mubr.msk.f32.gmra.mrb[62].mxu0 %vm70_vm3, %v7380_v38 }
  0x89   :  { %5992 = vmatmul.mubr.msk.f32.gmra.mrb[62].mxu1 %vm70_vm3, %v7380_v38  ;;  %5944 = vmatprep.mubr.msk.f32.mxu0 %vm70_vm3, %v7387_v39 }
  0x8a   :  { %5994 = vmatprep.mubr.msk.f32.mxu1 %vm70_vm3, %v7387_v39 }
  0x8c   :  { %5945 = vmatmul.mubr.msk.f32.gmra.mrb[64].mxu0 %vm70_vm3, %v7398_v40 }
  0x8d   :  { %5995 = vmatmul.mubr.msk.f32.gmra.mrb[64].mxu1 %vm70_vm3, %v7398_v40  ;;  %5947 = vmatprep.mubr.msk.f32.mxu0 %vm70_vm3, %v7405_v41 }
  0x8e   :  { %5997 = vmatprep.mubr.msk.f32.mxu1 %vm70_vm3, %v7405_v41 }
  0x90   :  { %5948 = vmatmul.mubr.msk.f32.gmra.mrb[66].mxu0 %vm70_vm3, %v7416_v42 }
  0x91   :  { %5998 = vmatmul.mubr.msk.f32.gmra.mrb[66].mxu1 %vm70_vm3, %v7416_v42  ;;  %5950 = vmatprep.mubr.msk.f32.mxu0 %vm70_vm3, %v7423_v43 }
  0x92   :  { %6000 = vmatprep.mubr.msk.f32.mxu1 %vm70_vm3, %v7423_v43 }
  0x94   :  { %5951 = vmatmul.mubr.msk.f32.gmra.mrb[68].mxu0 %vm70_vm3, %v7434_v44 }
  0x95   :  { %6001 = vmatmul.mubr.msk.f32.gmra.mrb[68].mxu1 %vm70_vm3, %v7434_v44  ;;  %5953 = vmatprep.mubr.msk.f32.mxu0 %vm70_vm3, %v7441_v45 }
  0x96   :  { %6003 = vmatprep.mubr.msk.f32.mxu1 %vm70_vm3, %v7441_v45 }
  0x98   :  { %5954 = vmatmul.mubr.msk.f32.gmra.mrb[70].mxu0 %vm70_vm3, %v7452_v46 }
  0x99   :  { %6004 = vmatmul.mubr.msk.f32.gmra.mrb[70].mxu1 %vm70_vm3, %v7452_v46  ;;  %5956 = vmatprep.mubr.msk.f32.mxu0 %vm70_vm3, %v7459_v47 }
  0x9a   :  { %6006 = vmatprep.mubr.msk.f32.mxu1 %vm70_vm3, %v7459_v47 }
  0x9c   :  { %5957 = vmatmul.mubr.msk.f32.gmra.mrb[72].mxu0 %vm70_vm3, %v7470_v48 }
  0x9d   :  { %6007 = vmatmul.mubr.msk.f32.gmra.mrb[72].mxu1 %vm70_vm3, %v7470_v48  ;;  %5959 = vmatprep.mubr.msk.f32.mxu0 %vm70_vm3, %v7477_v49 }
  0x9e   :  { %6009 = vmatprep.mubr.msk.f32.mxu1 %vm70_vm3, %v7477_v49 }
  0xa0   :  { %5960 = vmatmul.mubr.msk.f32.gmra.mrb[74].mxu0 %vm70_vm3, %v7488_v50 }
  0xa1   :  { %6010 = vmatmul.mubr.msk.f32.gmra.mrb[74].mxu1 %vm70_vm3, %v7488_v50  ;;  %5962 = vmatprep.mubr.msk.f32.mxu0 %vm70_vm3, %v7495_v51 }
  0xa2   :  { %6012 = vmatprep.mubr.msk.f32.mxu1 %vm70_vm3, %v7495_v51 }
  0xa4   :  { %5963 = vmatmul.mubr.msk.f32.gmra.mrb[76].mxu0 %vm70_vm3, %v7506_v52 }
  0xa5   :  { %6013 = vmatmul.mubr.msk.f32.gmra.mrb[76].mxu1 %vm70_vm3, %v7506_v52  ;;  %5965 = vmatprep.mubr.msk.f32.mxu0 %vm70_vm3, %v7513_v53 }
  0xa6   :  { %6015 = vmatprep.mubr.msk.f32.mxu1 %vm70_vm3, %v7513_v53 }
  0xa8   :  { %5966 = vmatmul.mubr.msk.f32.gmra.mrb[78].mxu0 %vm70_vm3, %v7524_v54 }
  0xa9   :  { %6016 = vmatmul.mubr.msk.f32.gmra.mrb[78].mxu1 %vm70_vm3, %v7524_v54  ;;  %5968 = vmatprep.mubr.msk.f32.mxu0 %vm70_vm3, %v7531_v55 }
  0xaa   :  { %6018 = vmatprep.mubr.msk.f32.mxu1 %vm70_vm3, %v7531_v55 }
  0xac   :  { %5969 = vmatmul.mubr.msk.f32.gmra.mrb[80].mxu0 %vm70_vm3, %v7542_v56 }
  0xad   :  { %6019 = vmatmul.mubr.msk.f32.gmra.mrb[80].mxu1 %vm70_vm3, %v7542_v56  ;;  %5971 = vmatprep.mubr.msk.f32.mxu0 %vm70_vm3, %v7549_v57 }
  0xae   :  { %6021 = vmatprep.mubr.msk.f32.mxu1 %vm70_vm3, %v7549_v57 }
  0xb0   :  { %5972 = vmatmul.mubr.msk.f32.gmra.mrb[82].mxu0 %vm70_vm3, %v7560_v58 }
  0xb1   :  { %6022 = vmatmul.mubr.msk.f32.gmra.mrb[82].mxu1 %vm70_vm3, %v7560_v58  ;;  %6032 = vmatprep.mubr.msk.f32.mxu0 %vm70_vm3, %v7261_v13 }
  0xb2   :  { %6082 = vmatprep.mubr.msk.f32.mxu1 %vm70_vm3, %v7261_v13 }
  0xb4   :  { %6033 = vmatmul.mubr.msk.f32.vlgmr.msra.gmra.mrb[84].mxu0 %vm70_vm3, %v7288_v20 }
  0xb5   :  { %6083 = vmatmul.mubr.msk.f32.vlgmr.msra.gmra.mrb[84].mxu1 %vm70_vm3, %v7288_v20  ;;  %6813 = vmatpush3.bf16.msra.mxu0 %v7760_v19 }
  0xb6   :  { %6035 = vmatprep.mubr.msk.f32.mxu0 %vm70_vm3, %v7295_v21  ;;  %6085 = vmatprep.mubr.msk.f32.mxu1 %vm70_vm3, %v7295_v21 }
  0xb7   :  { %6823 = vmatpush3.bf16.msra.mxu1 %v7766_v22  ;;  %6816 = vmatprep.subr.msk.bf16.mxu0 %vm7248_vm2, %v6814_v27 }
  0xb8   :  { %6036 = vmatmul.mubr.msk.f32.gmra.mrb[86].mxu0 %vm70_vm3, %v7316_v28  ;;  %6826 = vmatprep.subr.msk.bf16.mxu1 %vm7248_vm2, %v6824_v30 }
  0xb9   :  { %6086 = vmatmul.mubr.msk.f32.gmra.mrb[86].mxu1 %vm70_vm3, %v7316_v28  ;;  %6038 = vmatprep.mubr.msk.f32.mxu0 %vm70_vm3, %v7325_v29 }
  0xba   :  { %6088 = vmatprep.mubr.msk.f32.mxu1 %vm70_vm3, %v7325_v29  ;;  %6819 = vmatpush3.bf16.msk.msra.mxu0 %vm7248_vm2, %v6814_v27 }
  0xbb   :  { %6829 = vmatpush3.bf16.msk.msra.mxu1 %vm7248_vm2, %v6824_v30 }
  0xbc   :  { %6039 = vmatmul.mubr.msk.f32.gmra.mrb[88].mxu0 %vm70_vm3, %v7349_v33 }
  0xbd   :  { %6089 = vmatmul.mubr.msk.f32.gmra.mrb[88].mxu1 %vm70_vm3, %v7349_v33  ;;  %6041 = vmatprep.mubr.msk.f32.mxu0 %vm70_vm3, %v7361_v36 }
  0xbe   :  { %6091 = vmatprep.mubr.msk.f32.mxu1 %vm70_vm3, %v7361_v36 }
  0xc0   :  { %6042 = vmatmul.mubr.msk.f32.gmra.mrb[90].mxu0 %vm70_vm3, %v7380_v38 }
  0xc1   :  { %6092 = vmatmul.mubr.msk.f32.gmra.mrb[90].mxu1 %vm70_vm3, %v7380_v38  ;;  %6044 = vmatprep.mubr.msk.f32.mxu0 %vm70_vm3, %v7387_v39 }
  0xc2   :  { %6094 = vmatprep.mubr.msk.f32.mxu1 %vm70_vm3, %v7387_v39 }
  0xc4   :  { %6045 = vmatmul.mubr.msk.f32.gmra.mrb[92].mxu0 %vm70_vm3, %v7398_v40 }
  0xc5   :  { %6095 = vmatmul.mubr.msk.f32.gmra.mrb[92].mxu1 %vm70_vm3, %v7398_v40  ;;  %6047 = vmatprep.mubr.msk.f32.mxu0 %vm70_vm3, %v7405_v41 }
  0xc6   :  { %6097 = vmatprep.mubr.msk.f32.mxu1 %vm70_vm3, %v7405_v41 }
  0xc8   :  { %6048 = vmatmul.mubr.msk.f32.gmra.mrb[94].mxu0 %vm70_vm3, %v7416_v42 }
  0xc9   :  { %6098 = vmatmul.mubr.msk.f32.gmra.mrb[94].mxu1 %vm70_vm3, %v7416_v42  ;;  %6050 = vmatprep.mubr.msk.f32.mxu0 %vm70_vm3, %v7423_v43 }
  0xca   :  { %6100 = vmatprep.mubr.msk.f32.mxu1 %vm70_vm3, %v7423_v43 }
  0xcc   :  { %6051 = vmatmul.mubr.msk.f32.gmra.mrb[96].mxu0 %vm70_vm3, %v7434_v44 }
  0xcd   :  { %6101 = vmatmul.mubr.msk.f32.gmra.mrb[96].mxu1 %vm70_vm3, %v7434_v44  ;;  %6053 = vmatprep.mubr.msk.f32.mxu0 %vm70_vm3, %v7441_v45 }
  0xce   :  { %6103 = vmatprep.mubr.msk.f32.mxu1 %vm70_vm3, %v7441_v45 }
  0xd0   :  { %6054 = vmatmul.mubr.msk.f32.gmra.mrb[98].mxu0 %vm70_vm3, %v7452_v46 }
  0xd1   :  { %6104 = vmatmul.mubr.msk.f32.gmra.mrb[98].mxu1 %vm70_vm3, %v7452_v46  ;;  %6056 = vmatprep.mubr.msk.f32.mxu0 %vm70_vm3, %v7459_v47 }
  0xd2   :  { %6106 = vmatprep.mubr.msk.f32.mxu1 %vm70_vm3, %v7459_v47 }
  0xd4   :  { %6057 = vmatmul.mubr.msk.f32.gmra.mrb[100].mxu0 %vm70_vm3, %v7470_v48 }
  0xd5   :  { %6107 = vmatmul.mubr.msk.f32.gmra.mrb[100].mxu1 %vm70_vm3, %v7470_v48  ;;  %6059 = vmatprep.mubr.msk.f32.mxu0 %vm70_vm3, %v7477_v49 }
  0xd6   :  { %6109 = vmatprep.mubr.msk.f32.mxu1 %vm70_vm3, %v7477_v49 }
  0xd8   :  { %6060 = vmatmul.mubr.msk.f32.gmra.mrb[102].mxu0 %vm70_vm3, %v7488_v50 }
  0xd9   :  { %6110 = vmatmul.mubr.msk.f32.gmra.mrb[102].mxu1 %vm70_vm3, %v7488_v50  ;;  %6062 = vmatprep.mubr.msk.f32.mxu0 %vm70_vm3, %v7495_v51 }
  0xda   :  { %6112 = vmatprep.mubr.msk.f32.mxu1 %vm70_vm3, %v7495_v51 }
  0xdc   :  { %6063 = vmatmul.mubr.msk.f32.gmra.mrb[104].mxu0 %vm70_vm3, %v7506_v52 }
  0xdd   :  { %6113 = vmatmul.mubr.msk.f32.gmra.mrb[104].mxu1 %vm70_vm3, %v7506_v52  ;;  %6065 = vmatprep.mubr.msk.f32.mxu0 %vm70_vm3, %v7513_v53 }
  0xde   :  { %6115 = vmatprep.mubr.msk.f32.mxu1 %vm70_vm3, %v7513_v53 }
  0xdf   :  { %v5734_v9 = vpop.f32.mrb[0].mxu0 }
  0xe0   :  { %v225_v31 = vpop.f32.mrb[1].mxu0  ;;  %v5784_v32 = vpop.f32.mrb[0].mxu1  ;;  %6066 = vmatmul.mubr.msk.f32.gmra.mrb[106].mxu0 %vm70_vm3, %v7524_v54 }
  0xe1   :  { %v7988_v34 = vadd.f32 %v5784_v32, %v225_v31  ;;  %6116 = vmatmul.mubr.msk.f32.gmra.mrb[106].mxu1 %vm70_vm3, %v7524_v54  ;;  %v434_v35 = vpop.f32.mrb[1].mxu1  ;;  %6068 = vmatprep.mubr.msk.f32.mxu0 %vm70_vm3, %v7531_v55 }
  0xe2   :  { %6118 = vmatprep.mubr.msk.f32.mxu1 %vm70_vm3, %v7531_v55 }
  0xe3   :  { %v5737_v37 = vpop.f32.mrb[2].mxu0 }
  0xe4   :  { %v5787_v59 = vpop.f32.mrb[2].mxu1  ;;  %v235_v60 = vpop.f32.mrb[3].mxu0  ;;  %6069 = vmatmul.mubr.msk.f32.gmra.mrb[108].mxu0 %vm70_vm3, %v7542_v56 }
  0xe5   :  { %v7998_v61 = vadd.f32 %v5787_v59, %v235_v60  ;;  %v443_v62 = vpop.f32.mrb[3].mxu1  ;;  %6119 = vmatmul.mubr.msk.f32.gmra.mrb[108].mxu1 %vm70_vm3, %v7542_v56  ;;  %6071 = vmatprep.mubr.msk.f32.mxu0 %vm70_vm3, %v7549_v57 }
  0xe6   :  { %v8004_v63 = vadd.f32 %v5734_v9, %v443_v62  ;;  %6121 = vmatprep.mubr.msk.f32.mxu1 %vm70_vm3, %v7549_v57 }
  0xe7   :  { %v5740_v0 = vpop.f32.mrb[4].mxu0 }
  0xe8   :  { %v5790_v1 = vpop.f32.mrb[4].mxu1  ;;  %v245_v2 = vpop.f32.mrb[5].mxu0  ;;  %6072 = vmatmul.mubr.msk.f32.gmra.mrb[110].mxu0 %vm70_vm3, %v7560_v58 }
  0xe9   :  { %v8010_v3 = vadd.f32 %v5790_v1, %v245_v2  ;;  %v453_v4 = vpop.f32.mrb[5].mxu1  ;;  %6122 = vmatmul.mubr.msk.f32.gmra.mrb[110].mxu1 %vm70_vm3, %v7560_v58  ;;  %6132 = vmatprep.mubr.msk.f32.mxu0 %vm70_vm3, %v7261_v13 }
  0xea   :  { %v8016_v5 = vadd.f32 %v5737_v37, %v453_v4  ;;  %6182 = vmatprep.mubr.msk.f32.mxu1 %vm70_vm3, %v7261_v13 }
  0xeb   :  { %v5743_v6 = vpop.f32.mrb[6].mxu0 }
  0xec   :  { %v5793_v7 = vpop.f32.mrb[6].mxu1  ;;  %v255_v8 = vpop.f32.mrb[7].mxu0  ;;  %6133 = vmatmul.mubr.msk.f32.vlgmr.msra.gmra.mrb[112].mxu0 %vm70_vm3, %v7288_v20 }
  0xed   :  { %v8022_v10 = vadd.f32 %v5793_v7, %v255_v8  ;;  %v463_v11 = vpop.f32.mrb[7].mxu1  ;;  %6183 = vmatmul.mubr.msk.f32.vlgmr.msra.gmra.mrb[112].mxu1 %vm70_vm3, %v7288_v20  ;;  %6135 = vmatprep.mubr.msk.f32.mxu0 %vm70_vm3, %v7295_v21 }
  0xee   :  { %v8028_v12 = vadd.f32 %v5740_v0, %v463_v11  ;;  %6185 = vmatprep.mubr.msk.f32.mxu1 %vm70_vm3, %v7295_v21 }
  0xef   :  { %v5746_v13 = vpop.f32.mrb[8].mxu0 }
  0xf0   :  { %v5796_v14 = vpop.f32.mrb[8].mxu1  ;;  %v265_v15 = vpop.f32.mrb[9].mxu0  ;;  %6136 = vmatmul.mubr.msk.f32.gmra.mrb[114].mxu0 %vm70_vm3, %v7316_v28 }
  0xf1   :  { %v8034_v16 = vadd.f32 %v5796_v14, %v265_v15  ;;  %v473_v17 = vpop.f32.mrb[9].mxu1  ;;  %6186 = vmatmul.mubr.msk.f32.gmra.mrb[114].mxu1 %vm70_vm3, %v7316_v28  ;;  %6138 = vmatprep.mubr.msk.f32.mxu0 %vm70_vm3, %v7325_v29 }
  0xf2   :  { %v8040_v20 = vadd.f32 %v5743_v6, %v473_v17  ;;  %6188 = vmatprep.mubr.msk.f32.mxu1 %vm70_vm3, %v7325_v29 }
  0xf3   :  { %v5749_v21 = vpop.f32.mrb[10].mxu0 }
  0xf4   :  { %v5799_v18 = vpop.f32.mrb[10].mxu1  ;;  %v275_v19 = vpop.f32.mrb[11].mxu0  ;;  %6139 = vmatmul.mubr.msk.f32.gmra.mrb[116].mxu0 %vm70_vm3, %v7349_v33 }
  0xf5   :  { %v8046_v22 = vadd.f32 %v5799_v18, %v275_v19  ;;  %v483_v23 = vpop.f32.mrb[11].mxu1  ;;  %6189 = vmatmul.mubr.msk.f32.gmra.mrb[116].mxu1 %vm70_vm3, %v7349_v33  ;;  %6141 = vmatprep.mubr.msk.f32.mxu0 %vm70_vm3, %v7361_v36 }
  0xf6   :  { %v8052_v28 = vadd.f32 %v5746_v13, %v483_v23  ;;  %6191 = vmatprep.mubr.msk.f32.mxu1 %vm70_vm3, %v7361_v36 }
  0xf7   :  { %v5752_v29 = vpop.f32.mrb[12].mxu0 }
  0xf8   :  { %v5802_v24 = vpop.f32.mrb[12].mxu1  ;;  %v285_v25 = vpop.f32.mrb[13].mxu0  ;;  %6142 = vmatmul.mubr.msk.f32.gmra.mrb[118].mxu0 %vm70_vm3, %v7380_v38 }
  0xf9   :  { %v8058_v26 = vadd.f32 %v5802_v24, %v285_v25  ;;  %v493_v27 = vpop.f32.mrb[13].mxu1  ;;  %6192 = vmatmul.mubr.msk.f32.gmra.mrb[118].mxu1 %vm70_vm3, %v7380_v38  ;;  %6144 = vmatprep.mubr.msk.f32.mxu0 %vm70_vm3, %v7387_v39 }
  0xfa   :  { %v8064_v33 = vadd.f32 %v5749_v21, %v493_v27  ;;  %6194 = vmatprep.mubr.msk.f32.mxu1 %vm70_vm3, %v7387_v39 }
  0xfb   :  { %v5755_v36 = vpop.f32.mrb[14].mxu0 }
  0xfc   :  { %v5805_v30 = vpop.f32.mrb[14].mxu1  ;;  %v295_v9 = vpop.f32.mrb[15].mxu0  ;;  %6145 = vmatmul.mubr.msk.f32.gmra.mrb[120].mxu0 %vm70_vm3, %v7398_v40 }
  0xfd   :  { %v8070_v31 = vadd.f32 %v5805_v30, %v295_v9  ;;  %v503_v32 = vpop.f32.mrb[15].mxu1  ;;  %6195 = vmatmul.mubr.msk.f32.gmra.mrb[120].mxu1 %vm70_vm3, %v7398_v40  ;;  %6147 = vmatprep.mubr.msk.f32.mxu0 %vm70_vm3, %v7405_v41 }
  0xfe   :  { %v8076_v38 = vadd.f32 %v5752_v29, %v503_v32  ;;  %6197 = vmatprep.mubr.msk.f32.mxu1 %vm70_vm3, %v7405_v41 }
  0xff   :  { %v5758_v39 = vpop.f32.mrb[16].mxu0 }
 0x100   :  { %v5808_v35 = vpop.f32.mrb[16].mxu1  ;;  %v305_v37 = vpop.f32.mrb[17].mxu0  ;;  %6148 = vmatmul.mubr.msk.f32.gmra.mrb[122].mxu0 %vm70_vm3, %v7416_v42 }
 0x101   :  { %v8082_v59 = vadd.f32 %v5808_v35, %v305_v37  ;;  %v513_v60 = vpop.f32.mrb[17].mxu1  ;;  %6198 = vmatmul.mubr.msk.f32.gmra.mrb[122].mxu1 %vm70_vm3, %v7416_v42  ;;  %6150 = vmatprep.mubr.msk.f32.mxu0 %vm70_vm3, %v7423_v43 }
 0x102   :  { %v8088_v40 = vadd.f32 %v5755_v36, %v513_v60  ;;  %6200 = vmatprep.mubr.msk.f32.mxu1 %vm70_vm3, %v7423_v43 }
 0x103   :  { %v5761_v41 = vpop.f32.mrb[18].mxu0 }
 0x104   :  { %v5811_v62 = vpop.f32.mrb[18].mxu1  ;;  %v315_v0 = vpop.f32.mrb[19].mxu0  ;;  %6151 = vmatmul.mubr.msk.f32.gmra.mrb[124].mxu0 %vm70_vm3, %v7434_v44 }
 0x105   :  { %v8094_v1 = vadd.f32 %v5811_v62, %v315_v0  ;;  %v523_v2 = vpop.f32.mrb[19].mxu1  ;;  %6201 = vmatmul.mubr.msk.f32.gmra.mrb[124].mxu1 %vm70_vm3, %v7434_v44  ;;  %6153 = vmatprep.mubr.msk.f32.mxu0 %vm70_vm3, %v7441_v45 }
 0x106   :  { %v8100_v42 = vadd.f32 %v5758_v39, %v523_v2  ;;  %6203 = vmatprep.mubr.msk.f32.mxu1 %vm70_vm3, %v7441_v45 }
 0x107   :  { %v5764_v43 = vpop.f32.mrb[20].mxu0 }
 0x108   :  { %v5814_v4 = vpop.f32.mrb[20].mxu1  ;;  %v325_v6 = vpop.f32.mrb[21].mxu0  ;;  %6154 = vmatmul.mubr.msk.f32.gmra.mrb[126].mxu0 %vm70_vm3, %v7452_v46 }
 0x109   :  { %v8106_v7 = vadd.f32 %v5814_v4, %v325_v6  ;;  %v533_v8 = vpop.f32.mrb[21].mxu1  ;;  %6204 = vmatmul.mubr.msk.f32.gmra.mrb[126].mxu1 %vm70_vm3, %v7452_v46  ;;  %6156 = vmatprep.mubr.msk.f32.mxu0 %vm70_vm3, %v7459_v47 }
 0x10a   :  { %v8112_v44 = vadd.f32 %v5761_v41, %v533_v8  ;;  %6206 = vmatprep.mubr.msk.f32.mxu1 %vm70_vm3, %v7459_v47 }
 0x10b   :  { %v5767_v45 = vpop.f32.mrb[22].mxu0 }
 0x10c   :  { %v5817_v11 = vpop.f32.mrb[22].mxu1  ;;  %v335_v13 = vpop.f32.mrb[23].mxu0  ;;  %6157 = vmatmul.mubr.msk.f32.gmra.mrb[128].mxu0 %vm70_vm3, %v7470_v48 }
 0x10d   :  { %v8118_v14 = vadd.f32 %v5817_v11, %v335_v13  ;;  %v543_v15 = vpop.f32.mrb[23].mxu1  ;;  %6207 = vmatmul.mubr.msk.f32.gmra.mrb[128].mxu1 %vm70_vm3, %v7470_v48  ;;  %6159 = vmatprep.mubr.msk.f32.mxu0 %vm70_vm3, %v7477_v49 }
 0x10e   :  { %v8124_v46 = vadd.f32 %v5764_v43, %v543_v15  ;;  %6209 = vmatprep.mubr.msk.f32.mxu1 %vm70_vm3, %v7477_v49 }
 0x10f   :  { %v5770_v47 = vpop.f32.mrb[24].mxu0 }
 0x110   :  { %v5820_v17 = vpop.f32.mrb[24].mxu1  ;;  %v345_v21 = vpop.f32.mrb[25].mxu0  ;;  %6160 = vmatmul.mubr.msk.f32.gmra.mrb[130].mxu0 %vm70_vm3, %v7488_v50 }
 0x111   :  { %v553_v18 = vpop.f32.mrb[25].mxu1  ;;  %6210 = vmatmul.mubr.msk.f32.gmra.mrb[130].mxu1 %vm70_vm3, %v7488_v50  ;;  %6162 = vmatprep.mubr.msk.f32.mxu0 %vm70_vm3, %v7495_v51 }
 0x112   :  { %v8134_v48 = vadd.f32 %v5767_v45, %v553_v18  ;;  %6212 = vmatprep.mubr.msk.f32.mxu1 %vm70_vm3, %v7495_v51 }
 0x113   :  { %v5773_v19 = vpop.f32.mrb[26].mxu0 }
 0x114   :  { %v353_v49 = vpop.f32.mrb[27].mxu0  ;;  %6163 = vmatmul.mubr.msk.f32.gmra.mrb[132].mxu0 %vm70_vm3, %v7506_v52  ;;  %v5823_v23 = vpop.f32.mrb[26].mxu1 }
 0x115   :  { %6213 = vmatmul.mubr.msk.f32.gmra.mrb[132].mxu1 %vm70_vm3, %v7506_v52  ;;  %v562_v29 = vpop.f32.mrb[27].mxu1  ;;  %6165 = vmatprep.mubr.msk.f32.mxu0 %vm70_vm3, %v7513_v53 }
 0x116   :  { %6215 = vmatprep.mubr.msk.f32.mxu1 %vm70_vm3, %v7513_v53 }
 0x117   :  { %v5834_v50 = vpop.f32.mrb[28].mxu0 }
 0x118   :  { %v667_v24 = vpop.f32.mrb[29].mxu0  ;;  %6166 = vmatmul.mubr.msk.f32.gmra.mrb[134].mxu0 %vm70_vm3, %v7524_v54  ;;  %v5884_v51 = vpop.f32.mrb[28].mxu1 }
 0x119   :  { %6216 = vmatmul.mubr.msk.f32.gmra.mrb[134].mxu1 %vm70_vm3, %v7524_v54  ;;  %v900_v25 = vpop.f32.mrb[29].mxu1  ;;  %6168 = vmatprep.mubr.msk.f32.mxu0 %vm70_vm3, %v7531_v55 }
 0x11a   :  { %6218 = vmatprep.mubr.msk.f32.mxu1 %vm70_vm3, %v7531_v55 }
 0x11b   :  { %v5837_v52 = vpop.f32.mrb[30].mxu0 }
 0x11c   :  { %v803_v27 = vadd.f32 %v5837_v52, %v8004_v63  ;;  %v675_v53 = vpop.f32.mrb[31].mxu0  ;;  %6169 = vmatmul.mubr.msk.f32.gmra.mrb[136].mxu0 %vm70_vm3, %v7542_v56  ;;  %v5887_v36 = vpop.f32.mrb[30].mxu1 }
 0x11d   :  { %v802_v30 = vadd.f32 %v675_v53, %v7988_v34  ;;  %6219 = vmatmul.mubr.msk.f32.gmra.mrb[136].mxu1 %vm70_vm3, %v7542_v56  ;;  %v908_v54 = vpop.f32.mrb[31].mxu1  ;;  %6171 = vmatprep.mubr.msk.f32.mxu0 %vm70_vm3, %v7549_v57 }
 0x11e   :  { %6221 = vmatprep.mubr.msk.f32.mxu1 %vm70_vm3, %v7549_v57 }
 0x11f   :  { %v8164_v55 = vadd.f32 %v5887_v36, %v802_v30  ;;  %v5840_v63 = vpop.f32.mrb[32].mxu0 }
 0x120   :  { %v805_v9 = vadd.f32 %v5840_v63, %v8016_v5  ;;  %v5890_v32 = vpop.f32.mrb[32].mxu1  ;;  %v685_v39 = vpop.f32.mrb[33].mxu0  ;;  %6172 = vmatmul.mubr.msk.f32.gmra.mrb[138].mxu0 %vm70_vm3, %v7560_v58 }
 0x121   :  { %v804_v34 = vadd.f32 %v685_v39, %v7998_v61  ;;  %v917_v56 = vpop.f32.mrb[33].mxu1  ;;  %6222 = vmatmul.mubr.msk.f32.gmra.mrb[138].mxu1 %vm70_vm3, %v7560_v58 }
 0x122   :  { %v8172_v35 = vadd.f32 %v917_v56, %v803_v27 }
 0x123   :  { %v5843_v37 = vpop.f32.mrb[34].mxu0  ;;  %v8174_v57 = vadd.f32 %v5890_v32, %v804_v34 }
 0x124   :  { %v807_v60 = vadd.f32 %v5843_v37, %v8028_v12  ;;  %v5893_v41 = vpop.f32.mrb[34].mxu1  ;;  %v695_v5 = vpop.f32.mrb[35].mxu0 }
 0x125   :  { %v806_v62 = vadd.f32 %v695_v5, %v8010_v3  ;;  %v927_v0 = vpop.f32.mrb[35].mxu1 }
 0x126   :  { %v8178_v2 = vadd.f32 %v927_v0, %v805_v9 }
 0x127   :  { %v5846_v43 = vpop.f32.mrb[36].mxu0  ;;  %v8180_v61 = vadd.f32 %v5893_v41, %v806_v62 }
 0x128   :  { %v809_v4 = vadd.f32 %v5846_v43, %v8040_v20  ;;  %v5896_v58 = vpop.f32.mrb[36].mxu1  ;;  %v705_v6 = vpop.f32.mrb[37].mxu0 }
 0x129   :  { %v808_v8 = vadd.f32 %v705_v6, %v8022_v10  ;;  %v937_v45 = vpop.f32.mrb[37].mxu1 }
 0x12a   :  { %v8184_v11 = vadd.f32 %v937_v45, %v807_v60 }
 0x12b   :  { %v5849_v12 = vpop.f32.mrb[38].mxu0  ;;  %v8186_v13 = vadd.f32 %v5896_v58, %v808_v8 }
 0x12c   :  { %v811_v3 = vadd.f32 %v5849_v12, %v8052_v28  ;;  %v5899_v15 = vpop.f32.mrb[38].mxu1  ;;  %v715_v47 = vpop.f32.mrb[39].mxu0 }
 0x12d   :  { %v810_v17 = vadd.f32 %v715_v47, %v8034_v16  ;;  %v947_v21 = vpop.f32.mrb[39].mxu1 }
 0x12e   :  { %v8190_v18 = vadd.f32 %v947_v21, %v809_v4 }
 0x12f   :  { %v5852_v20 = vpop.f32.mrb[40].mxu0  ;;  %v8192_v19 = vadd.f32 %v5899_v15, %v810_v17 }
 0x130   :  { %v813_v10 = vadd.f32 %v5852_v20, %v8064_v33  ;;  %v5902_v49 = vpop.f32.mrb[40].mxu1  ;;  %v725_v23 = vpop.f32.mrb[41].mxu0 }
 0x131   :  { %v812_v29 = vadd.f32 %v725_v23, %v8046_v22  ;;  %v957_v50 = vpop.f32.mrb[41].mxu1 }
 0x132   :  { %v8196_v24 = vadd.f32 %v957_v50, %v811_v3 }
 0x133   :  { %v5855_v28 = vpop.f32.mrb[42].mxu0  ;;  %v8198_v51 = vadd.f32 %v5902_v49, %v812_v29 }
 0x134   :  { %v815_v16 = vadd.f32 %v5855_v28, %v8076_v38  ;;  %v5905_v25 = vpop.f32.mrb[42].mxu1  ;;  %v735_v52 = vpop.f32.mrb[43].mxu0 }
 0x135   :  { %v814_v27 = vadd.f32 %v735_v52, %v8058_v26  ;;  %v967_v53 = vpop.f32.mrb[43].mxu1 }
 0x136   :  { %v8202_v36 = vadd.f32 %v967_v53, %v813_v10 }
 0x137   :  { %v5858_v33 = vpop.f32.mrb[44].mxu0  ;;  %v8204_v30 = vadd.f32 %v5905_v25, %v814_v27 }
 0x138   :  { %v817_v22 = vadd.f32 %v5858_v33, %v8088_v40  ;;  %v5908_v54 = vpop.f32.mrb[44].mxu1  ;;  %v745_v63 = vpop.f32.mrb[45].mxu0 }
 0x139   :  { %v816_v9 = vadd.f32 %v745_v63, %v8070_v31  ;;  %v977_v32 = vpop.f32.mrb[45].mxu1 }
 0x13a   :  { %v8208_v39 = vadd.f32 %v977_v32, %v815_v16 }
 0x13b   :  { %v5861_v38 = vpop.f32.mrb[46].mxu0  ;;  %v8210_v34 = vadd.f32 %v5908_v54, %v816_v9 }
 0x13c   :  { %v819_v26 = vadd.f32 %v5861_v38, %v8100_v42  ;;  %v5911_v56 = vpop.f32.mrb[46].mxu1  ;;  %v755_v37 = vpop.f32.mrb[47].mxu0 }
 0x13d   :  { %v818_v60 = vadd.f32 %v755_v37, %v8082_v59  ;;  %v987_v41 = vpop.f32.mrb[47].mxu1 }
 0x13e   :  { %v8214_v5 = vadd.f32 %v987_v41, %v817_v22 }
 0x13f   :  { %v5864_v40 = vpop.f32.mrb[48].mxu0  ;;  %v8216_v62 = vadd.f32 %v5911_v56, %v818_v60 }
 0x140   :  { %v821_v31 = vadd.f32 %v5864_v40, %v8112_v44  ;;  %v5914_v0 = vpop.f32.mrb[48].mxu1  ;;  %v765_v43 = vpop.f32.mrb[49].mxu0 }
 0x141   :  { %v820_v4 = vadd.f32 %v765_v43, %v8094_v1  ;;  %v997_v58 = vpop.f32.mrb[49].mxu1 }
 0x142   :  { %v8220_v6 = vadd.f32 %v997_v58, %v819_v26 }
 0x143   :  { %v5867_v42 = vpop.f32.mrb[50].mxu0  ;;  %v8222_v8 = vadd.f32 %v5914_v0, %v820_v4  ;;  %v2561_v0 = vld [vmem:[%s9343_s3 + $0x8] sm:$0xff] }
 0x144   :  { %v823_v59 = vadd.f32 %v5867_v42, %v8124_v46  ;;  %v5917_v45 = vpop.f32.mrb[50].mxu1  ;;  %v775_v12 = vpop.f32.mrb[51].mxu0  ;;  %v4904_v42 = vld [vmem:[%s9343_s3 + $0x50] sm:$0xff] }
 0x145   :  { %v822_v3 = vadd.f32 %v775_v12, %v8106_v7  ;;  %v1007_v15 = vpop.f32.mrb[51].mxu1 }
 0x146   :  { %v8226_v47 = vadd.f32 %v1007_v15, %v821_v31  ;;  %v2563_v15 = vld [vmem:[%s9343_s3 + $0x18] sm:$0xff] }
 0x147   :  { %v5870_v44 = vpop.f32.mrb[52].mxu0  ;;  %v8228_v17 = vadd.f32 %v5917_v45, %v822_v3 }
 0x148   :  { %v825_v1 = vadd.f32 %v5870_v44, %v8134_v48  ;;  %v5920_v21 = vpop.f32.mrb[52].mxu1  ;;  %v785_v20 = vpop.f32.mrb[53].mxu0 }
 0x149   :  { %v824_v10 = vadd.f32 %v785_v20, %v8118_v14  ;;  %v1017_v49 = vpop.f32.mrb[53].mxu1 }
 0x14a   :  { %v8232_v23 = vadd.f32 %v1017_v49, %v823_v59 }
 0x14b   :  { %v5873_v46 = vpop.f32.mrb[54].mxu0  ;;  %v8234_v29 = vadd.f32 %v5920_v21, %v824_v10  ;;  %v4906_v10 = vld [vmem:[%s9343_s3 + $0x60] sm:$0xff] }
 0x14c   :  { %v5923_v50 = vpop.f32.mrb[54].mxu1  ;;  %v795_v7 = vpop.f32.mrb[55].mxu0 }
 0x14d   :  { %v1027_v28 = vpop.f32.mrb[55].mxu1 }
 0x14e   :  { %v8236_v16 = vadd.f32 %v1027_v28, %v825_v1  ;;  %v2565_v28 = vld [vmem:[%s9343_s3 + $0x28] sm:$0xff] }
 0x14f   :  { %v5934_v25 = vpop.f32.mrb[56].mxu0 }
 0x150   :  { %v1133_v52 = vpop.f32.mrb[57].mxu0  ;;  %v8238_v27 = vpop.f32.mrb[56].mxu1 }
 0x151   :  { %v8240_v48 = vpop.f32.mrb[57].mxu1 }
 0x153   :  { %v5937_v53 = vpop.f32.mrb[58].mxu0 }
 0x154   :  { %v1141_v33 = vpop.f32.mrb[59].mxu0  ;;  %v8242_v14 = vpop.f32.mrb[58].mxu1 }
 0x155   :  { %v8244_v22 = vpop.f32.mrb[59].mxu1 }
 0x157   :  { %v5940_v54 = vpop.f32.mrb[60].mxu0 }
 0x158   :  { %v8247_v63 = vadd.f32 %v5940_v54, %v8172_v35  ;;  %v1149_v9 = vpop.f32.mrb[61].mxu0  ;;  %v8249_v32 = vpop.f32.mrb[60].mxu1  ;;  %v4908_v54 = vld [vmem:[%s9343_s3 + $0x70] sm:$0xff] }
 0x159   :  { %v8252_v38 = vadd.f32 %v1149_v9, %v8164_v55  ;;  %v8254_v26 = vpop.f32.mrb[61].mxu1  ;;  %v2560_v55 = vld [vmem:[%s9343_s3] sm:$0xff] }
 0x15a   :  { %v6830_v58 = vpack.c.bf16 %v2561_v0, %v2560_v55  ;;  %v2567_v55 = vld [vmem:[%s9343_s3 + $0x38] sm:$0xff] }
 0x15b   :  { %v5943_v56 = vpop.f32.mrb[62].mxu0 }
 0x15c   :  { %v8257_v37 = vadd.f32 %v5943_v56, %v8178_v2  ;;  %v1159_v60 = vpop.f32.mrb[63].mxu0  ;;  %v8259_v41 = vpop.f32.mrb[62].mxu1  ;;  %v4903_v2 = vld [vmem:[%s9343_s3 + $0x48] sm:$0xff]  ;;  %6831 = vmatprep.subr.bf16.mxu0 %v6830_v58 }
 0x15d   :  { %v8262_v40 = vadd.f32 %v1159_v60, %v8174_v57  ;;  %v8264_v35 = vpop.f32.mrb[63].mxu1  ;;  %v6846_v12 = vpack.c.bf16 %v4904_v42, %v4903_v2  ;;  %6833 = vmatpush3.bf16.msra.mxu0 %v6830_v58  ;;  %v4910_v42 = vld [vmem:[%s9343_s3 + $0x80] sm:$0xff] }
 0x15f   :  { %v5946_v31 = vpop.f32.mrb[64].mxu0  ;;  %6847 = vmatprep.subr.bf16.mxu1 %v6846_v12 }
 0x160   :  { %v8276_v43 = vadd.f32 %v5946_v31, %v8184_v11  ;;  %v1169_v57 = vpop.f32.mrb[65].mxu0  ;;  %v8278_v4 = vpop.f32.mrb[64].mxu1  ;;  %v2562_v11 = vld [vmem:[%s9343_s3 + $0x10] sm:$0xff]  ;;  %6849 = vmatpush3.bf16.msra.mxu1 %v6846_v12 }
 0x161   :  { %v8284_v59 = vadd.f32 %v1169_v57, %v8180_v61  ;;  %v8286_v45 = vpop.f32.mrb[65].mxu1  ;;  %v4905_v61 = vld [vmem:[%s9343_s3 + $0x58] sm:$0xff]  ;;  %v6834_v20 = vpack.c.bf16 %v2563_v15, %v2562_v11 }
 0x162   :  { %v6850_v50 = vpack.c.bf16 %v4906_v10, %v4905_v61 }
 0x163   :  { %v5949_v3 = vpop.f32.mrb[66].mxu0  ;;  %6835 = vmatprep.subr.bf16.mxu0 %v6834_v20 }
 0x164   :  { %v8298_v44 = vadd.f32 %v5949_v3, %v8190_v18  ;;  %v1179_v1 = vpop.f32.mrb[67].mxu0  ;;  %v8300_v21 = vpop.f32.mrb[66].mxu1  ;;  %6837 = vmatpush3.bf16.msra.mxu0 %v6834_v20  ;;  %6851 = vmatprep.subr.bf16.mxu1 %v6850_v50  ;;  %v2564_v18 = vld [vmem:[%s9343_s3 + $0x20] sm:$0xff] }
 0x165   :  { %v8306_v49 = vadd.f32 %v1179_v1, %v8186_v13  ;;  %v8308_v46 = vpop.f32.mrb[67].mxu1  ;;  %v4907_v13 = vld [vmem:[%s9343_s3 + $0x68] sm:$0xff]  ;;  %6853 = vmatpush3.bf16.msra.mxu1 %v6850_v50  ;;  %v6838_v33 = vpack.c.bf16 %v2565_v28, %v2564_v18 }
 0x166   :  { %v6854_v60 = vpack.c.bf16 %v4908_v54, %v4907_v13  ;;  %v4911_v50 = vld [vmem:[%s9343_s3 + $0x88] sm:$0xff] }
 0x167   :  { %v5952_v7 = vpop.f32.mrb[68].mxu0  ;;  %6839 = vmatprep.subr.bf16.mxu0 %v6838_v33 }
 0x168   :  { %v8320_v25 = vadd.f32 %v5952_v7, %v8196_v24  ;;  %v1189_v52 = vpop.f32.mrb[69].mxu0  ;;  %v8322_v53 = vpop.f32.mrb[68].mxu1  ;;  %6841 = vmatpush3.bf16.msra.mxu0 %v6838_v33  ;;  %6855 = vmatprep.subr.bf16.mxu1 %v6854_v60  ;;  %v2566_v24 = vld [vmem:[%s9343_s3 + $0x30] sm:$0xff] }
 0x169   :  { %v8328_v9 = vadd.f32 %v1189_v52, %v8192_v19  ;;  %v8330_v56 = vpop.f32.mrb[69].mxu1  ;;  %v4909_v19 = vld [vmem:[%s9343_s3 + $0x78] sm:$0xff]  ;;  %6857 = vmatpush3.bf16.msra.mxu1 %v6854_v60  ;;  %v6842_v58 = vpack.c.bf16 %v2567_v55, %v2566_v24 }
 0x16a   :  { %v6858_v11 = vpack.c.bf16 %v4910_v42, %v4909_v19 }
 0x16b   :  { %v5955_v31 = vpop.f32.mrb[70].mxu0  ;;  %6843 = vmatprep.subr.bf16.mxu0 %v6842_v58 }
 0x16c   :  { %v8342_v0 = vadd.f32 %v5955_v31, %v8202_v36  ;;  %v1199_v2 = vpop.f32.mrb[71].mxu0  ;;  %v8344_v57 = vpop.f32.mrb[70].mxu1  ;;  %6859 = vmatprep.subr.bf16.mxu1 %v6858_v11  ;;  %6845 = vmatpush3.bf16.msra.mxu0 %v6842_v58 }
 0x16d   :  { %v8350_v12 = vadd.f32 %v1199_v2, %v8198_v51  ;;  %v8352_v3 = vpop.f32.mrb[71].mxu1  ;;  %6861 = vmatpush3.bf16.msra.mxu1 %v6858_v11  ;;  %v2568_v51 = vld [vmem:[%s9343_s3 + $0x40] sm:$0xff] }
 0x16e   :  { %6240 = vmatprep.subr.mxu0 %v2568_v51  ;;  %6276 = vmatprep.subr.mxu1 %v4911_v50 }
 0x16f   :  { %v5958_v15 = vpop.f32.mrb[72].mxu0 }
 0x170   :  { %v8355_v36 = vadd.f32 %v5958_v15, %v8208_v39  ;;  %v1209_v61 = vpop.f32.mrb[73].mxu0  ;;  %v8357_v1 = vpop.f32.mrb[72].mxu1  ;;  %6241 = vmatpush3.msra.mxu0 %v2568_v51 }
 0x171   :  { %v8360_v20 = vadd.f32 %v1209_v61, %v8204_v30  ;;  %v8362_v10 = vpop.f32.mrb[73].mxu1  ;;  %6277 = vmatpush3.msra.mxu1 %v4911_v50 }
 0x173   :  { %v5961_v39 = vpop.f32.mrb[74].mxu0 }
 0x174   :  { %v8371_v7 = vadd.f32 %v5961_v39, %v8214_v5  ;;  %v1219_v18 = vpop.f32.mrb[75].mxu0  ;;  %v8373_v30 = vpop.f32.mrb[74].mxu1 }
 0x175   :  { %v8376_v28 = vadd.f32 %v1219_v18, %v8210_v34  ;;  %v8378_v13 = vpop.f32.mrb[75].mxu1 }
 0x177   :  { %v5964_v52 = vpop.f32.mrb[76].mxu0 }
 0x178   :  { %v8381_v33 = vadd.f32 %v5964_v52, %v8220_v6  ;;  %v1229_v54 = vpop.f32.mrb[77].mxu0  ;;  %v8383_v60 = vpop.f32.mrb[76].mxu1 }
 0x179   :  { %v8386_v31 = vadd.f32 %v1229_v54, %v8216_v62  ;;  %v8388_v5 = vpop.f32.mrb[77].mxu1 }
 0x17b   :  { %v5967_v24 = vpop.f32.mrb[78].mxu0 }
 0x17c   :  { %v8391_v55 = vadd.f32 %v5967_v24, %v8226_v47  ;;  %v1239_v34 = vpop.f32.mrb[79].mxu0  ;;  %v8393_v19 = vpop.f32.mrb[78].mxu1 }
 0x17d   :  { %v8396_v2 = vadd.f32 %v1239_v34, %v8222_v8  ;;  %v8398_v6 = vpop.f32.mrb[79].mxu1 }
 0x17f   :  { %v5970_v58 = vpop.f32.mrb[80].mxu0 }
 0x180   :  { %v8401_v42 = vadd.f32 %v5970_v58, %v8232_v23  ;;  %v1249_v62 = vpop.f32.mrb[81].mxu0  ;;  %v6020_v11 = vpop.f32.mrb[80].mxu1 }
 0x181   :  { %v8404_v15 = vadd.f32 %v1249_v62, %v8228_v17  ;;  %v1486_v61 = vpop.f32.mrb[81].mxu1  ;;  %v4924_v17 = vld [vmem:[%s9343_s3 + $0x90] sm:$0xff] }
 0x182   :  { %9357 = vst [vmem:[#allocation2_spill] sm:$0xff] %v8401_v42 }
 0x183   :  { %v5973_v47 = vpop.f32.mrb[82].mxu0 }
 0x184   :  { %v8407_v51 = vadd.f32 %v5973_v47, %v8236_v16  ;;  %v1259_v50 = vpop.f32.mrb[83].mxu0  ;;  %v6023_v39 = vpop.f32.mrb[82].mxu1  ;;  %v4925_v16 = vld [vmem:[%s9343_s3 + $0x98] sm:$0xff]  ;;  %v4946_v47 = vld [vmem:[%s9343_s3 + $0xe0] sm:$0xff] }
 0x185   :  { %v8410_v8 = vadd.f32 %v1259_v50, %v8234_v29  ;;  %v1494_v18 = vpop.f32.mrb[83].mxu1  ;;  %v4945_v29 = vld [vmem:[%s9343_s3 + $0xd8] sm:$0xff]  ;;  %v8423_v61 = vpack.c.bf16 %v4925_v16, %v4924_v17 }
 0x186   :  { %9358 = vst [vmem:[#allocation3_spill] sm:$0xff] %v8407_v51  ;;  %v8429_v18 = vpack.c.bf16 %v4946_v47, %v4945_v29 }
 0x187   :  { %9359 = vst [vmem:[#allocation4_spill] sm:$0xff] %v8410_v8  ;;  %v6034_v52 = vpop.f32.mrb[84].mxu0  ;;  %9360 = vst [vmem:[#allocation5_spill] sm:$0xff] %v8423_v61  ;;  %6863 = vmatprep.subr.bf16.mxu0 %v8423_v61 }
 0x188   :  { %v1710_v23 = vadd.f32 %v6034_v52, %v8240_v48  ;;  %v1575_v54 = vpop.f32.mrb[85].mxu0  ;;  %v6084_v24 = vpop.f32.mrb[84].mxu1  ;;  %9361 = vst [vmem:[#allocation6_spill] sm:$0xff] %v8429_v18  ;;  %6879 = vmatprep.subr.bf16.mxu1 %v8429_v18 }
 0x189   :  { %v1808_v34 = vpop.f32.mrb[85].mxu1 }
 0x18b   :  { %v6037_v58 = vpop.f32.mrb[86].mxu0 }
 0x18c   :  { %v1712_v62 = vadd.f32 %v6037_v58, %v8244_v22  ;;  %v6087_v11 = vpop.f32.mrb[86].mxu1  ;;  %v1584_v48 = vpop.f32.mrb[87].mxu0 }
 0x18d   :  { %v1711_v50 = vadd.f32 %v8238_v27, %v1584_v48  ;;  %v1816_v39 = vpop.f32.mrb[87].mxu1 }
 0x18e   :  { %v8431_v52 = vadd.f32 %v1816_v39, %v1710_v23 }
 0x18f   :  { %v6040_v54 = vpop.f32.mrb[88].mxu0  ;;  %v8434_v24 = vadd.f32 %v6087_v11, %v1711_v50 }
 0x190   :  { %v1714_v22 = vadd.f32 %v6040_v54, %v8254_v26  ;;  %v6090_v34 = vpop.f32.mrb[88].mxu1  ;;  %v1594_v58 = vpop.f32.mrb[89].mxu0 }
 0x191   :  { %v1713_v17 = vadd.f32 %v8242_v14, %v1594_v58  ;;  %v1826_v16 = vpop.f32.mrb[89].mxu1 }
 0x192   :  { %v8439_v27 = vadd.f32 %v1826_v16, %v1712_v62 }
 0x193   :  { %v6043_v29 = vpop.f32.mrb[90].mxu0  ;;  %v8441_v48 = vadd.f32 %v6090_v34, %v1713_v17 }
 0x194   :  { %v1716_v23 = vadd.f32 %v6043_v29, %v8264_v35  ;;  %v6093_v47 = vpop.f32.mrb[90].mxu1  ;;  %v1604_v39 = vpop.f32.mrb[91].mxu0 }
 0x195   :  { %v1715_v11 = vadd.f32 %v8249_v32, %v1604_v39  ;;  %v1836_v50 = vpop.f32.mrb[91].mxu1 }
 0x196   :  { %v8445_v51 = vadd.f32 %v1836_v50, %v1714_v22 }
 0x197   :  { %v6046_v26 = vpop.f32.mrb[92].mxu0  ;;  %v8447_v54 = vadd.f32 %v6093_v47, %v1715_v11 }
 0x198   :  { %v1718_v14 = vadd.f32 %v6046_v26, %v8286_v45  ;;  %v6096_v58 = vpop.f32.mrb[92].mxu1  ;;  %v1614_v62 = vpop.f32.mrb[93].mxu0 }
 0x199   :  { %v1717_v16 = vadd.f32 %v8259_v41, %v1614_v62  ;;  %v1846_v34 = vpop.f32.mrb[93].mxu1 }
 0x19a   :  { %v8451_v17 = vadd.f32 %v1846_v34, %v1716_v23 }
 0x19b   :  { %v6049_v35 = vpop.f32.mrb[94].mxu0  ;;  %v8453_v29 = vadd.f32 %v6096_v58, %v1717_v16 }
 0x19c   :  { %v1720_v32 = vadd.f32 %v6049_v35, %v8308_v46  ;;  %v6099_v39 = vpop.f32.mrb[94].mxu1  ;;  %v1624_v22 = vpop.f32.mrb[95].mxu0 }
 0x19d   :  { %v1719_v50 = vadd.f32 %v8278_v4, %v1624_v22  ;;  %v1856_v47 = vpop.f32.mrb[95].mxu1 }
 0x19e   :  { %v8457_v11 = vadd.f32 %v1856_v47, %v1718_v14 }
 0x19f   :  { %v6052_v45 = vpop.f32.mrb[96].mxu0  ;;  %v8459_v26 = vadd.f32 %v6099_v39, %v1719_v50 }
 0x1a0   :  { %v1722_v41 = vadd.f32 %v6052_v45, %v8330_v56  ;;  %v6102_v62 = vpop.f32.mrb[96].mxu1  ;;  %v1634_v23 = vpop.f32.mrb[97].mxu0 }
 0x1a1   :  { %v1721_v34 = vadd.f32 %v8300_v21, %v1634_v23  ;;  %v1866_v58 = vpop.f32.mrb[97].mxu1 }
 0x1a2   :  { %v8463_v16 = vadd.f32 %v1866_v58, %v1720_v32 }
 0x1a3   :  { %v6055_v46 = vpop.f32.mrb[98].mxu0  ;;  %v8465_v35 = vadd.f32 %v6102_v62, %v1721_v34 }
 0x1a4   :  { %v1724_v4 = vadd.f32 %v6055_v46, %v8352_v3  ;;  %v6105_v22 = vpop.f32.mrb[98].mxu1  ;;  %v1644_v14 = vpop.f32.mrb[99].mxu0 }
 0x1a5   :  { %v1723_v47 = vadd.f32 %v8322_v53, %v1644_v14  ;;  %v1876_v39 = vpop.f32.mrb[99].mxu1 }
 0x1a6   :  { %v8469_v50 = vadd.f32 %v1876_v39, %v1722_v41 }
 0x1a7   :  { %v6058_v56 = vpop.f32.mrb[100].mxu0  ;;  %v8471_v45 = vadd.f32 %v6105_v22, %v1723_v47 }
 0x1a8   :  { %v1726_v21 = vadd.f32 %v6058_v56, %v8362_v10  ;;  %v6108_v23 = vpop.f32.mrb[100].mxu1  ;;  %v1654_v32 = vpop.f32.mrb[101].mxu0 }
 0x1a9   :  { %v1725_v58 = vadd.f32 %v8344_v57, %v1654_v32  ;;  %v1886_v62 = vpop.f32.mrb[101].mxu1 }
 0x1aa   :  { %v8475_v34 = vadd.f32 %v1886_v62, %v1724_v4 }
 0x1ab   :  { %v6061_v3 = vpop.f32.mrb[102].mxu0  ;;  %v8477_v46 = vadd.f32 %v6108_v23, %v1725_v58 }
 0x1ac   :  { %v1728_v53 = vadd.f32 %v6061_v3, %v8378_v13  ;;  %v6111_v14 = vpop.f32.mrb[102].mxu1  ;;  %v1664_v41 = vpop.f32.mrb[103].mxu0 }
 0x1ad   :  { %v1727_v39 = vadd.f32 %v8357_v1, %v1664_v41  ;;  %v1896_v22 = vpop.f32.mrb[103].mxu1 }
 0x1ae   :  { %v8481_v47 = vadd.f32 %v1896_v22, %v1726_v21 }
 0x1af   :  { %v6064_v10 = vpop.f32.mrb[104].mxu0  ;;  %v8483_v56 = vadd.f32 %v6111_v14, %v1727_v39 }
 0x1b0   :  { %v1730_v57 = vadd.f32 %v6064_v10, %v8388_v5  ;;  %v6114_v32 = vpop.f32.mrb[104].mxu1  ;;  %v1674_v4 = vpop.f32.mrb[105].mxu0 }
 0x1b1   :  { %v1729_v62 = vadd.f32 %v8373_v30, %v1674_v4  ;;  %v1906_v23 = vpop.f32.mrb[105].mxu1 }
 0x1b2   :  { %v8487_v58 = vadd.f32 %v1906_v23, %v1728_v53 }
 0x1b3   :  { %v6067_v13 = vpop.f32.mrb[106].mxu0  ;;  %v8489_v3 = vadd.f32 %v6114_v32, %v1729_v62 }
 0x1b4   :  { %v1732_v1 = vadd.f32 %v6067_v13, %v8398_v6  ;;  %v6117_v41 = vpop.f32.mrb[106].mxu1  ;;  %v1684_v21 = vpop.f32.mrb[107].mxu0 }
 0x1b5   :  { %v1731_v22 = vadd.f32 %v8383_v60, %v1684_v21  ;;  %v1916_v14 = vpop.f32.mrb[107].mxu1 }
 0x1b6   :  { %v8493_v39 = vadd.f32 %v1916_v14, %v1730_v57 }
 0x1b7   :  { %v6070_v5 = vpop.f32.mrb[108].mxu0  ;;  %v8495_v10 = vadd.f32 %v6117_v41, %v1731_v22 }
 0x1b8   :  { %v6120_v8 = vpop.f32.mrb[108].mxu1  ;;  %v1694_v30 = vpop.f32.mrb[109].mxu0 }
 0x1b9   :  { %v1733_v53 = vadd.f32 %v8393_v19, %v1694_v30  ;;  %v1926_v4 = vpop.f32.mrb[109].mxu1 }
 0x1ba   :  { %v8498_v23 = vadd.f32 %v1926_v4, %v1732_v1 }
 0x1bb   :  { %v6073_v32 = vpop.f32.mrb[110].mxu0  ;;  %v8500_v62 = vadd.f32 %v6120_v8, %v1733_v53 }
 0x1bc   :  { %v1703_v6 = vpop.f32.mrb[111].mxu0  ;;  %v6123_v13 = vpop.f32.mrb[110].mxu1 }
 0x1bd   :  { %v1936_v42 = vpop.f32.mrb[111].mxu1 }
 0x1bf   :  { %v6134_v60 = vpop.f32.mrb[112].mxu0 }
 0x1c0   :  { %v2041_v21 = vpop.f32.mrb[113].mxu0  ;;  %v6184_v57 = vpop.f32.mrb[112].mxu1 }
 0x1c1   :  { %v2274_v14 = vpop.f32.mrb[113].mxu1 }
 0x1c3   :  { %v6137_v5 = vpop.f32.mrb[114].mxu0 }
 0x1c4   :  { %v2176_v41 = vadd.f32 %v6137_v5, %v8431_v52  ;;  %v2049_v22 = vpop.f32.mrb[115].mxu0  ;;  %v6187_v18 = vpop.f32.mrb[114].mxu1 }
 0x1c5   :  { %v2282_v61 = vpop.f32.mrb[115].mxu1 }
 0x1c7   :  { %v6140_v19 = vpop.f32.mrb[116].mxu0 }
 0x1c8   :  { %v2178_v1 = vadd.f32 %v6140_v19, %v8439_v27  ;;  %v6190_v30 = vpop.f32.mrb[116].mxu1  ;;  %v2058_v4 = vpop.f32.mrb[117].mxu0  ;;  %v8512_v27 = vld [vmem:[%s9344_s2] ss:$0 sm:$0xff] }
 0x1c9   :  { %v2177_v8 = vadd.f32 %v2058_v4, %v8434_v24  ;;  %v2290_v53 = vpop.f32.mrb[117].mxu1 }
 0x1ca   :  { %v2409_v32 = vadd.f32 %v2290_v53, %v2176_v41 }
 0x1cb   :  { %v2410_v42 = vadd.f32 %v6190_v30, %v2177_v8  ;;  %v6143_v6 = vpop.f32.mrb[118].mxu0 }
 0x1cc   :  { %v2433_v13 = vmax.f32 %v8252_v38, %v2409_v32  ;;  %v2180_v60 = vadd.f32 %v6143_v6, %v8445_v51  ;;  %v6193_v21 = vpop.f32.mrb[118].mxu1  ;;  %v2068_v52 = vpop.f32.mrb[119].mxu0 }
 0x1cd   :  { %v2434_v18 = vmax.f32 %v8247_v63, %v2410_v42  ;;  %v2179_v61 = vadd.f32 %v2068_v52, %v8441_v48  ;;  %v2300_v57 = vpop.f32.mrb[119].mxu1 }
 0x1ce   :  { %v2411_v24 = vadd.f32 %v2300_v57, %v2178_v1 }
 0x1cf   :  { %v2457_v14 = vmax.f32 %v2433_v13, %v2434_v18  ;;  %v2412_v5 = vadd.f32 %v6193_v21, %v2179_v61  ;;  %v6146_v41 = vpop.f32.mrb[120].mxu0 }
 0x1d0   :  { %v2435_v38 = vmax.f32 %v8262_v40, %v2411_v24  ;;  %v2182_v51 = vadd.f32 %v6146_v41, %v8451_v17  ;;  %v6196_v22 = vpop.f32.mrb[120].mxu1  ;;  %v2078_v19 = vpop.f32.mrb[121].mxu0 }
 0x1d1   :  { %v2476_v63 = vadd.f32 %v8512_v27, %v2457_v14  ;;  %v2436_v48 = vmax.f32 %v8257_v37, %v2412_v5  ;;  %v2181_v30 = vadd.f32 %v2078_v19, %v8447_v54  ;;  %v2310_v4 = vpop.f32.mrb[121].mxu1 }
 0x1d2   :  { %v2413_v8 = vadd.f32 %v2310_v4, %v2180_v60 }
 0x1d3   :  { %v2488_v53 = vsub.f32 0.0, %v2476_v63  ;;  %v2458_v32 = vmax.f32 %v2435_v38, %v2436_v48  ;;  %v2414_v1 = vadd.f32 %v6196_v22, %v2181_v30  ;;  %v6149_v42 = vpop.f32.mrb[122].mxu0 }
 0x1d4   :  { %v2437_v6 = vmax.f32 %v8284_v59, %v2413_v8  ;;  %v2184_v40 = vadd.f32 %v6149_v42, %v8457_v11  ;;  %v6199_v13 = vpop.f32.mrb[122].mxu1  ;;  %v2088_v17 = vpop.f32.mrb[123].mxu0 }
 0x1d5   :  { %v2500_v21 = vmul.f32 1.442695, %v2488_v53  ;;  %v2477_v52 = vadd.f32 %v8512_v27, %v2458_v32  ;;  %v2438_v18 = vmax.f32 %v8276_v43, %v2414_v1  ;;  %v2183_v37 = vadd.f32 %v2088_v17, %v8453_v29  ;;  %v2320_v54 = vpop.f32.mrb[123].mxu1 }
 0x1d6   :  { %v2415_v61 = vadd.f32 %v2320_v54, %v2182_v51 }
 0x1d7   :  { %7090 = vpow2.f32 %v2500_v21  ;;  %v2489_v60 = vsub.f32 0.0, %v2477_v52  ;;  %v2459_v57 = vmax.f32 %v2437_v6, %v2438_v18  ;;  %v2416_v24 = vadd.f32 %v6199_v13, %v2183_v37  ;;  %v6152_v14 = vpop.f32.mrb[124].mxu0 }
 0x1d8   :  { %v2439_v59 = vmax.f32 %v8306_v49, %v2415_v61  ;;  %v2186_v11 = vadd.f32 %v6152_v14, %v8463_v16  ;;  %v6202_v5 = vpop.f32.mrb[124].mxu1  ;;  %v2098_v41 = vpop.f32.mrb[125].mxu0 }
 0x1d9   :  { %v2502_v38 = vmul.f32 1.442695, %v2489_v60  ;;  %v2478_v22 = vadd.f32 %v8512_v27, %v2459_v57  ;;  %v2440_v43 = vmax.f32 %v8298_v44, %v2416_v24  ;;  %v2185_v29 = vadd.f32 %v2098_v41, %v8459_v26  ;;  %v2330_v19 = vpop.f32.mrb[125].mxu1 }
 0x1da   :  { %v2417_v51 = vadd.f32 %v2330_v19, %v2184_v40 }
 0x1db   :  { %7092 = vpow2.f32 %v2502_v38  ;;  %v2490_v63 = vsub.f32 0.0, %v2478_v22  ;;  %v2460_v48 = vmax.f32 %v2439_v59, %v2440_v43  ;;  %v2418_v30 = vadd.f32 %v6202_v5, %v2185_v29  ;;  %v6155_v4 = vpop.f32.mrb[126].mxu0 }
 0x1dc   :  { %v2441_v49 = vmax.f32 %v8328_v9, %v2417_v51  ;;  %v2188_v16 = vadd.f32 %v6155_v4, %v8469_v50  ;;  %v6205_v8 = vpop.f32.mrb[126].mxu1  ;;  %v2108_v53 = vpop.f32.mrb[127].mxu0 }
 0x1dd   :  { %v2504_v32 = vmul.f32 1.442695, %v2490_v63  ;;  %v2479_v1 = vadd.f32 %v8512_v27, %v2460_v48  ;;  %v2442_v44 = vmax.f32 %v8320_v25, %v2418_v30  ;;  %v2187_v26 = vadd.f32 %v2108_v53, %v8465_v35  ;;  %v2340_v42 = vpop.f32.mrb[127].mxu1 }
 0x1de   :  { %v2419_v6 = vadd.f32 %v2340_v42, %v2186_v11 }
 0x1df   :  { %7094 = vpow2.f32 %v2504_v32  ;;  %v2491_v40 = vsub.f32 0.0, %v2479_v1  ;;  %v2461_v13 = vmax.f32 %v2441_v49, %v2442_v44  ;;  %v2420_v17 = vadd.f32 %v6205_v8, %v2187_v26  ;;  %v6158_v21 = vpop.f32.mrb[128].mxu0 }
 0x1e0   :  { %v2443_v9 = vmax.f32 %v8350_v12, %v2419_v6  ;;  %v2190_v50 = vadd.f32 %v6158_v21, %v8475_v34  ;;  %v6208_v52 = vpop.f32.mrb[128].mxu1  ;;  %v2118_v18 = vpop.f32.mrb[129].mxu0 }
 0x1e1   :  { %v7091_v37 = vpop.eup %7090  ;;  %v2506_v54 = vmul.f32 1.442695, %v2491_v40  ;;  %v2480_v61 = vadd.f32 %v8512_v27, %v2461_v13  ;;  %v2444_v25 = vmax.f32 %v8342_v0, %v2420_v17  ;;  %v2189_v35 = vadd.f32 %v2118_v18, %v8471_v45  ;;  %v2350_v60 = vpop.f32.mrb[129].mxu1  ;;  %v4927_v17 = vld [vmem:[%s9343_s3 + $0xa8] sm:$0xff] }
 0x1e2   :  { %v2524_v57 = vadd.f32 1.0, %v7091_v37  ;;  %v2421_v24 = vadd.f32 %v2350_v60, %v2188_v16 }
 0x1e3   :  { %7096 = vpow2.f32 %v2506_v54  ;;  %v2492_v14 = vsub.f32 0.0, %v2480_v61  ;;  %v2462_v59 = vmax.f32 %v2443_v9, %v2444_v25  ;;  %v2422_v11 = vadd.f32 %v6208_v52, %v2189_v35  ;;  %v6161_v12 = vpop.f32.mrb[130].mxu0  ;;  %v4947_v25 = vld [vmem:[%s9343_s3 + $0xe8] sm:$0xff] }
 0x1e4   :  { %7098 = vrcp.f32 %v2524_v57  ;;  %v2445_v34 = vmax.f32 %v8360_v20, %v2421_v24  ;;  %v2192_v5 = vadd.f32 %v6161_v12, %v8481_v47  ;;  %v6211_v41 = vpop.f32.mrb[130].mxu1  ;;  %v2128_v38 = vpop.f32.mrb[131].mxu0 }
 0x1e5   :  { %v7093_v22 = vpop.eup %7092  ;;  %v2508_v43 = vmul.f32 1.442695, %v2492_v14  ;;  %v2481_v0 = vadd.f32 %v8512_v27, %v2462_v59  ;;  %v2446_v45 = vmax.f32 %v8355_v36, %v2422_v11  ;;  %v2191_v29 = vadd.f32 %v2128_v38, %v8477_v46  ;;  %v2360_v19 = vpop.f32.mrb[131].mxu1 }
 0x1e6   :  { %v2525_v51 = vadd.f32 1.0, %v7093_v22  ;;  %v2423_v63 = vadd.f32 %v2360_v19, %v2190_v50  ;;  %v4950_v19 = vld [vmem:[%s9343_s3 + $0x100] sm:$0xff] }
 0x1e7   :  { %7100 = vpow2.f32 %v2508_v43  ;;  %v2493_v48 = vsub.f32 0.0, %v2481_v0  ;;  %v2463_v30 = vmax.f32 %v2445_v34, %v2446_v45  ;;  %v2424_v4 = vadd.f32 %v6211_v41, %v2191_v29  ;;  %v6164_v20 = vpop.f32.mrb[132].mxu0  ;;  %v4928_v41 = vld [vmem:[%s9343_s3 + $0xb0] sm:$0xff] }
 0x1e8   :  { %7102 = vrcp.f32 %v2525_v51  ;;  %v2447_v47 = vmax.f32 %v8376_v28, %v2423_v63  ;;  %v2194_v49 = vadd.f32 %v6164_v20, %v8487_v58  ;;  %v6214_v16 = vpop.f32.mrb[132].mxu1  ;;  %v2138_v8 = vpop.f32.mrb[133].mxu0  ;;  %v4926_v58 = vld [vmem:[%s9343_s3 + $0xa0] sm:$0xff] }
 0x1e9   :  { %v7095_v53 = vpop.eup %7094  ;;  %v2510_v32 = vmul.f32 1.442695, %v2493_v48  ;;  %v2482_v36 = vadd.f32 %v8512_v27, %v2463_v30  ;;  %v2448_v46 = vmax.f32 %v8371_v7, %v2424_v4  ;;  %v2193_v1 = vadd.f32 %v2138_v8, %v8483_v56  ;;  %v2370_v44 = vpop.f32.mrb[133].mxu1  ;;  %v9363_v8 = vld [vmem:[#allocation6_spill] sm:$0xff] }
 0x1ea   :  { %v2526_v26 = vadd.f32 1.0, %v7095_v53  ;;  %v2425_v42 = vadd.f32 %v2370_v44, %v2192_v5  ;;  %v8568_v57 = vpack.c.bf16 %v4927_v17, %v4926_v58  ;;  %v9364_v44 = vld [vmem:[#allocation2_spill] sm:$0xff]  ;;  %v4952_v17 = vld [vmem:[%s9343_s3 + $0x110] sm:$0xff] }
 0x1eb   :  { %7104 = vpow2.f32 %v2510_v32  ;;  %v2494_v6 = vsub.f32 0.0, %v2482_v36  ;;  %v2464_v40 = vmax.f32 %v2447_v47, %v2448_v46  ;;  %v2426_v13 = vadd.f32 %v6214_v16, %v2193_v1  ;;  %v6167_v28 = vpop.f32.mrb[134].mxu0  ;;  %v9362_v16 = vld [vmem:[#allocation5_spill] sm:$0xff] }
 0x1ec   :  { %7106 = vrcp.f32 %v2526_v26  ;;  %v2449_v7 = vmax.f32 %v8386_v31, %v2425_v42  ;;  %v2196_v56 = vadd.f32 %v6167_v28, %v8493_v39  ;;  %v6217_v21 = vpop.f32.mrb[134].mxu1  ;;  %v2148_v9 = vpop.f32.mrb[135].mxu0  ;;  %v4948_v31 = vld [vmem:[%s9343_s3 + $0xf0] sm:$0xff] }
 0x1ed   :  { %v7097_v50 = vpop.eup %7096  ;;  %v2512_v52 = vmul.f32 1.442695, %v2494_v6  ;;  %v2483_v18 = vadd.f32 %v8512_v27, %v2464_v40  ;;  %v2450_v37 = vmax.f32 %v8381_v33, %v2426_v13  ;;  %v2195_v54 = vadd.f32 %v2148_v9, %v8489_v3  ;;  %v2380_v61 = vpop.f32.mrb[135].mxu1  ;;  %v4931_v40 = vld [vmem:[%s9343_s3 + $0xc8] sm:$0xff]  ;;  %v9365_v9 = vld [vmem:[#allocation4_spill] sm:$0xff] }
 0x1ee   :  { %v8566_v39 = vpop.eup %7098  ;;  %v2527_v35 = vadd.f32 1.0, %v7097_v50  ;;  %v2427_v60 = vadd.f32 %v2380_v61, %v2194_v49  ;;  %v6882_v5 = vpack.c.bf16 %v4948_v31, %v4947_v25  ;;  %v9366_v61 = vld [vmem:[#allocation3_spill] sm:$0xff] }
 0x1ef   :  { %7108 = vpow2.f32 %v2512_v52  ;;  %v2495_v24 = vsub.f32 0.0, %v2483_v18  ;;  %v2465_v33 = vmax.f32 %v2449_v7, %v2450_v37  ;;  %v2428_v14 = vadd.f32 %v6217_v21, %v2195_v54  ;;  %v6170_v3 = vpop.f32.mrb[136].mxu0  ;;  %6242 = vmatprep.mubr.msk.f32.mxu0 %vm2569_vm4, %v8566_v39  ;;  %6278 = vmatprep.mubr.msk.f32.mxu1 %vm2569_vm4, %v8566_v39 }
 0x1f0   :  { %7110 = vrcp.f32 %v2527_v35  ;;  %v2451_v59 = vmax.f32 %v8396_v2, %v2427_v60  ;;  %v2198_v11 = vadd.f32 %v6170_v3, %v8498_v23  ;;  %v6220_v12 = vpop.f32.mrb[136].mxu1  ;;  %v2158_v34 = vpop.f32.mrb[137].mxu0  ;;  %v4929_v2 = vld [vmem:[%s9343_s3 + $0xb8] sm:$0xff] }
 0x1f1   :  { %v7101_v38 = vpop.eup %7100  ;;  %v2514_v22 = vmul.f32 1.442695, %v2495_v24  ;;  %v2484_v43 = vadd.f32 %v8512_v27, %v2465_v33  ;;  %v2452_v0 = vmax.f32 %v8391_v55, %v2428_v14  ;;  %v2197_v45 = vadd.f32 %v2158_v34, %v8495_v10  ;;  %v2390_v29 = vpop.f32.mrb[137].mxu1  ;;  %v4949_v23 = vld [vmem:[%s9343_s3 + $0xf8] sm:$0xff] }
 0x1f2   :  { %v8591_v51 = vpop.eup %7102  ;;  %v2528_v63 = vadd.f32 1.0, %v7101_v38  ;;  %v2429_v48 = vadd.f32 %v2390_v29, %v2196_v56  ;;  %v6870_v53 = vpack.c.bf16 %v4929_v2, %v4928_v41  ;;  %v6886_v32 = vpack.c.bf16 %v4950_v19, %v4949_v23  ;;  %v4987_v41 = vld [vmem:[%s9343_s3 + $0x168] sm:$0xff]  ;;  %v4988_v38 = vld [vmem:[%s9343_s3 + $0x170] sm:$0xff] }
 0x1f3   :  { %7112 = vpow2.f32 %v2514_v22  ;;  %v2496_v55 = vsub.f32 0.0, %v2484_v43  ;;  %v2466_v10 = vmax.f32 %v2451_v59, %v2452_v0  ;;  %v2430_v30 = vadd.f32 %v6220_v12, %v2197_v45  ;;  %v6173_v4 = vpop.f32.mrb[138].mxu0  ;;  %6243 = vmatmul.mubr.msk.f32.vlgmr.msra.gmra.mrb[140].mxu0 %vm2569_vm4, %v8591_v51  ;;  %6279 = vmatmul.mubr.msk.f32.vlgmr.msra.gmra.mrb[140].mxu1 %vm2569_vm4, %v8591_v51  ;;  %v4932_v59 = vld [vmem:[%s9343_s3 + $0xd0] sm:$0xff]  ;;  %v4966_v12 = vld [vmem:[%s9343_s3 + $0x120] sm:$0xff] }
 0x1f4   :  { %7114 = vrcp.f32 %v2528_v63  ;;  %v2453_v20 = vmax.f32 %v8404_v15, %v2429_v48  ;;  %v6223_v47 = vpop.f32.mrb[138].mxu1  ;;  %v2168_v49 = vpop.f32.mrb[139].mxu0  ;;  %6865 = vmatpush3.bf16.msra.mxu0 %v9362_v16  ;;  %6881 = vmatpush3.bf16.msra.mxu1 %v9363_v8  ;;  %v4930_v15 = vld [vmem:[%s9343_s3 + $0xc0] sm:$0xff]  ;;  %v6910_v29 = vpack.c.bf16 %v4988_v38, %v4987_v41  ;;  %v5015_v38 = vld [vmem:[%s9343_s3 + $0x1e8] sm:$0xff] }
 0x1f5   :  { %v7105_v36 = vpop.eup %7104  ;;  %v2516_v46 = vmul.f32 1.442695, %v2496_v55  ;;  %v2485_v1 = vadd.f32 %v8512_v27, %v2466_v10  ;;  %v2454_v26 = vmax.f32 %v9364_v44, %v2430_v30  ;;  %v2199_v42 = vadd.f32 %v2168_v49, %v8500_v62  ;;  %v2400_v6 = vpop.f32.mrb[139].mxu1  ;;  %6867 = vmatprep.subr.bf16.mxu0 %v8568_v57  ;;  %6883 = vmatprep.subr.bf16.mxu1 %v6882_v5  ;;  %v4951_v62 = vld [vmem:[%s9343_s3 + $0x108] sm:$0xff]  ;;  %v5014_v41 = vld [vmem:[%s9343_s3 + $0x1e0] sm:$0xff] }
 0x1f6   :  { %v8610_v13 = vpop.eup %7106  ;;  %v2529_v28 = vadd.f32 1.0, %v7105_v36  ;;  %v2431_v58 = vadd.f32 %v2400_v6, %v2198_v11  ;;  %v6874_v52 = vpack.c.bf16 %v4931_v40, %v4930_v15  ;;  %v6890_v31 = vpack.c.bf16 %v4952_v17, %v4951_v62  ;;  %v4953_v11 = vld [vmem:[%s9343_s3 + $0x118] sm:$0xff]  ;;  %v4991_v6 = vld [vmem:[%s9343_s3 + $0x188] sm:$0xff]  ;;  %v4992_v15 = vld [vmem:[%s9343_s3 + $0x190] sm:$0xff] }
 0x1f7   :  { %7116 = vpow2.f32 %v2516_v46  ;;  %v2497_v7 = vsub.f32 0.0, %v2485_v1  ;;  %v2467_v56 = vmax.f32 %v2453_v20, %v2454_v26  ;;  %v2432_v21 = vadd.f32 %v6223_v47, %v2199_v42  ;;  %6245 = vmatprep.mubr.msk.f32.mxu0 %vm2569_vm4, %v8610_v13  ;;  %6281 = vmatprep.mubr.msk.f32.mxu1 %vm2569_vm4, %v8610_v13  ;;  %v4989_v36 = vld [vmem:[%s9343_s3 + $0x178] sm:$0xff]  ;;  %v4990_v46 = vld [vmem:[%s9343_s3 + $0x180] sm:$0xff]  ;;  %v4971_v42 = vld [vmem:[%s9343_s3 + $0x148] sm:$0xff] }
 0x1f8   :  { %7118 = vrcp.f32 %v2529_v28  ;;  %v2455_v50 = vmax.f32 %v9365_v9, %v2431_v58  ;;  %6869 = vmatpush3.bf16.msra.mxu0 %v8568_v57  ;;  %6885 = vmatpush3.bf16.msra.mxu1 %v6882_v5  ;;  %v6914_v44 = vpack.c.bf16 %v4990_v46, %v4989_v36  ;;  %v4970_v26 = vld [vmem:[%s9343_s3 + $0x140] sm:$0xff]  ;;  %v6918_v28 = vpack.c.bf16 %v4992_v15, %v4991_v6  ;;  %v4972_v58 = vld [vmem:[%s9343_s3 + $0x150] sm:$0xff]  ;;  %v4973_v62 = vld [vmem:[%s9343_s3 + $0x158] sm:$0xff] }
 0x1f9   :  { %v7109_v18 = vpop.eup %7108  ;;  %v2518_v37 = vmul.f32 1.442695, %v2497_v7  ;;  %v2486_v54 = vadd.f32 %v8512_v27, %v2467_v56  ;;  %v2456_v25 = vmax.f32 %v9366_v61, %v2432_v21  ;;  %6871 = vmatprep.subr.bf16.mxu0 %v6870_v53  ;;  %6887 = vmatprep.subr.bf16.mxu1 %v6886_v32  ;;  %v6902_v40 = vpack.c.bf16 %v4971_v42, %v4970_v26  ;;  %v4993_v17 = vld [vmem:[%s9343_s3 + $0x198] sm:$0xff]  ;;  %v4994_v7 = vld [vmem:[%s9343_s3 + $0x1a0] sm:$0xff]  ;;  %v5055_v42 = vld [vmem:[%s9343_s3 + $0x268] sm:$0xff] }
 0x1fa   :  { %v8626_v35 = vpop.eup %7110  ;;  %v2530_v60 = vadd.f32 1.0, %v7109_v18  ;;  %v6906_v56 = vpack.c.bf16 %v4973_v62, %v4972_v58  ;;  %v6922_v21 = vpack.c.bf16 %v4994_v7, %v4993_v17  ;;  %v4974_v9 = vld [vmem:[%s9343_s3 + $0x160] sm:$0xff]  ;;  %v5009_v18 = vld [vmem:[%s9343_s3 + $0x1b8] sm:$0xff]  ;;  %v5075_v6 = vld [vmem:[%s9343_s3 + $0x2a8] sm:$0xff] }
 0x1fb   :  { %7120 = vpow2.f32 %v2518_v37  ;;  %v2498_v24 = vsub.f32 0.0, %v2486_v54  ;;  %v2468_v33 = vmax.f32 %v2455_v50, %v2456_v25  ;;  %6246 = vmatmul.mubr.msk.f32.gmra.mrb[142].mxu0 %vm2569_vm4, %v8626_v35  ;;  %6282 = vmatmul.mubr.msk.f32.gmra.mrb[142].mxu1 %vm2569_vm4, %v8626_v35  ;;  %v4995_v50 = vld [vmem:[%s9343_s3 + $0x1a8] sm:$0xff]  ;;  %v5029_v37 = vld [vmem:[%s9343_s3 + $0x1f8] sm:$0xff]  ;;  %v5030_v54 = vld [vmem:[%s9343_s3 + $0x200] sm:$0xff] }
 0x1fc   :  { %7122 = vrcp.f32 %v2530_v60  ;;  %6873 = vmatpush3.bf16.msra.mxu0 %v6870_v53  ;;  %6889 = vmatpush3.bf16.msra.mxu1 %v6886_v32  ;;  %v4968_v53 = vld [vmem:[%s9343_s3 + $0x130] sm:$0xff]  ;;  %v4969_v32 = vld [vmem:[%s9343_s3 + $0x138] sm:$0xff]  ;;  %v6942_v25 = vpack.c.bf16 %v5030_v54, %v5029_v37  ;;  %v5011_v60 = vld [vmem:[%s9343_s3 + $0x1c8] sm:$0xff] }
 0x1fd   :  { %v7113_v57 = vpop.eup %7112  ;;  %v2520_v14 = vmul.f32 1.442695, %v2498_v24  ;;  %v2487_v3 = vadd.f32 %v8512_v27, %v2468_v33  ;;  %6875 = vmatprep.subr.bf16.mxu0 %v6874_v52  ;;  %6891 = vmatprep.subr.bf16.mxu1 %v6890_v31  ;;  %v4967_v27 = vld [vmem:[%s9343_s3 + $0x128] sm:$0xff]  ;;  %v6898_v1 = vpack.c.bf16 %v4969_v32, %v4968_v53  ;;  %v5032_v33 = vld [vmem:[%s9343_s3 + $0x210] sm:$0xff]  ;;  %v5053_v32 = vld [vmem:[%s9343_s3 + $0x258] sm:$0xff] }
 0x1fe   :  { %v8642_v34 = vpop.eup %7114  ;;  %v2531_v5 = vadd.f32 1.0, %v7113_v57  ;;  %v6894_v45 = vpack.c.bf16 %v4967_v27, %v4966_v12  ;;  %v5031_v24 = vld [vmem:[%s9343_s3 + $0x208] sm:$0xff]  ;;  %v5034_v12 = vld [vmem:[%s9343_s3 + $0x220] sm:$0xff]  ;;  %v5052_v53 = vld [vmem:[%s9343_s3 + $0x250] sm:$0xff] }
 0x1ff   :  { %7124 = vpow2.f32 %v2520_v14  ;;  %v2499_v22 = vsub.f32 0.0, %v2487_v3  ;;  %6248 = vmatprep.mubr.msk.f32.mxu0 %vm2569_vm4, %v8642_v34  ;;  %6284 = vmatprep.mubr.msk.f32.mxu1 %vm2569_vm4, %v8642_v34  ;;  %v6946_v14 = vpack.c.bf16 %v5032_v33, %v5031_v24  ;;  %v5012_v3 = vld [vmem:[%s9343_s3 + $0x1d0] sm:$0xff]  ;;  %v5073_v36 = vld [vmem:[%s9343_s3 + $0x298] sm:$0xff]  ;;  %v5074_v46 = vld [vmem:[%s9343_s3 + $0x2a0] sm:$0xff]  ;;  %v7167_v24 = vmov 0.0|0.0  }
 0x200   :  { %7126 = vrcp.f32 %v2531_v5  ;;  %6877 = vmatpush3.bf16.msra.mxu0 %v6874_v52  ;;  %6893 = vmatpush3.bf16.msra.mxu1 %v6890_v31  ;;  %v5008_v52 = vld [vmem:[%s9343_s3 + $0x1b0] sm:$0xff]  ;;  %v5010_v31 = vld [vmem:[%s9343_s3 + $0x1c0] sm:$0xff]  ;;  %v5057_v62 = vld [vmem:[%s9343_s3 + $0x278] sm:$0xff] }
 0x201   :  { %v7117_v43 = vpop.eup %7116  ;;  %v2522_v0 = vmul.f32 1.442695, %v2499_v22  ;;  %6312 = vmatprep.subr.mxu0 %v4932_v59  ;;  %6348 = vmatprep.subr.mxu1 %v4953_v11  ;;  %v6926_v61 = vpack.c.bf16 %v5009_v18, %v5008_v52  ;;  %v6930_v57 = vpack.c.bf16 %v5011_v60, %v5010_v31  ;;  %v5035_v22 = vld [vmem:[%s9343_s3 + $0x228] sm:$0xff]  ;;  %v5054_v26 = vld [vmem:[%s9343_s3 + $0x260] sm:$0xff]  ;;  %v5076_v15 = vld [vmem:[%s9343_s3 + $0x2b0] sm:$0xff] }
 0x202   :  { %v8657_v2 = vpop.eup %7118  ;;  %v2532_v23 = vadd.f32 1.0, %v7117_v43  ;;  %v5036_v43 = vld [vmem:[%s9343_s3 + $0x230] sm:$0xff]  ;;  %v5077_v17 = vld [vmem:[%s9343_s3 + $0x2b8] sm:$0xff]  ;;  %v5078_v7 = vld [vmem:[%s9343_s3 + $0x2c0] sm:$0xff] }
 0x203   :  { %7128 = vpow2.f32 %v2522_v0  ;;  %6249 = vmatmul.mubr.msk.f32.gmra.mrb[144].mxu0 %vm2569_vm4, %v8657_v2  ;;  %6285 = vmatmul.mubr.msk.f32.gmra.mrb[144].mxu1 %vm2569_vm4, %v8657_v2  ;;  %v6938_v0 = vpack.c.bf16 %v5015_v38, %v5014_v41  ;;  %v5056_v58 = vld [vmem:[%s9343_s3 + $0x270] sm:$0xff]  ;;  %v4018_v31 = vld [vmem:[%s9345_s5 + $0x8] sm:$0xff]  ;;  %v5093_v33 = vld [vmem:[%s9345_s5 + $0x40] sm:$0xff] }
 0x204   :  { %7130 = vrcp.f32 %v2532_v23  ;;  %6313 = vmatpush3.msra.mxu0 %v4932_v59  ;;  %6349 = vmatpush3.msra.mxu1 %v4953_v11  ;;  %v5013_v59 = vld [vmem:[%s9343_s3 + $0x1d8] sm:$0xff] }
 0x205   :  { %v7121_v19 = vpop.eup %7120  ;;  %6895 = vmatprep.subr.bf16.mxu0 %v6894_v45  ;;  %6911 = vmatprep.subr.bf16.mxu1 %v6910_v29  ;;  %v5033_v11 = vld [vmem:[%s9343_s3 + $0x218] sm:$0xff]  ;;  %v6934_v5 = vpack.c.bf16 %v5013_v59, %v5012_v3 }
 0x206   :  { %v8663_v63 = vpop.eup %7122  ;;  %v2533_v48 = vadd.f32 1.0, %v7121_v19  ;;  %v6950_v27 = vpack.c.bf16 %v5034_v12, %v5033_v11  ;;  %v5037_v23 = vld [vmem:[%s9343_s3 + $0x238] sm:$0xff]  ;;  %v5050_v19 = vld [vmem:[%s9343_s3 + $0x240] sm:$0xff] }
 0x207   :  { %6251 = vmatprep.mubr.msk.f32.mxu0 %vm2569_vm4, %v8663_v63  ;;  %6287 = vmatprep.mubr.msk.f32.mxu1 %vm2569_vm4, %v8663_v63  ;;  %v4020_v59 = vld [vmem:[%s9345_s5 + $0x18] sm:$0xff] }
 0x208   :  { %7132 = vrcp.f32 %v2533_v48  ;;  %v5051_v48 = vld [vmem:[%s9343_s3 + $0x248] sm:$0xff] }
 0x209   :  { %v7125_v55 = vpop.eup %7124 }
 0x20a   :  { %v8669_v10 = vpop.eup %7126  ;;  %v2534_v30 = vadd.f32 1.0, %v7125_v55  ;;  %v5071_v55 = vld [vmem:[%s9343_s3 + $0x288] sm:$0xff] }
 0x20b   :  { %6252 = vmatmul.mubr.msk.f32.gmra.mrb[146].mxu0 %vm2569_vm4, %v8669_v10  ;;  %6288 = vmatmul.mubr.msk.f32.gmra.mrb[146].mxu1 %vm2569_vm4, %v8669_v10 }
 0x20c   :  { %7134 = vrcp.f32 %v2534_v30  ;;  %v5072_v30 = vld [vmem:[%s9343_s3 + $0x290] sm:$0xff] }
 0x20d   :  { %v7129_v4 = vpop.eup %7128 }
 0x20e   :  { %v8675_v20 = vpop.eup %7130  ;;  %v2535_v47 = vadd.f32 1.0, %v7129_v4  ;;  %v6958_v4 = vpack.c.bf16 %v5051_v48, %v5050_v19  ;;  %v5097_v48 = vld [vmem:[%s9345_s5 + $0x60] sm:$0xff] }
 0x20f   :  { %6254 = vmatprep.mubr.msk.f32.mxu0 %vm2569_vm4, %v8675_v20  ;;  %6290 = vmatprep.mubr.msk.f32.mxu1 %vm2569_vm4, %v8675_v20 }
 0x210   :  { %7136 = vrcp.f32 %v2535_v47  ;;  %v6974_v47 = vpack.c.bf16 %v5072_v30, %v5071_v55  ;;  %v5098_v55 = vld [vmem:[%s9345_s5 + $0x68] sm:$0xff]  ;;  %v4023_v30 = vld [vmem:[%s9345_s5 + $0x30] sm:$0xff] }
 0x212   :  { %v8681_v49 = vpop.eup %7132 }
 0x213   :  { %6255 = vmatmul.mubr.msk.f32.gmra.mrb[148].mxu0 %vm2569_vm4, %v8681_v49  ;;  %6291 = vmatmul.mubr.msk.f32.gmra.mrb[148].mxu1 %vm2569_vm4, %v8681_v49 }
 0x216   :  { %v8687_v16 = vpop.eup %7134 }
 0x217   :  { %6257 = vmatprep.mubr.msk.f32.mxu0 %vm2569_vm4, %v8687_v16  ;;  %6293 = vmatprep.mubr.msk.f32.mxu1 %vm2569_vm4, %v8687_v16 }
 0x21a   :  { %v8693_v8 = vpop.eup %7136 }
 0x21b   :  { %6258 = vmatmul.mubr.msk.f32.gmra.mrb[150].mxu0 %vm2569_vm4, %v8693_v8  ;;  %6294 = vmatmul.mubr.msk.f32.gmra.mrb[150].mxu1 %vm2569_vm4, %v8693_v8 }
 0x21c   :  { %6314 = vmatprep.mubr.msk.f32.mxu0 %vm2569_vm4, %v8566_v39  ;;  %6350 = vmatprep.mubr.msk.f32.mxu1 %vm2569_vm4, %v8566_v39 }
 0x21f   :  { %6315 = vmatmul.mubr.msk.f32.vlgmr.msra.gmra.mrb[152].mxu0 %vm2569_vm4, %v8591_v51  ;;  %6351 = vmatmul.mubr.msk.f32.vlgmr.msra.gmra.mrb[152].mxu1 %vm2569_vm4, %v8591_v51 }
 0x220   :  { %6317 = vmatprep.mubr.msk.f32.mxu0 %vm2569_vm4, %v8610_v13  ;;  %6353 = vmatprep.mubr.msk.f32.mxu1 %vm2569_vm4, %v8610_v13 }
 0x221   :  { %6897 = vmatpush3.bf16.msra.mxu0 %v6894_v45  ;;  %6913 = vmatpush3.bf16.msra.mxu1 %v6910_v29  ;;  %v6954_v45 = vpack.c.bf16 %v5036_v43, %v5035_v22  ;;  %v5016_v29 = vld [vmem:[%s9343_s3 + $0x1f0] sm:$0xff] }
 0x222   :  { %6899 = vmatprep.subr.bf16.mxu0 %v6898_v1  ;;  %6915 = vmatprep.subr.bf16.mxu1 %v6914_v44  ;;  %v5095_v43 = vld [vmem:[%s9345_s5 + $0x50] sm:$0xff] }
 0x223   :  { %6318 = vmatmul.mubr.msk.f32.gmra.mrb[154].mxu0 %vm2569_vm4, %v8626_v35  ;;  %6354 = vmatmul.mubr.msk.f32.gmra.mrb[154].mxu1 %vm2569_vm4, %v8626_v35 }
 0x224   :  { %6320 = vmatprep.mubr.msk.f32.mxu0 %vm2569_vm4, %v8642_v34  ;;  %6356 = vmatprep.mubr.msk.f32.mxu1 %vm2569_vm4, %v8642_v34 }
 0x225   :  { %6901 = vmatpush3.bf16.msra.mxu0 %v6898_v1  ;;  %6917 = vmatpush3.bf16.msra.mxu1 %v6914_v44  ;;  %v6962_v1 = vpack.c.bf16 %v5053_v32, %v5052_v53  ;;  %v6978_v44 = vpack.c.bf16 %v5074_v46, %v5073_v36 }
 0x226   :  { %6903 = vmatprep.subr.bf16.mxu0 %v6902_v40  ;;  %6919 = vmatprep.subr.bf16.mxu1 %v6918_v28 }
 0x227   :  { %6321 = vmatmul.mubr.msk.f32.gmra.mrb[156].mxu0 %vm2569_vm4, %v8657_v2  ;;  %6357 = vmatmul.mubr.msk.f32.gmra.mrb[156].mxu1 %vm2569_vm4, %v8657_v2 }
 0x228   :  { %6323 = vmatprep.mubr.msk.f32.mxu0 %vm2569_vm4, %v8663_v63  ;;  %6359 = vmatprep.mubr.msk.f32.mxu1 %vm2569_vm4, %v8663_v63 }
 0x229   :  { %6905 = vmatpush3.bf16.msra.mxu0 %v6902_v40  ;;  %6921 = vmatpush3.bf16.msra.mxu1 %v6918_v28  ;;  %v6966_v40 = vpack.c.bf16 %v5055_v42, %v5054_v26  ;;  %v6982_v28 = vpack.c.bf16 %v5076_v15, %v5075_v6  ;;  %v5099_v26 = vld [vmem:[%s9345_s5 + $0x70] sm:$0xff]  ;;  %v5100_v42 = vld [vmem:[%s9345_s5 + $0x78] sm:$0xff]  ;;  %v7169_v15 = vmov 0.0  }
 0x22a   :  { %6907 = vmatprep.subr.bf16.mxu0 %v6906_v56  ;;  %6923 = vmatprep.subr.bf16.mxu1 %v6922_v21  ;;  %v7000_v6 = vpack.c.bf16 %v5100_v42, %v5099_v26 }
 0x22b   :  { %6324 = vmatmul.mubr.msk.f32.gmra.mrb[158].mxu0 %vm2569_vm4, %v8669_v10  ;;  %6360 = vmatmul.mubr.msk.f32.gmra.mrb[158].mxu1 %vm2569_vm4, %v8669_v10 }
 0x22c   :  { %6326 = vmatprep.mubr.msk.f32.mxu0 %vm2569_vm4, %v8675_v20  ;;  %6362 = vmatprep.mubr.msk.f32.mxu1 %vm2569_vm4, %v8675_v20 }
 0x22d   :  { %6909 = vmatpush3.bf16.msra.mxu0 %v6906_v56  ;;  %6925 = vmatpush3.bf16.msra.mxu1 %v6922_v21  ;;  %v6970_v56 = vpack.c.bf16 %v5057_v62, %v5056_v58  ;;  %v6986_v21 = vpack.c.bf16 %v5078_v7, %v5077_v17 }
 0x22e   :  { %6384 = vmatprep.subr.mxu0 %v4974_v9  ;;  %6420 = vmatprep.subr.mxu1 %v4995_v50 }
 0x22f   :  { %6327 = vmatmul.mubr.msk.f32.gmra.mrb[160].mxu0 %vm2569_vm4, %v8681_v49  ;;  %6363 = vmatmul.mubr.msk.f32.gmra.mrb[160].mxu1 %vm2569_vm4, %v8681_v49 }
 0x230   :  { %6329 = vmatprep.mubr.msk.f32.mxu0 %vm2569_vm4, %v8687_v16  ;;  %6365 = vmatprep.mubr.msk.f32.mxu1 %vm2569_vm4, %v8687_v16 }
 0x231   :  { %6385 = vmatpush3.msra.mxu0 %v4974_v9  ;;  %6421 = vmatpush3.msra.mxu1 %v4995_v50  ;;  %v5058_v9 = vld [vmem:[%s9343_s3 + $0x280] sm:$0xff]  ;;  %v5079_v50 = vld [vmem:[%s9343_s3 + $0x2c8] sm:$0xff] }
 0x232   :  { %6927 = vmatprep.subr.bf16.mxu0 %v6926_v61  ;;  %6943 = vmatprep.subr.bf16.mxu1 %v6942_v25 }
 0x233   :  { %6330 = vmatmul.mubr.msk.f32.gmra.mrb[162].mxu0 %vm2569_vm4, %v8693_v8  ;;  %6366 = vmatmul.mubr.msk.f32.gmra.mrb[162].mxu1 %vm2569_vm4, %v8693_v8 }
 0x234   :  { %6386 = vmatprep.mubr.msk.f32.mxu0 %vm2569_vm4, %v8566_v39  ;;  %6422 = vmatprep.mubr.msk.f32.mxu1 %vm2569_vm4, %v8566_v39 }
 0x237   :  { %6387 = vmatmul.mubr.msk.f32.vlgmr.msra.gmra.mrb[164].mxu0 %vm2569_vm4, %v8591_v51  ;;  %6423 = vmatmul.mubr.msk.f32.vlgmr.msra.gmra.mrb[164].mxu1 %vm2569_vm4, %v8591_v51 }
 0x238   :  { %6389 = vmatprep.mubr.msk.f32.mxu0 %vm2569_vm4, %v8610_v13  ;;  %6425 = vmatprep.mubr.msk.f32.mxu1 %vm2569_vm4, %v8610_v13 }
 0x239   :  { %6929 = vmatpush3.bf16.msra.mxu0 %v6926_v61  ;;  %6945 = vmatpush3.bf16.msra.mxu1 %v6942_v25  ;;  %v4017_v25 = vld [vmem:[%s9345_s5] sm:$0xff] }
 0x23a   :  { %6931 = vmatprep.subr.bf16.mxu0 %v6930_v57  ;;  %6947 = vmatprep.subr.bf16.mxu1 %v6946_v14  ;;  %v7003_v60 = vpack.c.bf16 %v4018_v31, %v4017_v25 }
 0x23b   :  { %6390 = vmatmul.mubr.msk.f32.gmra.mrb[166].mxu0 %vm2569_vm4, %v8626_v35  ;;  %6426 = vmatmul.mubr.msk.f32.gmra.mrb[166].mxu1 %vm2569_vm4, %v8626_v35 }
 0x23c   :  { %6392 = vmatprep.mubr.msk.f32.mxu0 %vm2569_vm4, %v8642_v34  ;;  %6428 = vmatprep.mubr.msk.f32.mxu1 %vm2569_vm4, %v8642_v34 }
 0x23d   :  { %6933 = vmatpush3.bf16.msra.mxu0 %v6930_v57  ;;  %6949 = vmatpush3.bf16.msra.mxu1 %v6946_v14  ;;  %v5094_v57 = vld [vmem:[%s9345_s5 + $0x48] sm:$0xff]  ;;  %v4019_v14 = vld [vmem:[%s9345_s5 + $0x10] sm:$0xff] }
 0x23e   :  { %6935 = vmatprep.subr.bf16.mxu0 %v6934_v5  ;;  %6951 = vmatprep.subr.bf16.mxu1 %v6950_v27  ;;  %v6991_v3 = vpack.c.bf16 %v5094_v57, %v5093_v33 }
 0x23f   :  { %6393 = vmatmul.mubr.msk.f32.gmra.mrb[168].mxu0 %vm2569_vm4, %v8657_v2  ;;  %6429 = vmatmul.mubr.msk.f32.gmra.mrb[168].mxu1 %vm2569_vm4, %v8657_v2 }
 0x240   :  { %6395 = vmatprep.mubr.msk.f32.mxu0 %vm2569_vm4, %v8663_v63  ;;  %6431 = vmatprep.mubr.msk.f32.mxu1 %vm2569_vm4, %v8663_v63 }
 0x241   :  { %6937 = vmatpush3.bf16.msra.mxu0 %v6934_v5  ;;  %6953 = vmatpush3.bf16.msra.mxu1 %v6950_v27  ;;  %v7006_v5 = vpack.c.bf16 %v4020_v59, %v4019_v14 }
 0x242   :  { %6939 = vmatprep.subr.bf16.mxu0 %v6938_v0  ;;  %6955 = vmatprep.subr.bf16.mxu1 %v6954_v45 }
 0x243   :  { %6396 = vmatmul.mubr.msk.f32.gmra.mrb[170].mxu0 %vm2569_vm4, %v8669_v10  ;;  %6432 = vmatmul.mubr.msk.f32.gmra.mrb[170].mxu1 %vm2569_vm4, %v8669_v10 }
 0x244   :  { %6398 = vmatprep.mubr.msk.f32.mxu0 %vm2569_vm4, %v8675_v20  ;;  %6434 = vmatprep.mubr.msk.f32.mxu1 %vm2569_vm4, %v8675_v20 }
 0x245   :  { %6941 = vmatpush3.bf16.msra.mxu0 %v6938_v0  ;;  %6957 = vmatpush3.bf16.msra.mxu1 %v6954_v45  ;;  %v5096_v0 = vld [vmem:[%s9345_s5 + $0x58] sm:$0xff]  ;;  %v4021_v45 = vld [vmem:[%s9345_s5 + $0x20] sm:$0xff] }
 0x246   :  { %6456 = vmatprep.subr.mxu0 %v5016_v29  ;;  %6492 = vmatprep.subr.mxu1 %v5037_v23 }
 0x247   :  { %6399 = vmatmul.mubr.msk.f32.gmra.mrb[172].mxu0 %vm2569_vm4, %v8681_v49  ;;  %6435 = vmatmul.mubr.msk.f32.gmra.mrb[172].mxu1 %vm2569_vm4, %v8681_v49 }
 0x248   :  { %6401 = vmatprep.mubr.msk.f32.mxu0 %vm2569_vm4, %v8687_v16  ;;  %6437 = vmatprep.mubr.msk.f32.mxu1 %vm2569_vm4, %v8687_v16 }
 0x249   :  { %6457 = vmatpush3.msra.mxu0 %v5016_v29  ;;  %6493 = vmatpush3.msra.mxu1 %v5037_v23  ;;  %v6994_v29 = vpack.c.bf16 %v5096_v0, %v5095_v43  ;;  %v4022_v23 = vld [vmem:[%s9345_s5 + $0x28] sm:$0xff] }
 0x24a   :  { %6959 = vmatprep.subr.bf16.mxu0 %v6958_v4  ;;  %6975 = vmatprep.subr.bf16.mxu1 %v6974_v47  ;;  %v7009_v19 = vpack.c.bf16 %v4022_v23, %v4021_v45 }
 0x24b   :  { %6402 = vmatmul.mubr.msk.f32.gmra.mrb[174].mxu0 %vm2569_vm4, %v8693_v8  ;;  %6438 = vmatmul.mubr.msk.f32.gmra.mrb[174].mxu1 %vm2569_vm4, %v8693_v8 }
 0x24c   :  { %6458 = vmatprep.mubr.msk.f32.mxu0 %vm2569_vm4, %v8566_v39  ;;  %6494 = vmatprep.mubr.msk.f32.mxu1 %vm2569_vm4, %v8566_v39 }
 0x24f   :  { %6459 = vmatmul.mubr.msk.f32.vlgmr.msra.gmra.mrb[176].mxu0 %vm2569_vm4, %v8591_v51  ;;  %6495 = vmatmul.mubr.msk.f32.vlgmr.msra.gmra.mrb[176].mxu1 %vm2569_vm4, %v8591_v51 }
 0x250   :  { %6461 = vmatprep.mubr.msk.f32.mxu0 %vm2569_vm4, %v8610_v13  ;;  %6497 = vmatprep.mubr.msk.f32.mxu1 %vm2569_vm4, %v8610_v13 }
 0x251   :  { %6961 = vmatpush3.bf16.msra.mxu0 %v6958_v4  ;;  %6977 = vmatpush3.bf16.msra.mxu1 %v6974_v47  ;;  %v6997_v4 = vpack.c.bf16 %v5098_v55, %v5097_v48  ;;  %v4024_v47 = vld [vmem:[%s9345_s5 + $0x38] sm:$0xff] }
 0x252   :  { %6963 = vmatprep.subr.bf16.mxu0 %v6962_v1  ;;  %6979 = vmatprep.subr.bf16.mxu1 %v6978_v44  ;;  %v7012_v36 = vpack.c.bf16 %v4024_v47, %v4023_v30 }
 0x253   :  { %6462 = vmatmul.mubr.msk.f32.gmra.mrb[178].mxu0 %vm2569_vm4, %v8626_v35  ;;  %6498 = vmatmul.mubr.msk.f32.gmra.mrb[178].mxu1 %vm2569_vm4, %v8626_v35 }
 0x254   :  { %6464 = vmatprep.mubr.msk.f32.mxu0 %vm2569_vm4, %v8642_v34  ;;  %6500 = vmatprep.mubr.msk.f32.mxu1 %vm2569_vm4, %v8642_v34 }
 0x255   :  { %6965 = vmatpush3.bf16.msra.mxu0 %v6962_v1  ;;  %6981 = vmatpush3.bf16.msra.mxu1 %v6978_v44 }
 0x256   :  { %6967 = vmatprep.subr.bf16.mxu0 %v6966_v40  ;;  %6983 = vmatprep.subr.bf16.mxu1 %v6982_v28 }
 0x257   :  { %6465 = vmatmul.mubr.msk.f32.gmra.mrb[180].mxu0 %vm2569_vm4, %v8657_v2  ;;  %6501 = vmatmul.mubr.msk.f32.gmra.mrb[180].mxu1 %vm2569_vm4, %v8657_v2 }
 0x258   :  { %6467 = vmatprep.mubr.msk.f32.mxu0 %vm2569_vm4, %v8663_v63  ;;  %6503 = vmatprep.mubr.msk.f32.mxu1 %vm2569_vm4, %v8663_v63 }
 0x259   :  { %6969 = vmatpush3.bf16.msra.mxu0 %v6966_v40  ;;  %6985 = vmatpush3.bf16.msra.mxu1 %v6982_v28 }
 0x25a   :  { %6971 = vmatprep.subr.bf16.mxu0 %v6970_v56  ;;  %6987 = vmatprep.subr.bf16.mxu1 %v6986_v21 }
 0x25b   :  { %6468 = vmatmul.mubr.msk.f32.gmra.mrb[182].mxu0 %vm2569_vm4, %v8669_v10  ;;  %6504 = vmatmul.mubr.msk.f32.gmra.mrb[182].mxu1 %vm2569_vm4, %v8669_v10 }
 0x25c   :  { %6470 = vmatprep.mubr.msk.f32.mxu0 %vm2569_vm4, %v8675_v20  ;;  %6506 = vmatprep.mubr.msk.f32.mxu1 %vm2569_vm4, %v8675_v20 }
 0x25d   :  { %6973 = vmatpush3.bf16.msra.mxu0 %v6970_v56  ;;  %6989 = vmatpush3.bf16.msra.mxu1 %v6986_v21 }
 0x25e   :  { %6528 = vmatprep.subr.mxu0 %v5058_v9  ;;  %6564 = vmatprep.subr.mxu1 %v5079_v50 }
 0x25f   :  { %6471 = vmatmul.mubr.msk.f32.gmra.mrb[184].mxu0 %vm2569_vm4, %v8681_v49  ;;  %6507 = vmatmul.mubr.msk.f32.gmra.mrb[184].mxu1 %vm2569_vm4, %v8681_v49 }
 0x260   :  { %6473 = vmatprep.mubr.msk.f32.mxu0 %vm2569_vm4, %v8687_v16  ;;  %6509 = vmatprep.mubr.msk.f32.mxu1 %vm2569_vm4, %v8687_v16 }
 0x261   :  { %6529 = vmatpush3.msra.mxu0 %v5058_v9  ;;  %6565 = vmatpush3.msra.mxu1 %v5079_v50 }
 0x262   :  { %6990 = vmatprep.subr.bf16.mxu0 %v7167_v24  ;;  %7002 = vmatprep.subr.bf16.mxu1 %v7167_v24 }
 0x263   :  { %6474 = vmatmul.mubr.msk.f32.gmra.mrb[186].mxu0 %vm2569_vm4, %v8693_v8  ;;  %6510 = vmatmul.mubr.msk.f32.gmra.mrb[186].mxu1 %vm2569_vm4, %v8693_v8 }
 0x264   :  { %6530 = vmatprep.mubr.msk.f32.mxu0 %vm2569_vm4, %v8566_v39  ;;  %6566 = vmatprep.mubr.msk.f32.mxu1 %vm2569_vm4, %v8566_v39 }
 0x267   :  { %6531 = vmatmul.mubr.msk.f32.vlgmr.msra.gmra.mrb[188].mxu0 %vm2569_vm4, %v8591_v51  ;;  %6567 = vmatmul.mubr.msk.f32.vlgmr.msra.gmra.mrb[188].mxu1 %vm2569_vm4, %v8591_v51 }
 0x268   :  { %6533 = vmatprep.mubr.msk.f32.mxu0 %vm2569_vm4, %v8610_v13  ;;  %6569 = vmatprep.mubr.msk.f32.mxu1 %vm2569_vm4, %v8610_v13 }
 0x269   :  { %7004 = vmatpush3.bf16.msra.mxu1 %v7003_v60  ;;  %6992 = vmatpush3.bf16.msra.mxu0 %v6991_v3 }
 0x26a   :  { %7005 = vmatprep.subr.bf16.mxu1 %v7167_v24  ;;  %6993 = vmatprep.subr.bf16.mxu0 %v7167_v24 }
 0x26b   :  { %6534 = vmatmul.mubr.msk.f32.gmra.mrb[190].mxu0 %vm2569_vm4, %v8626_v35  ;;  %6570 = vmatmul.mubr.msk.f32.gmra.mrb[190].mxu1 %vm2569_vm4, %v8626_v35 }
 0x26c   :  { %6536 = vmatprep.mubr.msk.f32.mxu0 %vm2569_vm4, %v8642_v34  ;;  %6572 = vmatprep.mubr.msk.f32.mxu1 %vm2569_vm4, %v8642_v34 }
 0x26d   :  { %7007 = vmatpush3.bf16.msra.mxu1 %v7006_v5  ;;  %6995 = vmatpush3.bf16.msra.mxu0 %v6994_v29 }
 0x26e   :  { %7008 = vmatprep.subr.bf16.mxu1 %v7167_v24  ;;  %6996 = vmatprep.subr.bf16.mxu0 %v7167_v24 }
 0x26f   :  { %6537 = vmatmul.mubr.msk.f32.gmra.mrb[192].mxu0 %vm2569_vm4, %v8657_v2  ;;  %6573 = vmatmul.mubr.msk.f32.gmra.mrb[192].mxu1 %vm2569_vm4, %v8657_v2 }
 0x270   :  { %6539 = vmatprep.mubr.msk.f32.mxu0 %vm2569_vm4, %v8663_v63  ;;  %6575 = vmatprep.mubr.msk.f32.mxu1 %vm2569_vm4, %v8663_v63 }
 0x271   :  { %7010 = vmatpush3.bf16.msra.mxu1 %v7009_v19  ;;  %6998 = vmatpush3.bf16.msra.mxu0 %v6997_v4 }
 0x272   :  { %7011 = vmatprep.subr.bf16.mxu1 %v7167_v24  ;;  %6999 = vmatprep.subr.bf16.mxu0 %v7167_v24 }
 0x273   :  { %6540 = vmatmul.mubr.msk.f32.gmra.mrb[194].mxu0 %vm2569_vm4, %v8669_v10  ;;  %6576 = vmatmul.mubr.msk.f32.gmra.mrb[194].mxu1 %vm2569_vm4, %v8669_v10 }
 0x274   :  { %6542 = vmatprep.mubr.msk.f32.mxu0 %vm2569_vm4, %v8675_v20  ;;  %6578 = vmatprep.mubr.msk.f32.mxu1 %vm2569_vm4, %v8675_v20 }
 0x275   :  { %7013 = vmatpush3.bf16.msra.mxu1 %v7012_v36  ;;  %7001 = vmatpush3.bf16.msra.mxu0 %v7000_v6 }
 0x276   :  { %7026 = vmatprep.subr.bf16.mxu1 %v7167_v24  ;;  %7014 = vmatprep.subr.bf16.mxu0 %v7167_v24 }
 0x277   :  { %6543 = vmatmul.mubr.msk.f32.gmra.mrb[196].mxu0 %vm2569_vm4, %v8681_v49  ;;  %6579 = vmatmul.mubr.msk.f32.gmra.mrb[196].mxu1 %vm2569_vm4, %v8681_v49 }
 0x278   :  { %6545 = vmatprep.mubr.msk.f32.mxu0 %vm2569_vm4, %v8687_v16  ;;  %6581 = vmatprep.mubr.msk.f32.mxu1 %vm2569_vm4, %v8687_v16 }
 0x27b   :  { %6546 = vmatmul.mubr.msk.f32.gmra.mrb[198].mxu0 %vm2569_vm4, %v8693_v8  ;;  %6582 = vmatmul.mubr.msk.f32.gmra.mrb[198].mxu1 %vm2569_vm4, %v8693_v8 }
 0x27c   :  { %6619 = vmatprep.mubr.msk.f32.mxu1 %vm7168_vm5, %v7169_v15  ;;  %6600 = vmatprep.mubr.msk.f32.mxu0 %vm7168_vm5, %v7169_v15 }
 0x2c6   :  { %v6244_v39 = vpop.f32.mrb[140].mxu0  ;;  %v6280_v51 = vpop.f32.mrb[140].mxu1 }
 0x2c7   :  { %v2672_v13 = vpop.f32.mrb[141].mxu0  ;;  %v2803_v35 = vpop.f32.mrb[141].mxu1 }
 0x2c8   :  { %v9041_v34 = vadd.f32 %v6280_v51, %v2672_v13 }
 0x2ce   :  { %v6247_v2 = vpop.f32.mrb[142].mxu0  ;;  %v6283_v63 = vpop.f32.mrb[142].mxu1 }
 0x2cf   :  { %v2682_v10 = vpop.f32.mrb[143].mxu0  ;;  %v2812_v20 = vpop.f32.mrb[143].mxu1 }
 0x2d0   :  { %v9043_v49 = vadd.f32 %v6283_v63, %v2682_v10  ;;  %v9045_v52 = vadd.f32 %v6244_v39, %v2812_v20 }
 0x2d6   :  { %v6250_v16 = vpop.f32.mrb[144].mxu0  ;;  %v6286_v18 = vpop.f32.mrb[144].mxu1 }
 0x2d7   :  { %v2692_v37 = vpop.f32.mrb[145].mxu0  ;;  %v2822_v54 = vpop.f32.mrb[145].mxu1 }
 0x2d8   :  { %v9047_v61 = vadd.f32 %v6286_v18, %v2692_v37  ;;  %v9049_v8 = vadd.f32 %v6247_v2, %v2822_v54 }
 0x2de   :  { %v6253_v11 = vpop.f32.mrb[146].mxu0  ;;  %v6289_v12 = vpop.f32.mrb[146].mxu1 }
 0x2df   :  { %v2702_v27 = vpop.f32.mrb[147].mxu0  ;;  %v2832_v41 = vpop.f32.mrb[147].mxu1 }
 0x2e0   :  { %v9072_v38 = vadd.f32 %v6289_v12, %v2702_v27  ;;  %v9074_v22 = vadd.f32 %v6250_v16, %v2832_v41 }
 0x2e6   :  { %v6256_v53 = vpop.f32.mrb[148].mxu0  ;;  %v6292_v32 = vpop.f32.mrb[148].mxu1 }
 0x2e7   :  { %v2712_v46 = vpop.f32.mrb[149].mxu0  ;;  %v2842_v1 = vpop.f32.mrb[149].mxu1 }
 0x2e8   :  { %v2865_v44 = vadd.f32 %v6253_v11, %v2842_v1 }
 0x2ee   :  { %v6259_v40 = vpop.f32.mrb[150].mxu0  ;;  %v6295_v28 = vpop.f32.mrb[150].mxu1 }
 0x2ef   :  { %v2720_v58 = vpop.f32.mrb[151].mxu0  ;;  %v2851_v62 = vpop.f32.mrb[151].mxu1 }
 0x2f2   :  { %v6316_v17 = vpop.f32.mrb[152].mxu0  ;;  %v6352_v7 = vpop.f32.mrb[152].mxu1 }
 0x2f3   :  { %v2942_v56 = vpop.f32.mrb[153].mxu0  ;;  %v3081_v21 = vpop.f32.mrb[153].mxu1 }
 0x2f6   :  { %v6319_v9 = vpop.f32.mrb[154].mxu0  ;;  %v6355_v50 = vpop.f32.mrb[154].mxu1 }
 0x2f7   :  { %v2998_v39 = vadd.f32 %v6319_v9, %v9045_v52  ;;  %v2950_v51 = vpop.f32.mrb[155].mxu0  ;;  %v3089_v13 = vpop.f32.mrb[155].mxu1 }
 0x2f8   :  { %v2997_v35 = vadd.f32 %v2950_v51, %v9041_v34 }
 0x2fa   :  { %v6322_v2 = vpop.f32.mrb[156].mxu0  ;;  %v6358_v63 = vpop.f32.mrb[156].mxu1  ;;  %v3136_v10 = vadd.f32 %v6355_v50, %v2997_v35 }
 0x2fb   :  { %v3000_v20 = vadd.f32 %v6322_v2, %v9049_v8  ;;  %v2960_v16 = vpop.f32.mrb[157].mxu0  ;;  %v3098_v18 = vpop.f32.mrb[157].mxu1 }
 0x2fc   :  { %v2999_v37 = vadd.f32 %v2960_v16, %v9043_v49  ;;  %v3137_v54 = vadd.f32 %v3098_v18, %v2998_v39 }
 0x2fe   :  { %v6325_v25 = vpop.f32.mrb[158].mxu0  ;;  %v6361_v31 = vpop.f32.mrb[158].mxu1  ;;  %v3138_v60 = vadd.f32 %v6358_v63, %v2999_v37 }
 0x2ff   :  { %v3002_v33 = vadd.f32 %v6325_v25, %v9074_v22  ;;  %v2970_v52 = vpop.f32.mrb[159].mxu0  ;;  %v3108_v57 = vpop.f32.mrb[159].mxu1 }
 0x300   :  { %v3001_v14 = vadd.f32 %v2970_v52, %v9047_v61  ;;  %v3139_v34 = vadd.f32 %v3108_v57, %v3000_v20 }
 0x302   :  { %v6328_v3 = vpop.f32.mrb[160].mxu0  ;;  %v6364_v59 = vpop.f32.mrb[160].mxu1  ;;  %v3140_v11 = vadd.f32 %v6361_v31, %v3001_v14 }
 0x303   :  { %v3004_v12 = vadd.f32 %v6328_v3, %v2865_v44  ;;  %v2980_v8 = vpop.f32.mrb[161].mxu0  ;;  %v3118_v5 = vpop.f32.mrb[161].mxu1 }
 0x304   :  { %v3003_v27 = vadd.f32 %v2980_v8, %v9072_v38  ;;  %v3141_v49 = vadd.f32 %v3118_v5, %v3002_v33 }
 0x306   :  { %v6331_v41 = vpop.f32.mrb[162].mxu0  ;;  %v6367_v43 = vpop.f32.mrb[162].mxu1  ;;  %v3142_v0 = vadd.f32 %v6364_v59, %v3003_v27 }
 0x307   :  { %v2990_v45 = vpop.f32.mrb[163].mxu0  ;;  %v3128_v29 = vpop.f32.mrb[163].mxu1 }
 0x308   :  { %v3143_v22 = vadd.f32 %v3128_v29, %v3004_v12 }
 0x30a   :  { %v6388_v23 = vpop.f32.mrb[164].mxu0  ;;  %v6424_v19 = vpop.f32.mrb[164].mxu1 }
 0x30b   :  { %v3220_v48 = vpop.f32.mrb[165].mxu0  ;;  %v3359_v61 = vpop.f32.mrb[165].mxu1 }
 0x30e   :  { %v6391_v55 = vpop.f32.mrb[166].mxu0  ;;  %v6427_v30 = vpop.f32.mrb[166].mxu1 }
 0x30f   :  { %v3228_v4 = vpop.f32.mrb[167].mxu0  ;;  %v3369_v47 = vpop.f32.mrb[167].mxu1 }
 0x312   :  { %v6394_v53 = vpop.f32.mrb[168].mxu0  ;;  %v6430_v32 = vpop.f32.mrb[168].mxu1 }
 0x313   :  { %v9124_v36 = vadd.f32 %v6394_v53, %v3137_v54  ;;  %v3236_v38 = vpop.f32.mrb[169].mxu0  ;;  %v3379_v46 = vpop.f32.mrb[169].mxu1 }
 0x314   :  { %v9126_v1 = vadd.f32 %v3236_v38, %v3136_v10 }
 0x316   :  { %v6397_v44 = vpop.f32.mrb[170].mxu0  ;;  %v6433_v26 = vpop.f32.mrb[170].mxu1 }
 0x317   :  { %v9128_v42 = vadd.f32 %v6397_v44, %v3139_v34  ;;  %v3246_v6 = vpop.f32.mrb[171].mxu0  ;;  %v3389_v40 = vpop.f32.mrb[171].mxu1 }
 0x318   :  { %v9130_v28 = vadd.f32 %v3246_v6, %v3138_v60 }
 0x31a   :  { %v6400_v58 = vpop.f32.mrb[172].mxu0  ;;  %v6436_v62 = vpop.f32.mrb[172].mxu1 }
 0x31b   :  { %v9132_v17 = vadd.f32 %v6400_v58, %v3141_v49  ;;  %v3256_v7 = vpop.f32.mrb[173].mxu0  ;;  %v3399_v56 = vpop.f32.mrb[173].mxu1 }
 0x31c   :  { %v9134_v21 = vadd.f32 %v3256_v7, %v3140_v11 }
 0x31e   :  { %v6403_v9 = vpop.f32.mrb[174].mxu0  ;;  %v6439_v50 = vpop.f32.mrb[174].mxu1 }
 0x31f   :  { %v9136_v39 = vadd.f32 %v6403_v9, %v3143_v22  ;;  %v3266_v51 = vpop.f32.mrb[175].mxu0  ;;  %v3407_v13 = vpop.f32.mrb[175].mxu1 }
 0x320   :  { %v9138_v35 = vadd.f32 %v3266_v51, %v3142_v0 }
 0x322   :  { %v6460_v2 = vpop.f32.mrb[176].mxu0  ;;  %v6496_v63 = vpop.f32.mrb[176].mxu1 }
 0x323   :  { %v3545_v10 = vadd.f32 %v6460_v2, %v3359_v61  ;;  %v3490_v20 = vpop.f32.mrb[177].mxu0  ;;  %v3629_v16 = vpop.f32.mrb[177].mxu1 }
 0x326   :  { %v6463_v18 = vpop.f32.mrb[178].mxu0  ;;  %v6499_v37 = vpop.f32.mrb[178].mxu1 }
 0x327   :  { %v3547_v54 = vadd.f32 %v6463_v18, %v3369_v47  ;;  %v3499_v25 = vpop.f32.mrb[179].mxu0  ;;  %v3637_v31 = vpop.f32.mrb[179].mxu1 }
 0x328   :  { %v3546_v60 = vadd.f32 %v6424_v19, %v3499_v25  ;;  %v3684_v33 = vadd.f32 %v3637_v31, %v3545_v10 }
 0x32a   :  { %v6466_v52 = vpop.f32.mrb[180].mxu0  ;;  %v6502_v57 = vpop.f32.mrb[180].mxu1  ;;  %v3685_v14 = vadd.f32 %v6499_v37, %v3546_v60 }
 0x32b   :  { %v3549_v34 = vadd.f32 %v6466_v52, %v3379_v46  ;;  %v3509_v3 = vpop.f32.mrb[181].mxu0  ;;  %v3647_v59 = vpop.f32.mrb[181].mxu1  ;;  %v5092_v52 = vld [vmem:[%s9346_s4] ss:$0 sm:$0xff] }
 0x32c   :  { %v3548_v11 = vadd.f32 %v6427_v30, %v3509_v3  ;;  %v3686_v12 = vadd.f32 %v3647_v59, %v3547_v54 }
 0x32e   :  { %v6469_v8 = vpop.f32.mrb[182].mxu0  ;;  %v6505_v5 = vpop.f32.mrb[182].mxu1  ;;  %v3687_v27 = vadd.f32 %v6502_v57, %v3548_v11 }
 0x32f   :  { %v3551_v49 = vadd.f32 %v6469_v8, %v3389_v40  ;;  %v3519_v41 = vpop.f32.mrb[183].mxu0  ;;  %v3657_v43 = vpop.f32.mrb[183].mxu1 }
 0x330   :  { %v3550_v0 = vadd.f32 %v6430_v32, %v3519_v41  ;;  %v3688_v45 = vadd.f32 %v3657_v43, %v3549_v34 }
 0x332   :  { %v6472_v29 = vpop.f32.mrb[184].mxu0  ;;  %v6508_v22 = vpop.f32.mrb[184].mxu1  ;;  %v3689_v23 = vadd.f32 %v6505_v5, %v3550_v0 }
 0x333   :  { %v3529_v19 = vpop.f32.mrb[185].mxu0  ;;  %v3667_v48 = vpop.f32.mrb[185].mxu1 }
 0x334   :  { %v3552_v61 = vadd.f32 %v6433_v26, %v3529_v19  ;;  %v3690_v55 = vadd.f32 %v3667_v48, %v3551_v49 }
 0x336   :  { %v6475_v4 = vpop.f32.mrb[186].mxu0  ;;  %v6511_v47 = vpop.f32.mrb[186].mxu1  ;;  %v3691_v53 = vadd.f32 %v6508_v22, %v3552_v61 }
 0x337   :  { %v3538_v30 = vpop.f32.mrb[187].mxu0  ;;  %v3677_v38 = vpop.f32.mrb[187].mxu1 }
 0x33a   :  { %v6532_v46 = vpop.f32.mrb[188].mxu0  ;;  %v6568_v44 = vpop.f32.mrb[188].mxu1 }
 0x33b   :  { %v3768_v6 = vpop.f32.mrb[189].mxu0  ;;  %v3907_v40 = vpop.f32.mrb[189].mxu1 }
 0x33e   :  { %v6535_v58 = vpop.f32.mrb[190].mxu0  ;;  %v6571_v62 = vpop.f32.mrb[190].mxu1 }
 0x33f   :  { %v3823_v32 = vadd.f32 %v6535_v58, %v3684_v33  ;;  %v3776_v7 = vpop.f32.mrb[191].mxu0  ;;  %v3915_v56 = vpop.f32.mrb[191].mxu1 }
 0x342   :  { %v6538_v9 = vpop.f32.mrb[192].mxu0  ;;  %v6574_v50 = vpop.f32.mrb[192].mxu1 }
 0x343   :  { %v3825_v51 = vadd.f32 %v6538_v9, %v3686_v12  ;;  %v3785_v13 = vpop.f32.mrb[193].mxu0  ;;  %v3923_v26 = vpop.f32.mrb[193].mxu1 }
 0x344   :  { %v3824_v2 = vadd.f32 %v3785_v13, %v3685_v14  ;;  %v3962_v63 = vadd.f32 %v3923_v26, %v3823_v32  ;;  %v5104_v13 = vld [vmem:[%s9345_s5 + $0x88] sm:$0xff]  ;;  %v5114_v26 = vld [vmem:[%s9345_s5 + $0xd0] sm:$0xff] }
 0x346   :  { %v3963_v10 = vadd.f32 %v6574_v50, %v3824_v2  ;;  %v3970_v20 = vmax.f32 %v9126_v1, %v3962_v63  ;;  %v6541_v16 = vpop.f32.mrb[194].mxu0  ;;  %v6577_v18 = vpop.f32.mrb[194].mxu1  ;;  %v5103_v50 = vld [vmem:[%s9345_s5 + $0x80] sm:$0xff]  ;;  %v5115_v2 = vld [vmem:[%s9345_s5 + $0xd8] sm:$0xff] }
 0x347   :  { %v3827_v37 = vadd.f32 %v6541_v16, %v3688_v45  ;;  %v3795_v54 = vpop.f32.mrb[195].mxu0  ;;  %v3933_v25 = vpop.f32.mrb[195].mxu1  ;;  %v7030_v16 = vpack.c.bf16 %v5115_v2, %v5114_v26 }
 0x348   :  { %v3971_v31 = vmax.f32 %v9124_v36, %v3963_v10  ;;  %v3826_v60 = vadd.f32 %v3795_v54, %v3687_v27  ;;  %v3964_v33 = vadd.f32 %v3933_v25, %v3825_v51  ;;  %v5106_v54 = vld [vmem:[%s9345_s5 + $0x98] sm:$0xff]  ;;  %v5116_v25 = vld [vmem:[%s9345_s5 + $0xe0] sm:$0xff] }
 0x34a   :  { %v3978_v57 = vmax.f32 %v3970_v20, %v3971_v31  ;;  %v3965_v34 = vadd.f32 %v6577_v18, %v3826_v60  ;;  %v3972_v14 = vmax.f32 %v9130_v28, %v3964_v33  ;;  %v6544_v3 = vpop.f32.mrb[196].mxu0  ;;  %v6580_v59 = vpop.f32.mrb[196].mxu1  ;;  %v7015_v20 = vpack.c.bf16 %v5104_v13, %v5103_v50  ;;  %v5105_v18 = vld [vmem:[%s9345_s5 + $0x90] sm:$0xff]  ;;  %v5117_v31 = vld [vmem:[%s9345_s5 + $0xe8] sm:$0xff]  ;;  %v5121_v50 = vld [vmem:[%s9348_s6] ss:$0 sm:$0xff] }
 0x34b   :  { %v3829_v1 = vadd.f32 %v6544_v3, %v3690_v55  ;;  %v3805_v11 = vpop.f32.mrb[197].mxu0  ;;  %v3943_v12 = vpop.f32.mrb[197].mxu1  ;;  %v5118_v3 = vld [vmem:[%s9345_s5 + $0xf0] sm:$0xff] }
 0x34c   :  { %v3989_v8 = vadd.f32 %v5092_v52, %v3978_v57  ;;  %v3973_v5 = vmax.f32 %v9128_v42, %v3965_v34  ;;  %v3828_v49 = vadd.f32 %v3805_v11, %v3689_v23  ;;  %v3966_v36 = vadd.f32 %v3943_v12, %v3827_v37  ;;  %v5107_v34 = vld [vmem:[%s9345_s5 + $0xa0] sm:$0xff]  ;;  %v5109_v12 = vld [vmem:[%s9345_s5 + $0xb0] sm:$0xff] }
 0x34d   :  { %v7033_v57 = vpack.c.bf16 %v5117_v31, %v5116_v25  ;;  %v4463_v25 = vld [vmem:[%s9349_s9 + $0x18] sm:$0xff] }
 0x34e   :  { %v3993_v27 = vsub.f32 0.0, %v3989_v8  ;;  %v3979_v41 = vmax.f32 %v3972_v14, %v3973_v5  ;;  %v3967_v43 = vadd.f32 %v6580_v59, %v3828_v49  ;;  %v3974_v0 = vmax.f32 %v9134_v21, %v3966_v36  ;;  %v6547_v45 = vpop.f32.mrb[198].mxu0  ;;  %v6583_v29 = vpop.f32.mrb[198].mxu1  ;;  %v5108_v14 = vld [vmem:[%s9345_s5 + $0xa8] sm:$0xff]  ;;  %v5119_v59 = vld [vmem:[%s9345_s5 + $0xf8] sm:$0xff] }
 0x34f   :  { %v3815_v22 = vpop.f32.mrb[199].mxu0  ;;  %v3953_v19 = vpop.f32.mrb[199].mxu1  ;;  %v7036_v11 = vpack.c.bf16 %v5119_v59, %v5118_v3  ;;  %v5110_v8 = vld [vmem:[%s9345_s5 + $0xb8] sm:$0xff]  ;;  %v4468_v3 = vld [vmem:[%s9349_s9 + $0x40] sm:$0xff]  ;;  %v4469_v59 = vld [vmem:[%s9349_s9 + $0x48] sm:$0xff] }
 0x350   :  { %v3997_v28 = vmul.f32 1.442695, %v3993_v27  ;;  %v3990_v48 = vadd.f32 %v5092_v52, %v3979_v41  ;;  %v3975_v61 = vmax.f32 %v9132_v17, %v3967_v43  ;;  %v3830_v55 = vadd.f32 %v3815_v22, %v3691_v53  ;;  %v4361_v27 = vld [vmem:[%s9347_s7] sm:$0xff]  ;;  %v4362_v41 = vld [vmem:[%s9347_s7 + $0x8] sm:$0xff] }
 0x351   :  { %v3968_v4 = vadd.f32 %v3953_v19, %v3829_v1  ;;  %v7021_v1 = vpack.c.bf16 %v5108_v14, %v5107_v34  ;;  %v7024_v5 = vpack.c.bf16 %v5110_v8, %v5109_v12  ;;  %v7039_v43 = vpack.c.bf16 %v4362_v41, %v4361_v27  ;;  %v4366_v22 = vld [vmem:[%s9347_s7 + $0x28] sm:$0xff]  ;;  %v4467_v34 = vld [vmem:[%s9349_s9 + $0x38] sm:$0xff]  ;;  %v4474_v27 = vld [vmem:[%s9349_s9 + $0x70] sm:$0xff] }
 0x352   :  { %7138 = vpow2.f32 %v3997_v28  ;;  %v3994_v47 = vsub.f32 0.0, %v3990_v48  ;;  %v3980_v42 = vmax.f32 %v3974_v0, %v3975_v61  ;;  %v3969_v23 = vadd.f32 %v6583_v29, %v3830_v55  ;;  %v4363_v0 = vld [vmem:[%s9347_s7 + $0x10] sm:$0xff]  ;;  %v4365_v29 = vld [vmem:[%s9347_s7 + $0x20] sm:$0xff]  ;;  %v4368_v48 = vld [vmem:[%s9347_s7 + $0x38] sm:$0xff] }
 0x353   :  { %v3976_v30 = vmax.f32 %v9138_v35, %v3968_v4  ;;  %v5113_v35 = vld [vmem:[%s9345_s5 + $0xc8] sm:$0xff]  ;;  %v7045_v19 = vpack.c.bf16 %v4366_v22, %v4365_v29  ;;  %v4367_v28 = vld [vmem:[%s9347_s7 + $0x30] sm:$0xff]  ;;  %v4369_v55 = vld [vmem:[%s9347_s7 + $0x40] sm:$0xff] }
 0x354   :  { %v3999_v38 = vmul.f32 1.442695, %v3994_v47  ;;  %v3977_v46 = vmax.f32 %v9136_v39, %v3969_v23  ;;  %v3991_v21 = vadd.f32 %v5092_v52, %v3980_v42  ;;  %v5112_v39 = vld [vmem:[%s9345_s5 + $0xc0] sm:$0xff]  ;;  %v7048_v61 = vpack.c.bf16 %v4368_v48, %v4367_v28  ;;  %v4370_v4 = vld [vmem:[%s9347_s7 + $0x48] sm:$0xff]  ;;  %v4371_v42 = vld [vmem:[%s9347_s7 + $0x50] sm:$0xff] }
 0x355   :  { %v7027_v9 = vpack.c.bf16 %v5113_v35, %v5112_v39  ;;  %v7051_v47 = vpack.c.bf16 %v4370_v4, %v4369_v55  ;;  %v4372_v23 = vld [vmem:[%s9347_s7 + $0x58] sm:$0xff] }
 0x356   :  { %7140 = vpow2.f32 %v3999_v38  ;;  %v3981_v44 = vmax.f32 %v3976_v30, %v3977_v46  ;;  %v3995_v40 = vsub.f32 0.0, %v3991_v21  ;;  %v7054_v30 = vpack.c.bf16 %v4372_v23, %v4371_v42  ;;  %v4373_v38 = vld [vmem:[%s9347_s7 + $0x60] sm:$0xff]  ;;  %v4374_v46 = vld [vmem:[%s9347_s7 + $0x68] sm:$0xff]  ;;  %v4471_v12 = vld [vmem:[%s9349_s9 + $0x58] sm:$0xff] }
 0x357   :  { %v7057_v21 = vpack.c.bf16 %v4374_v46, %v4373_v38  ;;  %v4475_v41 = vld [vmem:[%s9349_s9 + $0x78] sm:$0xff] }
 0x358   :  { %v3992_v6 = vadd.f32 %v5092_v52, %v3981_v44  ;;  %v4001_v53 = vmul.f32 1.442695, %v3995_v40  ;;  %v7018_v52 = vpack.c.bf16 %v5106_v54, %v5105_v18  ;;  %v4375_v44 = vld [vmem:[%s9347_s7 + $0x70] sm:$0xff]  ;;  %v4461_v18 = vld [vmem:[%s9349_s9 + $0x8] sm:$0xff] }
 0x359   :  { %v4462_v54 = vld [vmem:[%s9349_s9 + $0x10] sm:$0xff] }
 0x35a   :  { %v3996_v58 = vsub.f32 0.0, %v3992_v6  ;;  %v4376_v6 = vld [vmem:[%s9347_s7 + $0x78] sm:$0xff]  ;;  %v7066_v31 = vpack.c.bf16 %v4463_v25, %v4462_v54 }
 0x35b   :  { %v7060_v40 = vpack.c.bf16 %v4376_v6, %v4375_v44 }
 0x35c   :  { %v7139_v62 = vpop.eup %7138  ;;  %v4003_v32 = vmul.f32 1.442695, %v3996_v58 }
 0x35d   :  { %v4005_v17 = vadd.f32 1.0, %v7139_v62 }
 0x35e   :  { %7142 = vpow2.f32 %v4003_v32 }
 0x35f   :  { %7144 = vrcp.f32 %v4005_v17 }
 0x360   :  { %v7141_v7 = vpop.eup %7140  ;;  %7146 = vpow2.f32 %v4001_v53 }
 0x361   :  { %v4006_v56 = vadd.f32 1.0, %v7141_v7 }
 0x363   :  { %7148 = vrcp.f32 %v4006_v56 }
 0x368   :  { %v7143_v51 = vpop.eup %7142 }
 0x369   :  { %v7145_v63 = vpop.eup %7144  ;;  %v4008_v10 = vadd.f32 1.0, %v7143_v51 }
 0x36a   :  { %6620 = vmatmul.mubr.msk.f32.vlgmr.msra.gmra.mrb[200].mxu1 %vm4034_vm6, %v7145_v63  ;;  %v7147_v37 = vpop.eup %7146 }
 0x36b   :  { %7028 = vmatpush3.bf16.msra.mxu1 %v7027_v9  ;;  %6657 = vmatprep.mubr.msk.f32.mxu1 %vm7168_vm5, %v7169_v15  ;;  %v4007_v33 = vadd.f32 1.0, %v7147_v37  ;;  %7150 = vrcp.f32 %v4008_v10 }
 0x36c   :  { %7029 = vmatprep.subr.bf16.mxu1 %v7167_v24 }
 0x36d   :  { %v7149_v60 = vpop.eup %7148  ;;  %7152 = vrcp.f32 %v4007_v33  ;;  %v4465_v33 = vld [vmem:[%s9349_s9 + $0x28] sm:$0xff] }
 0x36e   :  { %6601 = vmatmul.mubr.msk.f32.vlgmr.msra.gmra.mrb[200].mxu0 %vm4034_vm6, %v7149_v60  ;;  %v4464_v60 = vld [vmem:[%s9349_s9 + $0x20] sm:$0xff] }
 0x36f   :  { %7016 = vmatpush3.bf16.msra.mxu0 %v7015_v20  ;;  %7031 = vmatpush3.bf16.msra.mxu1 %v7030_v16  ;;  %v4460_v16 = vld [vmem:[%s9349_s9] sm:$0xff] }
 0x370   :  { %7017 = vmatprep.subr.bf16.mxu0 %v7167_v24  ;;  %7032 = vmatprep.subr.bf16.mxu1 %v7167_v24  ;;  %v7063_v37 = vpack.c.bf16 %v4461_v18, %v4460_v16 }
 0x371   :  { %6638 = vmatprep.mubr.msk.f32.mxu0 %vm7168_vm5, %v7169_v15 }
 0x373   :  { %7019 = vmatpush3.bf16.msra.mxu0 %v7018_v52  ;;  %7034 = vmatpush3.bf16.msra.mxu1 %v7033_v57  ;;  %v7069_v52 = vpack.c.bf16 %v4465_v33, %v4464_v60  ;;  %v4466_v57 = vld [vmem:[%s9349_s9 + $0x30] sm:$0xff] }
 0x374   :  { %7020 = vmatprep.subr.bf16.mxu0 %v7167_v24  ;;  %7035 = vmatprep.subr.bf16.mxu1 %v7167_v24  ;;  %v7072_v14 = vpack.c.bf16 %v4467_v34, %v4466_v57 }
 0x375   :  { %v7151_v49 = vpop.eup %7150 }
 0x377   :  { %7022 = vmatpush3.bf16.msra.mxu0 %v7021_v1  ;;  %7037 = vmatpush3.bf16.msra.mxu1 %v7036_v11  ;;  %v7153_v36 = vpop.eup %7152  ;;  %v7075_v1 = vpack.c.bf16 %v4469_v59, %v4468_v3  ;;  %v4470_v11 = vld [vmem:[%s9349_s9 + $0x50] sm:$0xff] }
 0x378   :  { %7023 = vmatprep.subr.bf16.mxu0 %v7167_v24  ;;  %7062 = vmatprep.subr.bf16.mxu1 %v7167_v24  ;;  %v7078_v8 = vpack.c.bf16 %v4471_v12, %v4470_v11 }
 0x37a   :  { %6658 = vmatmul.mubr.msk.f32.vlgmr.msra.gmra.mrb[202].mxu1 %vm4034_vm6, %v7151_v49  ;;  %v4473_v49 = vld [vmem:[%s9349_s9 + $0x68] sm:$0xff] }
 0x37b   :  { %7025 = vmatpush3.bf16.msra.mxu0 %v7024_v5  ;;  %6727 = vmatprep.mubr.msk.f32.mxu1 %vm7168_vm5, %v7169_v15  ;;  %v4472_v5 = vld [vmem:[%s9349_s9 + $0x60] sm:$0xff] }
 0x37c   :  { %7038 = vmatprep.subr.bf16.mxu0 %v7167_v24  ;;  %7064 = vmatpush3.bf16.msra.mxu1 %v7063_v37 }
 0x37d   :  { %7065 = vmatprep.subr.bf16.mxu1 %v7167_v24 }
 0x37e   :  { %6639 = vmatmul.mubr.msk.f32.vlgmr.msra.gmra.mrb[202].mxu0 %vm4034_vm6, %v7153_v36  ;;  %v7081_v36 = vpack.c.bf16 %v4473_v49, %v4472_v5 }
 0x37f   :  { %6692 = vmatprep.mubr.msk.f32.mxu0 %vm7168_vm5, %v7169_v15  ;;  %7040 = vmatpush3.bf16.msra.mxu0 %v7039_v43  ;;  %v4364_v15 = vld [vmem:[%s9347_s7 + $0x18] sm:$0xff]  ;;  %v7084_v43 = vpack.c.bf16 %v4475_v41, %v4474_v27 }
 0x380   :  { %7041 = vmatprep.subr.bf16.mxu0 %v7167_v24  ;;  %v7042_v45 = vpack.c.bf16 %v4364_v15, %v4363_v0  ;;  %7067 = vmatpush3.bf16.msra.mxu1 %v7066_v31  ;;  %v5122_v0 = vld [vmem:[%s9350_s8] ss:$0 sm:$0xff] }
 0x381   :  { %7068 = vmatprep.subr.bf16.mxu1 %v7167_v24 }
 0x383   :  { %7043 = vmatpush3.bf16.msra.mxu0 %v7042_v45 }
 0x384   :  { %7044 = vmatprep.subr.bf16.mxu0 %v7167_v24  ;;  %7070 = vmatpush3.bf16.msra.mxu1 %v7069_v52 }
 0x385   :  { %7071 = vmatprep.subr.bf16.mxu1 %v7167_v24 }
 0x387   :  { %7046 = vmatpush3.bf16.msra.mxu0 %v7045_v19 }
 0x388   :  { %7047 = vmatprep.subr.bf16.mxu0 %v7167_v24  ;;  %7073 = vmatpush3.bf16.msra.mxu1 %v7072_v14 }
 0x389   :  { %7074 = vmatprep.subr.bf16.mxu1 %v7167_v24 }
 0x38b   :  { %7049 = vmatpush3.bf16.msra.mxu0 %v7048_v61 }
 0x38c   :  { %7050 = vmatprep.subr.bf16.mxu0 %v7167_v24  ;;  %7076 = vmatpush3.bf16.msra.mxu1 %v7075_v1 }
 0x38d   :  { %7077 = vmatprep.subr.bf16.mxu1 %v7167_v24 }
 0x38f   :  { %7052 = vmatpush3.bf16.msra.mxu0 %v7051_v47 }
 0x390   :  { %7053 = vmatprep.subr.bf16.mxu0 %v7167_v24  ;;  %7079 = vmatpush3.bf16.msra.mxu1 %v7078_v8 }
 0x391   :  { %7080 = vmatprep.subr.bf16.mxu1 %v7167_v24 }
 0x393   :  { %7055 = vmatpush3.bf16.msra.mxu0 %v7054_v30 }
 0x394   :  { %7056 = vmatprep.subr.bf16.mxu0 %v7167_v24  ;;  %7082 = vmatpush3.bf16.msra.mxu1 %v7081_v36 }
 0x395   :  { %7083 = vmatprep.subr.bf16.mxu1 %v7167_v24 }
 0x397   :  { %7058 = vmatpush3.bf16.msra.mxu0 %v7057_v21 }
 0x398   :  { %7059 = vmatprep.subr.bf16.mxu0 %v7167_v24  ;;  %7085 = vmatpush3.bf16.msra.mxu1 %v7084_v43  ;;  %v5123_v24 = vld [vmem:[%s9351_s10] ss:$0 sm:$0xff] }
 0x39b   :  { %7061 = vmatpush3.bf16.msra.mxu0 %v7060_v40 }
 0x43d   :  { %v4177_v58 = vpop.f32.mrb[200].mxu1 }
 0x43e   :  { %v6621_v62 = vpop.f32.mrb[201].mxu1 }
 0x441   :  { %v4104_v32 = vpop.f32.mrb[200].mxu0 }
 0x442   :  { %v4178_v17 = vadd.f32 %v4177_v58, %v4104_v32  ;;  %v6602_v53 = vpop.f32.mrb[201].mxu0 }
 0x44d   :  { %v4342_v7 = vpop.f32.mrb[202].mxu1 }
 0x44e   :  { %v6659_v56 = vpop.f32.mrb[203].mxu1 }
 0x451   :  { %v4259_v39 = vpop.f32.mrb[202].mxu0 }
 0x452   :  { %v4263_v35 = vadd.f32 %v4259_v39, %v4178_v17  ;;  %v6640_v9 = vpop.f32.mrb[203].mxu0 }
 0x454   :  { %v4346_v51 = vadd.f32 %v4342_v7, %v4263_v35 }
 0x456   :  { %v4354_v13 = vadd.f32 %v5121_v50, %v4346_v51 }
 0x458   :  { %v4355_v26 = vsub.f32 0.0, %v4354_v13 }
 0x45a   :  { %v4356_v2 = vmul.f32 1.442695, %v4355_v26 }
 0x45c   :  { %7154 = vpow2.f32 %v4356_v2 }
 0x466   :  { %v7155_v63 = vpop.eup %7154 }
 0x467   :  { %v4358_v10 = vadd.f32 1.0, %v7155_v63 }
 0x469   :  { %7156 = vrcp.f32 %v4358_v10 }
 0x473   :  { %v7157_v20 = vpop.eup %7156 }
 0x474   :  { %6693 = vmatmul.mubr.f32.vlgmr.msra.gmra.mrb[204].mxu0 %v7157_v20 }
 0x547   :  { %v4450_v15 = vpop.f32.mrb[204].mxu0 }
 0x548   :  { %v4451_v45 = vadd.f32 %v5122_v0, %v4450_v15  ;;  %v6694_v29 = vpop.f32.mrb[205].mxu0 }
 0x54a   :  { %v4454_v22 = vsub.f32 0.0, %v4451_v45 }
 0x54c   :  { %v4455_v19 = vmul.f32 1.442695, %v4454_v22 }
 0x54e   :  { %7158 = vpow2.f32 %v4455_v19 }
 0x558   :  { %v7159_v28 = vpop.eup %7158 }
 0x559   :  { %v4457_v48 = vadd.f32 1.0, %v7159_v28 }
 0x55b   :  { %7160 = vrcp.f32 %v4457_v48 }
 0x565   :  { %v7161_v61 = vpop.eup %7160 }
 0x566   :  { %6728 = vmatmul.mubr.f32.vlgmr.msra.gmra.mrb[204].mxu1 %v7161_v61 }
 0x639   :  { %v4549_v55 = vpop.f32.mrb[204].mxu1 }
 0x63a   :  { %v4550_v4 = vadd.f32 %v5123_v24, %v4549_v55  ;;  %v6729_v47 = vpop.f32.mrb[205].mxu1 }
 0x63c   :  { %v4553_v42 = vsub.f32 0.0, %v4550_v4 }
 0x63e   :  { %v4554_v23 = vmul.f32 1.442695, %v4553_v42 }
 0x640   :  { %7162 = vpow2.f32 %v4554_v23 }
 0x64a   :  { %v7163_v30 = vpop.eup %7162 }
 0x64b   :  { %v4556_v38 = vadd.f32 1.0, %v7163_v30 }
 0x64d   :  { %7164 = vrcp.f32 %v4556_v38 }
 0x657   :  { %v7165_v46 = vpop.eup %7164 }
 0x658   :  { %4559 = vst [vmem:[%s9352_s11] sm:$0xff] %v7165_v46 }

</bundles_post_ra>
